<compile_context>
chip_gen: v5e
topology: v5e:2x2
jax: 0.10.0
libtpu: 0.0.40
codegen_flags: <defaults>
</compile_context>

<pallas_src>
import functools

import numpy as np
import jax
import jax.numpy as jnp
from jax.experimental import pallas as pl
from jax.experimental.pallas import tpu as pltpu


# ----------------------------------------------------------------------------
# Kernels
# ----------------------------------------------------------------------------
def _attn_ln_core(x_res, q, k, v, wo_ref, g_ref, b_ref, o_ref, *,
                  heads, scale, causal, mask_val, eps):
    """Shared core: per-head attention + output proj + residual + LayerNorm."""
    Sq, D = x_res.shape
    Sk = k.shape[0]
    d_attn = q.shape[1]
    dh = d_attn // heads

    if causal:
        row = jax.lax.broadcasted_iota(jnp.int32, (Sq, Sk), 0)
        col = jax.lax.broadcasted_iota(jnp.int32, (Sq, Sk), 1)
        bias = jnp.where(col <= row, 0.0, mask_val).astype(jnp.float32)
    else:
        bias = None

    wo = wo_ref[...]                                       # (d_attn, D) f32
    proj = jnp.zeros((Sq, D), jnp.float32)
    for h in range(heads):
        qh = q[:, h * dh:(h + 1) * dh].astype(jnp.bfloat16)
        kh = k[:, h * dh:(h + 1) * dh].astype(jnp.bfloat16)
        vh = v[:, h * dh:(h + 1) * dh].astype(jnp.bfloat16)
        # scores = qh @ kh.T  (contract last dims; no explicit transpose)
        s = jax.lax.dot_general(qh, kh, (((1,), (1,)), ((), ())),
                                preferred_element_type=jnp.float32) * scale
        if bias is not None:
            s = s + bias
        s = s - jnp.max(s, axis=-1, keepdims=True)
        p = jnp.exp(s)
        p = p * pl.reciprocal(jnp.sum(p, axis=-1, keepdims=True), approx=True)
        oh = jnp.dot(p.astype(jnp.bfloat16), vh,
                     preferred_element_type=jnp.float32)   # (Sq, dh)
        # accumulate the output projection head-by-head: attn @ wo == sum_h oh @ wo_h
        wo_h = wo[h * dh:(h + 1) * dh, :].astype(jnp.bfloat16)
        proj = proj + jnp.dot(oh.astype(jnp.bfloat16), wo_h,
                              preferred_element_type=jnp.float32)

    r = x_res + proj
    mu = jnp.mean(r, axis=-1, keepdims=True)
    var = jnp.mean((r - mu) ** 2, axis=-1, keepdims=True)
    y = (r - mu) * jax.lax.rsqrt(var + eps)
    o_ref[0] = (y * g_ref[...] + b_ref[...]).astype(o_ref.dtype)


def _self_attn_ln_kernel(x_ref, wqkv_ref, wo_ref, g_ref, b_ref, o_ref, *,
                         heads, d_attn, scale, causal, mask_val, eps):
    x = x_ref[0]                                           # (S, D) f32
    # single fused QKV matmul
    qkv = jnp.dot(x.astype(jnp.bfloat16), wqkv_ref[...].astype(jnp.bfloat16),
                  preferred_element_type=jnp.float32)      # (S, 3*d_attn)
    q = qkv[:, :d_attn]
    k = qkv[:, d_attn:2 * d_attn]
    v = qkv[:, 2 * d_attn:]
    _attn_ln_core(x, q, k, v, wo_ref, g_ref, b_ref, o_ref,
                  heads=heads, scale=scale, causal=causal,
                  mask_val=mask_val, eps=eps)


def _cross_attn_ln_kernel(xq_ref, xkv_ref, wqkv_ref, wo_ref, g_ref, b_ref, o_ref, *,
                          heads, d_attn, scale, mask_val, eps):
    xq = xq_ref[0]                                         # (Sq, D)
    xkv = xkv_ref[0]                                       # (Sk, D)
    wqkv = wqkv_ref[...].astype(jnp.bfloat16)
    q = jnp.dot(xq.astype(jnp.bfloat16), wqkv[:, :d_attn],
                preferred_element_type=jnp.float32)
    kv = jnp.dot(xkv.astype(jnp.bfloat16), wqkv[:, d_attn:],
                 preferred_element_type=jnp.float32)       # (Sk, 2*d_attn)
    k = kv[:, :d_attn]
    v = kv[:, d_attn:]
    _attn_ln_core(xq, q, k, v, wo_ref, g_ref, b_ref, o_ref,
                  heads=heads, scale=scale, causal=False,
                  mask_val=mask_val, eps=eps)


def _ffn_ln_kernel(x_ref, w1_ref, b1_ref, w2_ref, b2_ref, g_ref, b_ref, o_ref, *, eps):
    x = x_ref[0]                                           # (S, D) f32
    h = jnp.dot(x.astype(jnp.bfloat16), w1_ref[...].astype(jnp.bfloat16),
                preferred_element_type=jnp.float32) + b1_ref[...]
    h = jnp.maximum(h, 0.0)
    o = jnp.dot(h.astype(jnp.bfloat16), w2_ref[...].astype(jnp.bfloat16),
                preferred_element_type=jnp.float32) + b2_ref[...]
    r = x + o
    mu = jnp.mean(r, axis=-1, keepdims=True)
    var = jnp.mean((r - mu) ** 2, axis=-1, keepdims=True)
    y = (r - mu) * jax.lax.rsqrt(var + eps)
    o_ref[0] = (y * g_ref[...] + b_ref[...]).astype(o_ref.dtype)


def _proj_kernel(x_ref, w_ref, o_ref):
    o_ref[0] = jnp.dot(x_ref[0].astype(jnp.bfloat16),
                       w_ref[...].astype(jnp.bfloat16),
                       preferred_element_type=jnp.float32).astype(o_ref.dtype)


# ----------------------------------------------------------------------------
# pallas_call wrappers (grid over batch, "parallel" for megacore sharding)
# ----------------------------------------------------------------------------
_PARALLEL = pltpu.CompilerParams(dimension_semantics=("parallel",))


def self_attn_sublayer(x, w, ln, *, heads, causal, mask_val, eps=1e-5):
    B, S, D = x.shape
    d_attn = w["wo"].shape[0]
    scale = 1.0 / float(np.sqrt(d_attn // heads))
    kernel = functools.partial(_self_attn_ln_kernel, heads=heads, d_attn=d_attn,
                               scale=scale, causal=causal, mask_val=mask_val, eps=eps)
    return pl.pallas_call(
        kernel,
        out_shape=jax.ShapeDtypeStruct((B, S, D), x.dtype),
        grid=(B,),
        in_specs=[
            pl.BlockSpec((1, S, D), lambda b: (b, 0, 0)),
            pl.BlockSpec((D, 3 * d_attn), lambda b: (0, 0)),
            pl.BlockSpec((d_attn, D), lambda b: (0, 0)),
            pl.BlockSpec((1, D), lambda b: (0, 0)),
            pl.BlockSpec((1, D), lambda b: (0, 0)),
        ],
        out_specs=pl.BlockSpec((1, S, D), lambda b: (b, 0, 0)),
        compiler_params=_PARALLEL,
    )(x, w["wqkv"], w["wo"], ln["g"].reshape(1, D), ln["b"].reshape(1, D))


def cross_attn_sublayer(x_q, x_kv, w, ln, *, heads, mask_val, eps=1e-5):
    B, Sq, D = x_q.shape
    Sk = x_kv.shape[1]
    d_attn = w["wo"].shape[0]
    scale = 1.0 / float(np.sqrt(d_attn // heads))
    kernel = functools.partial(_cross_attn_ln_kernel, heads=heads, d_attn=d_attn,
                               scale=scale, mask_val=mask_val, eps=eps)
    return pl.pallas_call(
        kernel,
        out_shape=jax.ShapeDtypeStruct((B, Sq, D), x_q.dtype),
        grid=(B,),
        in_specs=[
            pl.BlockSpec((1, Sq, D), lambda b: (b, 0, 0)),
            pl.BlockSpec((1, Sk, D), lambda b: (b, 0, 0)),
            pl.BlockSpec((D, 3 * d_attn), lambda b: (0, 0)),
            pl.BlockSpec((d_attn, D), lambda b: (0, 0)),
            pl.BlockSpec((1, D), lambda b: (0, 0)),
            pl.BlockSpec((1, D), lambda b: (0, 0)),
        ],
        out_specs=pl.BlockSpec((1, Sq, D), lambda b: (b, 0, 0)),
        compiler_params=_PARALLEL,
    )(x_q, x_kv, w["wqkv"], w["wo"], ln["g"].reshape(1, D), ln["b"].reshape(1, D))


def ffn_sublayer(x, w, ln, *, eps=1e-5):
    B, S, D = x.shape
    d_ffnn = w["w1"].shape[1]
    kernel = functools.partial(_ffn_ln_kernel, eps=eps)
    return pl.pallas_call(
        kernel,
        out_shape=jax.ShapeDtypeStruct((B, S, D), x.dtype),
        grid=(B,),
        in_specs=[
            pl.BlockSpec((1, S, D), lambda b: (b, 0, 0)),
            pl.BlockSpec((D, d_ffnn), lambda b: (0, 0)),
            pl.BlockSpec((1, d_ffnn), lambda b: (0, 0)),
            pl.BlockSpec((d_ffnn, D), lambda b: (0, 0)),
            pl.BlockSpec((1, D), lambda b: (0, 0)),
            pl.BlockSpec((1, D), lambda b: (0, 0)),
            pl.BlockSpec((1, D), lambda b: (0, 0)),
        ],
        out_specs=pl.BlockSpec((1, S, D), lambda b: (b, 0, 0)),
        compiler_params=_PARALLEL,
    )(x, w["w1"], w["b1"].reshape(1, d_ffnn), w["w2"], w["b2"].reshape(1, D),
      ln["g"].reshape(1, D), ln["b"].reshape(1, D))


def final_projection(y, w):
    B, S, D = y.shape
    V = w.shape[1]
    return pl.pallas_call(
        _proj_kernel,
        out_shape=jax.ShapeDtypeStruct((B, S, V), y.dtype),
        grid=(B,),
        in_specs=[
            pl.BlockSpec((1, S, D), lambda b: (b, 0, 0)),
            pl.BlockSpec((D, V), lambda b: (0, 0)),
        ],
        out_specs=pl.BlockSpec((1, S, V), lambda b: (b, 0, 0)),
        compiler_params=_PARALLEL,
    )(y, w)


# ----------------------------------------------------------------------------
# Model config & deterministic parameter init
# ----------------------------------------------------------------------------
CFG = dict(
    src_vocab_sz=16, tgt_vocab_sz=16,
    enc_layers=2, dec_layers=2,
    seq_len=8, d_vocab=32, d_model=32,   # d_vocab == d_model -> proj_to is Identity
    d_attn=32, d_ffnn=64, attn_heads=4,
    attn_mask_val=-1.0e8,
)


def _xavier(key, shape):
    fan_in, fan_out = shape[0], shape[1]
    limit = np.sqrt(6.0 / (fan_in + fan_out))
    return jax.random.uniform(key, shape, jnp.float32, -limit, limit)


def init_params(key, cfg):
    d_model, d_attn, d_ffnn = cfg["d_model"], cfg["d_attn"], cfg["d_ffnn"]
    keys = iter(jax.random.split(key, 256))
    p = {}
    p["src_emb"] = jax.random.normal(next(keys), (cfg["src_vocab_sz"], cfg["d_vocab"])) * 0.02
    p["tgt_emb"] = jax.random.normal(next(keys), (cfg["tgt_vocab_sz"], cfg["d_vocab"])) * 0.02
    # proj_to / tgt_proj_to are Identity (d_vocab == d_model); proj_from is a real Linear.
    p["proj_from_w"] = _xavier(next(keys), (d_model, cfg["tgt_vocab_sz"]))

    def attn_block():
        wq = _xavier(next(keys), (d_model, d_attn))
        wk = _xavier(next(keys), (d_model, d_attn))
        wv = _xavier(next(keys), (d_model, d_attn))
        return dict(wqkv=jnp.concatenate([wq, wk, wv], axis=1),
                    wo=_xavier(next(keys), (d_attn, d_model)))

    def ffn_block():
        return dict(w1=_xavier(next(keys), (d_model, d_ffnn)),
                    b1=jnp.zeros((d_ffnn,), jnp.float32),
                    w2=_xavier(next(keys), (d_ffnn, d_model)),
                    b2=jnp.zeros((d_model,), jnp.float32))

    def ln_block():
        return dict(g=jnp.ones((d_model,), jnp.float32),
                    b=jnp.zeros((d_model,), jnp.float32))

    p["enc"] = []
    for _ in range(cfg["enc_layers"]):
        p["enc"].append(dict(attn=attn_block(), ln1=ln_block(),
                             ffn=ffn_block(), ln2=ln_block()))
    p["dec"] = []
    for _ in range(cfg["dec_layers"]):
        p["dec"].append(dict(self_attn=attn_block(), ln1=ln_block(),
                             cross_attn=attn_block(), ln2=ln_block(),
                             ffn=ffn_block(), ln3=ln_block()))
    return p


def sinusoidal_pe(seq_len, d_model):
    pos = np.arange(seq_len)[:, None].astype(np.float32)
    div = np.exp(np.arange(0, d_model, 2).astype(np.float32) * (-np.log(10000.0) / d_model))
    pe = np.zeros((seq_len, d_model), np.float32)
    pe[:, 0::2] = np.sin(pos * div)
    pe[:, 1::2] = np.cos(pos * div)
    return jnp.asarray(pe)


# ----------------------------------------------------------------------------
# Forward pass built on the fused Pallas sublayer kernels
# ----------------------------------------------------------------------------
def transformer_forward(params, x_ids, y_ids, cfg, pe):
    B, S = x_ids.shape
    heads = cfg["attn_heads"]
    mask_val = float(cfg["attn_mask_val"])

    # ----- encoder -----
    x = jnp.take(params["src_emb"], x_ids, axis=0) + pe[None, :S, :]
    # proj_to == Identity (d_vocab == d_model); dropout == identity in eval mode.
    for lp in params["enc"]:
        x = self_attn_sublayer(x, lp["attn"], lp["ln1"],
                               heads=heads, causal=False, mask_val=mask_val)
        x = ffn_sublayer(x, lp["ffn"], lp["ln2"])

    # ----- decoder -----
    y = jnp.take(params["tgt_emb"], y_ids, axis=0) + pe[None, :S, :]
    for lp in params["dec"]:
        y = self_attn_sublayer(y, lp["self_attn"], lp["ln1"],
                               heads=heads, causal=True, mask_val=mask_val)
        y = cross_attn_sublayer(y, x, lp["cross_attn"], lp["ln2"],
                                heads=heads, mask_val=mask_val)
        y = ffn_sublayer(y, lp["ffn"], lp["ln3"])

    # ----- output projection (no weight tying) -----
    logits = final_projection(y, params["proj_from_w"])
    return x, logits


# TODO(synk): dropout layers are treated as identity (eval mode); training-time
# stochastic dropout is not reproduced.

if __name__ == "__main__":
    key = jax.random.PRNGKey(0)
    pkey, xkey, ykey = jax.random.split(key, 3)
    params = init_params(pkey, CFG)
    pe = sinusoidal_pe(CFG["seq_len"], CFG["d_model"])   # built once, outside jit

    B, S = 2, CFG["seq_len"]
    x_ids = jax.random.randint(xkey, (B, S), 0, CFG["src_vocab_sz"], dtype=jnp.int32)
    y_ids = jax.random.randint(ykey, (B, S), 0, CFG["tgt_vocab_sz"], dtype=jnp.int32)

    fwd = jax.jit(functools.partial(transformer_forward, cfg=CFG, pe=pe))
    enc_out, logits = fwd(params, x_ids, y_ids)
    jax.block_until_ready((enc_out, logits))

    assert enc_out.shape == (B, S, CFG["d_model"])
    assert logits.shape == (B, S, CFG["tgt_vocab_sz"])
    assert bool(jnp.all(jnp.isfinite(enc_out))) and bool(jnp.all(jnp.isfinite(logits)))
    print("KERNEL_OK")
</pallas_src>

<mosaic_0001>
module attributes {stable_mosaic.version = 11 : i64} {
  func.func @_self_attn_ln_kernel(%arg0: i32, %arg1: memref<1x8x32xf32, #tpu.memory_space<vmem>>, %arg2: memref<32x96xf32, #tpu.memory_space<vmem>>, %arg3: memref<32x32xf32, #tpu.memory_space<vmem>>, %arg4: memref<1x32xf32, #tpu.memory_space<vmem>>, %arg5: memref<1x32xf32, #tpu.memory_space<vmem>>, %arg6: memref<1x8x32xf32, #tpu.memory_space<vmem>>) attributes {dimension_semantics = [#tpu.dimension_semantics<parallel>], iteration_bounds = array<i64: 2>, scalar_prefetch = 0 : i64, scratch_operands = 0 : i64, tpu.core_type = #tpu.core_type<tc>, window_params = [{transform_indices = @transform_0, window_bounds = array<i64: 1, 8, 32>}, {pipeline_mode = #tpu.pipeline_mode<synchronous>, transform_indices = @transform_1, window_bounds = array<i64: 32, 96>}, {pipeline_mode = #tpu.pipeline_mode<synchronous>, transform_indices = @transform_2, window_bounds = array<i64: 32, 32>}, {pipeline_mode = #tpu.pipeline_mode<synchronous>, transform_indices = @transform_3, window_bounds = array<i64: 1, 32>}, {pipeline_mode = #tpu.pipeline_mode<synchronous>, transform_indices = @transform_4, window_bounds = array<i64: 1, 32>}, {transform_indices = @transform_5, window_bounds = array<i64: 1, 8, 32>}]} {
    %c0 = arith.constant 0 : index
    %c0_0 = arith.constant 0 : index
    %c0_1 = arith.constant 0 : index
    %0 = vector.load %arg1[%c0, %c0_0, %c0_1] : memref<1x8x32xf32, #tpu.memory_space<vmem>>, vector<1x8x32xf32>
    %1 = vector.shape_cast %0 : vector<1x8x32xf32> to vector<8x32xf32>
    %2 = arith.truncf %1 : vector<8x32xf32> to vector<8x32xbf16>
    %c0_2 = arith.constant 0 : index
    %c0_3 = arith.constant 0 : index
    %3 = vector.load %arg2[%c0_2, %c0_3] : memref<32x96xf32, #tpu.memory_space<vmem>>, vector<32x96xf32>
    %4 = arith.truncf %3 : vector<32x96xf32> to vector<32x96xbf16>
    %cst = arith.constant dense<0.000000e+00> : vector<8x96xf32>
    %5 = tpu.matmul %2, %4, %cst {dimension_numbers = #tpu.dot_dimension_numbers<[1], [0], [0], [1], [0, 0, 1, 1], [], []>} : vector<8x32xbf16>, vector<32x96xbf16>, vector<8x96xf32> -> vector<8x96xf32>
    %6 = vector.extract_strided_slice %5 {offsets = [0, 0], sizes = [8, 32], strides = [1, 1]} : vector<8x96xf32> to vector<8x32xf32>
    %7 = vector.extract_strided_slice %5 {offsets = [0, 32], sizes = [8, 32], strides = [1, 1]} : vector<8x96xf32> to vector<8x32xf32>
    %8 = vector.extract_strided_slice %5 {offsets = [0, 64], sizes = [8, 32], strides = [1, 1]} : vector<8x96xf32> to vector<8x32xf32>
    %9 = tpu.iota {dimensions = array<i32: 0>} : vector<8x8xi32>
    %10 = tpu.iota {dimensions = array<i32: 1>} : vector<8x8xi32>
    %11 = arith.cmpi sle, %10, %9 : vector<8x8xi32>
    %cst_4 = arith.constant 0.000000e+00 : f32
    %cst_5 = arith.constant -1.000000e+08 : f32
    %12 = vector.broadcast %cst_4 : f32 to vector<8x8xf32>
    %13 = vector.broadcast %cst_5 : f32 to vector<8x8xf32>
    %14 = arith.select %11, %12, %13 : vector<8x8xi1>, vector<8x8xf32>
    %c0_6 = arith.constant 0 : index
    %c0_7 = arith.constant 0 : index
    %15 = vector.load %arg3[%c0_6, %c0_7] : memref<32x32xf32, #tpu.memory_space<vmem>>, vector<32x32xf32>
    %cst_8 = arith.constant 0.000000e+00 : f32
    %16 = vector.broadcast %cst_8 : f32 to vector<8x32xf32>
    %17 = vector.extract_strided_slice %6 {offsets = [0, 0], sizes = [8, 8], strides = [1, 1]} : vector<8x32xf32> to vector<8x8xf32>
    %18 = arith.truncf %17 : vector<8x8xf32> to vector<8x8xbf16>
    %19 = vector.extract_strided_slice %7 {offsets = [0, 0], sizes = [8, 8], strides = [1, 1]} : vector<8x32xf32> to vector<8x8xf32>
    %20 = arith.truncf %19 : vector<8x8xf32> to vector<8x8xbf16>
    %21 = vector.extract_strided_slice %8 {offsets = [0, 0], sizes = [8, 8], strides = [1, 1]} : vector<8x32xf32> to vector<8x8xf32>
    %22 = arith.truncf %21 : vector<8x8xf32> to vector<8x8xbf16>
    %cst_9 = arith.constant dense<0.000000e+00> : vector<8x8xf32>
    %23 = tpu.matmul %18, %20, %cst_9 {dimension_numbers = #tpu.dot_dimension_numbers<[1], [1], [0], [0], [0, 0, 1, 0], [], []>} : vector<8x8xbf16>, vector<8x8xbf16>, vector<8x8xf32> -> vector<8x8xf32>
    %cst_10 = arith.constant 0.353553385 : f32
    %24 = vector.broadcast %cst_10 : f32 to vector<8x8xf32>
    %25 = arith.mulf %23, %24 : vector<8x8xf32>
    %26 = arith.addf %25, %14 : vector<8x8xf32>
    %cst_11 = arith.constant dense<0xFF800000> : vector<8xf32>
    %27 = vector.multi_reduction <maximumf>, %26, %cst_11 [1] : vector<8x8xf32> to vector<8xf32>
    %28 = vector.shape_cast %27 : vector<8xf32> to vector<8x1xf32>
    %29 = vector.broadcast %28 : vector<8x1xf32> to vector<8x8xf32>
    %30 = arith.subf %26, %29 : vector<8x8xf32>
    %31 = math.exp %30 : vector<8x8xf32>
    %cst_12 = arith.constant dense<0.000000e+00> : vector<8xf32>
    %32 = vector.multi_reduction <add>, %31, %cst_12 [1] : vector<8x8xf32> to vector<8xf32>
    %33 = vector.shape_cast %32 : vector<8xf32> to vector<8x1xf32>
    %34 = tpu.reciprocal %33 {approx = true} : vector<8x1xf32> -> vector<8x1xf32>
    %35 = vector.broadcast %34 : vector<8x1xf32> to vector<8x8xf32>
    %36 = arith.mulf %31, %35 : vector<8x8xf32>
    %37 = arith.truncf %36 : vector<8x8xf32> to vector<8x8xbf16>
    %cst_13 = arith.constant dense<0.000000e+00> : vector<8x8xf32>
    %38 = tpu.matmul %37, %22, %cst_13 {dimension_numbers = #tpu.dot_dimension_numbers<[1], [0], [0], [1], [0, 0, 1, 1], [], []>} : vector<8x8xbf16>, vector<8x8xbf16>, vector<8x8xf32> -> vector<8x8xf32>
    %39 = vector.extract_strided_slice %15 {offsets = [0, 0], sizes = [8, 32], strides = [1, 1]} : vector<32x32xf32> to vector<8x32xf32>
    %40 = arith.truncf %39 : vector<8x32xf32> to vector<8x32xbf16>
    %41 = arith.truncf %38 : vector<8x8xf32> to vector<8x8xbf16>
    %cst_14 = arith.constant dense<0.000000e+00> : vector<8x32xf32>
    %42 = tpu.matmul %41, %40, %cst_14 {dimension_numbers = #tpu.dot_dimension_numbers<[1], [0], [0], [1], [0, 0, 1, 1], [], []>} : vector<8x8xbf16>, vector<8x32xbf16>, vector<8x32xf32> -> vector<8x32xf32>
    %43 = arith.addf %16, %42 : vector<8x32xf32>
    %44 = vector.extract_strided_slice %6 {offsets = [0, 8], sizes = [8, 8], strides = [1, 1]} : vector<8x32xf32> to vector<8x8xf32>
    %45 = arith.truncf %44 : vector<8x8xf32> to vector<8x8xbf16>
    %46 = vector.extract_strided_slice %7 {offsets = [0, 8], sizes = [8, 8], strides = [1, 1]} : vector<8x32xf32> to vector<8x8xf32>
    %47 = arith.truncf %46 : vector<8x8xf32> to vector<8x8xbf16>
    %48 = vector.extract_strided_slice %8 {offsets = [0, 8], sizes = [8, 8], strides = [1, 1]} : vector<8x32xf32> to vector<8x8xf32>
    %49 = arith.truncf %48 : vector<8x8xf32> to vector<8x8xbf16>
    %cst_15 = arith.constant dense<0.000000e+00> : vector<8x8xf32>
    %50 = tpu.matmul %45, %47, %cst_15 {dimension_numbers = #tpu.dot_dimension_numbers<[1], [1], [0], [0], [0, 0, 1, 0], [], []>} : vector<8x8xbf16>, vector<8x8xbf16>, vector<8x8xf32> -> vector<8x8xf32>
    %cst_16 = arith.constant 0.353553385 : f32
    %51 = vector.broadcast %cst_16 : f32 to vector<8x8xf32>
    %52 = arith.mulf %50, %51 : vector<8x8xf32>
    %53 = arith.addf %52, %14 : vector<8x8xf32>
    %cst_17 = arith.constant dense<0xFF800000> : vector<8xf32>
    %54 = vector.multi_reduction <maximumf>, %53, %cst_17 [1] : vector<8x8xf32> to vector<8xf32>
    %55 = vector.shape_cast %54 : vector<8xf32> to vector<8x1xf32>
    %56 = vector.broadcast %55 : vector<8x1xf32> to vector<8x8xf32>
    %57 = arith.subf %53, %56 : vector<8x8xf32>
    %58 = math.exp %57 : vector<8x8xf32>
    %cst_18 = arith.constant dense<0.000000e+00> : vector<8xf32>
    %59 = vector.multi_reduction <add>, %58, %cst_18 [1] : vector<8x8xf32> to vector<8xf32>
    %60 = vector.shape_cast %59 : vector<8xf32> to vector<8x1xf32>
    %61 = tpu.reciprocal %60 {approx = true} : vector<8x1xf32> -> vector<8x1xf32>
    %62 = vector.broadcast %61 : vector<8x1xf32> to vector<8x8xf32>
    %63 = arith.mulf %58, %62 : vector<8x8xf32>
    %64 = arith.truncf %63 : vector<8x8xf32> to vector<8x8xbf16>
    %cst_19 = arith.constant dense<0.000000e+00> : vector<8x8xf32>
    %65 = tpu.matmul %64, %49, %cst_19 {dimension_numbers = #tpu.dot_dimension_numbers<[1], [0], [0], [1], [0, 0, 1, 1], [], []>} : vector<8x8xbf16>, vector<8x8xbf16>, vector<8x8xf32> -> vector<8x8xf32>
    %66 = vector.extract_strided_slice %15 {offsets = [8, 0], sizes = [8, 32], strides = [1, 1]} : vector<32x32xf32> to vector<8x32xf32>
    %67 = arith.truncf %66 : vector<8x32xf32> to vector<8x32xbf16>
    %68 = arith.truncf %65 : vector<8x8xf32> to vector<8x8xbf16>
    %cst_20 = arith.constant dense<0.000000e+00> : vector<8x32xf32>
    %69 = tpu.matmul %68, %67, %cst_20 {dimension_numbers = #tpu.dot_dimension_numbers<[1], [0], [0], [1], [0, 0, 1, 1], [], []>} : vector<8x8xbf16>, vector<8x32xbf16>, vector<8x32xf32> -> vector<8x32xf32>
    %70 = arith.addf %43, %69 : vector<8x32xf32>
    %71 = vector.extract_strided_slice %6 {offsets = [0, 16], sizes = [8, 8], strides = [1, 1]} : vector<8x32xf32> to vector<8x8xf32>
    %72 = arith.truncf %71 : vector<8x8xf32> to vector<8x8xbf16>
    %73 = vector.extract_strided_slice %7 {offsets = [0, 16], sizes = [8, 8], strides = [1, 1]} : vector<8x32xf32> to vector<8x8xf32>
    %74 = arith.truncf %73 : vector<8x8xf32> to vector<8x8xbf16>
    %75 = vector.extract_strided_slice %8 {offsets = [0, 16], sizes = [8, 8], strides = [1, 1]} : vector<8x32xf32> to vector<8x8xf32>
    %76 = arith.truncf %75 : vector<8x8xf32> to vector<8x8xbf16>
    %cst_21 = arith.constant dense<0.000000e+00> : vector<8x8xf32>
    %77 = tpu.matmul %72, %74, %cst_21 {dimension_numbers = #tpu.dot_dimension_numbers<[1], [1], [0], [0], [0, 0, 1, 0], [], []>} : vector<8x8xbf16>, vector<8x8xbf16>, vector<8x8xf32> -> vector<8x8xf32>
    %cst_22 = arith.constant 0.353553385 : f32
    %78 = vector.broadcast %cst_22 : f32 to vector<8x8xf32>
    %79 = arith.mulf %77, %78 : vector<8x8xf32>
    %80 = arith.addf %79, %14 : vector<8x8xf32>
    %cst_23 = arith.constant dense<0xFF800000> : vector<8xf32>
    %81 = vector.multi_reduction <maximumf>, %80, %cst_23 [1] : vector<8x8xf32> to vector<8xf32>
    %82 = vector.shape_cast %81 : vector<8xf32> to vector<8x1xf32>
    %83 = vector.broadcast %82 : vector<8x1xf32> to vector<8x8xf32>
    %84 = arith.subf %80, %83 : vector<8x8xf32>
    %85 = math.exp %84 : vector<8x8xf32>
    %cst_24 = arith.constant dense<0.000000e+00> : vector<8xf32>
    %86 = vector.multi_reduction <add>, %85, %cst_24 [1] : vector<8x8xf32> to vector<8xf32>
    %87 = vector.shape_cast %86 : vector<8xf32> to vector<8x1xf32>
    %88 = tpu.reciprocal %87 {approx = true} : vector<8x1xf32> -> vector<8x1xf32>
    %89 = vector.broadcast %88 : vector<8x1xf32> to vector<8x8xf32>
    %90 = arith.mulf %85, %89 : vector<8x8xf32>
    %91 = arith.truncf %90 : vector<8x8xf32> to vector<8x8xbf16>
    %cst_25 = arith.constant dense<0.000000e+00> : vector<8x8xf32>
    %92 = tpu.matmul %91, %76, %cst_25 {dimension_numbers = #tpu.dot_dimension_numbers<[1], [0], [0], [1], [0, 0, 1, 1], [], []>} : vector<8x8xbf16>, vector<8x8xbf16>, vector<8x8xf32> -> vector<8x8xf32>
    %93 = vector.extract_strided_slice %15 {offsets = [16, 0], sizes = [8, 32], strides = [1, 1]} : vector<32x32xf32> to vector<8x32xf32>
    %94 = arith.truncf %93 : vector<8x32xf32> to vector<8x32xbf16>
    %95 = arith.truncf %92 : vector<8x8xf32> to vector<8x8xbf16>
    %cst_26 = arith.constant dense<0.000000e+00> : vector<8x32xf32>
    %96 = tpu.matmul %95, %94, %cst_26 {dimension_numbers = #tpu.dot_dimension_numbers<[1], [0], [0], [1], [0, 0, 1, 1], [], []>} : vector<8x8xbf16>, vector<8x32xbf16>, vector<8x32xf32> -> vector<8x32xf32>
    %97 = arith.addf %70, %96 : vector<8x32xf32>
    %98 = vector.extract_strided_slice %6 {offsets = [0, 24], sizes = [8, 8], strides = [1, 1]} : vector<8x32xf32> to vector<8x8xf32>
    %99 = arith.truncf %98 : vector<8x8xf32> to vector<8x8xbf16>
    %100 = vector.extract_strided_slice %7 {offsets = [0, 24], sizes = [8, 8], strides = [1, 1]} : vector<8x32xf32> to vector<8x8xf32>
    %101 = arith.truncf %100 : vector<8x8xf32> to vector<8x8xbf16>
    %102 = vector.extract_strided_slice %8 {offsets = [0, 24], sizes = [8, 8], strides = [1, 1]} : vector<8x32xf32> to vector<8x8xf32>
    %103 = arith.truncf %102 : vector<8x8xf32> to vector<8x8xbf16>
    %cst_27 = arith.constant dense<0.000000e+00> : vector<8x8xf32>
    %104 = tpu.matmul %99, %101, %cst_27 {dimension_numbers = #tpu.dot_dimension_numbers<[1], [1], [0], [0], [0, 0, 1, 0], [], []>} : vector<8x8xbf16>, vector<8x8xbf16>, vector<8x8xf32> -> vector<8x8xf32>
    %cst_28 = arith.constant 0.353553385 : f32
    %105 = vector.broadcast %cst_28 : f32 to vector<8x8xf32>
    %106 = arith.mulf %104, %105 : vector<8x8xf32>
    %107 = arith.addf %106, %14 : vector<8x8xf32>
    %cst_29 = arith.constant dense<0xFF800000> : vector<8xf32>
    %108 = vector.multi_reduction <maximumf>, %107, %cst_29 [1] : vector<8x8xf32> to vector<8xf32>
    %109 = vector.shape_cast %108 : vector<8xf32> to vector<8x1xf32>
    %110 = vector.broadcast %109 : vector<8x1xf32> to vector<8x8xf32>
    %111 = arith.subf %107, %110 : vector<8x8xf32>
    %112 = math.exp %111 : vector<8x8xf32>
    %cst_30 = arith.constant dense<0.000000e+00> : vector<8xf32>
    %113 = vector.multi_reduction <add>, %112, %cst_30 [1] : vector<8x8xf32> to vector<8xf32>
    %114 = vector.shape_cast %113 : vector<8xf32> to vector<8x1xf32>
    %115 = tpu.reciprocal %114 {approx = true} : vector<8x1xf32> -> vector<8x1xf32>
    %116 = vector.broadcast %115 : vector<8x1xf32> to vector<8x8xf32>
    %117 = arith.mulf %112, %116 : vector<8x8xf32>
    %118 = arith.truncf %117 : vector<8x8xf32> to vector<8x8xbf16>
    %cst_31 = arith.constant dense<0.000000e+00> : vector<8x8xf32>
    %119 = tpu.matmul %118, %103, %cst_31 {dimension_numbers = #tpu.dot_dimension_numbers<[1], [0], [0], [1], [0, 0, 1, 1], [], []>} : vector<8x8xbf16>, vector<8x8xbf16>, vector<8x8xf32> -> vector<8x8xf32>
    %120 = vector.extract_strided_slice %15 {offsets = [24, 0], sizes = [8, 32], strides = [1, 1]} : vector<32x32xf32> to vector<8x32xf32>
    %121 = arith.truncf %120 : vector<8x32xf32> to vector<8x32xbf16>
    %122 = arith.truncf %119 : vector<8x8xf32> to vector<8x8xbf16>
    %cst_32 = arith.constant dense<0.000000e+00> : vector<8x32xf32>
    %123 = tpu.matmul %122, %121, %cst_32 {dimension_numbers = #tpu.dot_dimension_numbers<[1], [0], [0], [1], [0, 0, 1, 1], [], []>} : vector<8x8xbf16>, vector<8x32xbf16>, vector<8x32xf32> -> vector<8x32xf32>
    %124 = arith.addf %97, %123 : vector<8x32xf32>
    %125 = arith.addf %1, %124 : vector<8x32xf32>
    %cst_33 = arith.constant dense<0.000000e+00> : vector<8xf32>
    %126 = vector.multi_reduction <add>, %125, %cst_33 [1] : vector<8x32xf32> to vector<8xf32>
    %127 = vector.shape_cast %126 : vector<8xf32> to vector<8x1xf32>
    %cst_34 = arith.constant 3.200000e+01 : f32
    %128 = vector.broadcast %cst_34 : f32 to vector<8x1xf32>
    %129 = arith.divf %127, %128 : vector<8x1xf32>
    %130 = vector.broadcast %129 : vector<8x1xf32> to vector<8x32xf32>
    %131 = arith.subf %125, %130 : vector<8x32xf32>
    %132 = arith.mulf %131, %131 : vector<8x32xf32>
    %cst_35 = arith.constant dense<0.000000e+00> : vector<8xf32>
    %133 = vector.multi_reduction <add>, %132, %cst_35 [1] : vector<8x32xf32> to vector<8xf32>
    %134 = vector.shape_cast %133 : vector<8xf32> to vector<8x1xf32>
    %cst_36 = arith.constant 3.200000e+01 : f32
    %135 = vector.broadcast %cst_36 : f32 to vector<8x1xf32>
    %136 = arith.divf %134, %135 : vector<8x1xf32>
    %137 = vector.broadcast %129 : vector<8x1xf32> to vector<8x32xf32>
    %138 = arith.subf %125, %137 : vector<8x32xf32>
    %cst_37 = arith.constant 9.99999974E-6 : f32
    %139 = vector.broadcast %cst_37 : f32 to vector<8x1xf32>
    %140 = arith.addf %136, %139 : vector<8x1xf32>
    %141 = math.rsqrt %140 : vector<8x1xf32>
    %142 = vector.broadcast %141 : vector<8x1xf32> to vector<8x32xf32>
    %143 = arith.mulf %138, %142 : vector<8x32xf32>
    %c0_38 = arith.constant 0 : index
    %c0_39 = arith.constant 0 : index
    %144 = vector.load %arg4[%c0_38, %c0_39] : memref<1x32xf32, #tpu.memory_space<vmem>>, vector<1x32xf32>
    %145 = vector.broadcast %144 : vector<1x32xf32> to vector<8x32xf32>
    %146 = arith.mulf %143, %145 : vector<8x32xf32>
    %c0_40 = arith.constant 0 : index
    %c0_41 = arith.constant 0 : index
    %147 = vector.load %arg5[%c0_40, %c0_41] : memref<1x32xf32, #tpu.memory_space<vmem>>, vector<1x32xf32>
    %148 = vector.broadcast %147 : vector<1x32xf32> to vector<8x32xf32>
    %149 = arith.addf %146, %148 : vector<8x32xf32>
    %c0_42 = arith.constant 0 : index
    %c0_43 = arith.constant 0 : index
    %c0_44 = arith.constant 0 : index
    %150 = vector.load %arg6[%c0_42, %c0_43, %c0_44] : memref<1x8x32xf32, #tpu.memory_space<vmem>>, vector<1x8x32xf32>
    %151 = vector.shape_cast %150 : vector<1x8x32xf32> to vector<8x32xf32>
    %152 = vector.shape_cast %149 : vector<8x32xf32> to vector<1x8x32xf32>
    tpu.vector_store %arg6[%c0_42, %c0_43, %c0_44], %152 {strides = array<i32>} : memref<1x8x32xf32, #tpu.memory_space<vmem>>, vector<1x8x32xf32>,
    return
  }
  func.func @transform_0(%arg0: i32) -> (i32, i32, i32) {
    %c0_i32 = arith.constant 0 : i32
    %c0_i32_0 = arith.constant 0 : i32
    %c0_i32_1 = arith.constant 0 : i32
    return %arg0, %c0_i32, %c0_i32_0 : i32, i32, i32
  }
  func.func @transform_1(%arg0: i32) -> (i32, i32) {
    %c0_i32 = arith.constant 0 : i32
    %c0_i32_0 = arith.constant 0 : i32
    %c0_i32_1 = arith.constant 0 : i32
    return %c0_i32, %c0_i32_0 : i32, i32
  }
  func.func @transform_2(%arg0: i32) -> (i32, i32) {
    %c0_i32 = arith.constant 0 : i32
    %c0_i32_0 = arith.constant 0 : i32
    %c0_i32_1 = arith.constant 0 : i32
    return %c0_i32, %c0_i32_0 : i32, i32
  }
  func.func @transform_3(%arg0: i32) -> (i32, i32) {
    %c0_i32 = arith.constant 0 : i32
    %c0_i32_0 = arith.constant 0 : i32
    %c0_i32_1 = arith.constant 0 : i32
    return %c0_i32, %c0_i32_0 : i32, i32
  }
  func.func @transform_4(%arg0: i32) -> (i32, i32) {
    %c0_i32 = arith.constant 0 : i32
    %c0_i32_0 = arith.constant 0 : i32
    %c0_i32_1 = arith.constant 0 : i32
    return %c0_i32, %c0_i32_0 : i32, i32
  }
  func.func @transform_5(%arg0: i32) -> (i32, i32, i32) {
    %c0_i32 = arith.constant 0 : i32
    %c0_i32_0 = arith.constant 0 : i32
    %c0_i32_1 = arith.constant 0 : i32
    return %arg0, %c0_i32, %c0_i32_0 : i32, i32, i32
  }
}

module attributes {stable_mosaic.version = 11 : i64} {
  func.func @_ffn_ln_kernel(%arg0: i32, %arg1: memref<1x8x32xf32, #tpu.memory_space<vmem>>, %arg2: memref<32x64xf32, #tpu.memory_space<vmem>>, %arg3: memref<1x64xf32, #tpu.memory_space<vmem>>, %arg4: memref<64x32xf32, #tpu.memory_space<vmem>>, %arg5: memref<1x32xf32, #tpu.memory_space<vmem>>, %arg6: memref<1x32xf32, #tpu.memory_space<vmem>>, %arg7: memref<1x32xf32, #tpu.memory_space<vmem>>, %arg8: memref<1x8x32xf32, #tpu.memory_space<vmem>>) attributes {dimension_semantics = [#tpu.dimension_semantics<parallel>], iteration_bounds = array<i64: 2>, scalar_prefetch = 0 : i64, scratch_operands = 0 : i64, tpu.core_type = #tpu.core_type<tc>, window_params = [{transform_indices = @transform_0, window_bounds = array<i64: 1, 8, 32>}, {pipeline_mode = #tpu.pipeline_mode<synchronous>, transform_indices = @transform_1, window_bounds = array<i64: 32, 64>}, {pipeline_mode = #tpu.pipeline_mode<synchronous>, transform_indices = @transform_2, window_bounds = array<i64: 1, 64>}, {pipeline_mode = #tpu.pipeline_mode<synchronous>, transform_indices = @transform_3, window_bounds = array<i64: 64, 32>}, {pipeline_mode = #tpu.pipeline_mode<synchronous>, transform_indices = @transform_4, window_bounds = array<i64: 1, 32>}, {pipeline_mode = #tpu.pipeline_mode<synchronous>, transform_indices = @transform_5, window_bounds = array<i64: 1, 32>}, {pipeline_mode = #tpu.pipeline_mode<synchronous>, transform_indices = @transform_6, window_bounds = array<i64: 1, 32>}, {transform_indices = @transform_7, window_bounds = array<i64: 1, 8, 32>}]} {
    %c0 = arith.constant 0 : index
    %c0_0 = arith.constant 0 : index
    %c0_1 = arith.constant 0 : index
    %0 = vector.load %arg1[%c0, %c0_0, %c0_1] : memref<1x8x32xf32, #tpu.memory_space<vmem>>, vector<1x8x32xf32>
    %1 = vector.shape_cast %0 : vector<1x8x32xf32> to vector<8x32xf32>
    %2 = arith.truncf %1 : vector<8x32xf32> to vector<8x32xbf16>
    %c0_2 = arith.constant 0 : index
    %c0_3 = arith.constant 0 : index
    %3 = vector.load %arg2[%c0_2, %c0_3] : memref<32x64xf32, #tpu.memory_space<vmem>>, vector<32x64xf32>
    %4 = arith.truncf %3 : vector<32x64xf32> to vector<32x64xbf16>
    %cst = arith.constant dense<0.000000e+00> : vector<8x64xf32>
    %5 = tpu.matmul %2, %4, %cst {dimension_numbers = #tpu.dot_dimension_numbers<[1], [0], [0], [1], [0, 0, 1, 1], [], []>} : vector<8x32xbf16>, vector<32x64xbf16>, vector<8x64xf32> -> vector<8x64xf32>
    %c0_4 = arith.constant 0 : index
    %c0_5 = arith.constant 0 : index
    %6 = vector.load %arg3[%c0_4, %c0_5] : memref<1x64xf32, #tpu.memory_space<vmem>>, vector<1x64xf32>
    %7 = vector.broadcast %6 : vector<1x64xf32> to vector<8x64xf32>
    %8 = arith.addf %5, %7 : vector<8x64xf32>
    %cst_6 = arith.constant 0.000000e+00 : f32
    %9 = vector.broadcast %cst_6 : f32 to vector<8x64xf32>
    %10 = arith.maximumf %8, %9 : vector<8x64xf32>
    %11 = arith.truncf %10 : vector<8x64xf32> to vector<8x64xbf16>
    %c0_7 = arith.constant 0 : index
    %c0_8 = arith.constant 0 : index
    %12 = vector.load %arg4[%c0_7, %c0_8] : memref<64x32xf32, #tpu.memory_space<vmem>>, vector<64x32xf32>
    %13 = arith.truncf %12 : vector<64x32xf32> to vector<64x32xbf16>
    %cst_9 = arith.constant dense<0.000000e+00> : vector<8x32xf32>
    %14 = tpu.matmul %11, %13, %cst_9 {dimension_numbers = #tpu.dot_dimension_numbers<[1], [0], [0], [1], [0, 0, 1, 1], [], []>} : vector<8x64xbf16>, vector<64x32xbf16>, vector<8x32xf32> -> vector<8x32xf32>
    %c0_10 = arith.constant 0 : index
    %c0_11 = arith.constant 0 : index
    %15 = vector.load %arg5[%c0_10, %c0_11] : memref<1x32xf32, #tpu.memory_space<vmem>>, vector<1x32xf32>
    %16 = vector.broadcast %15 : vector<1x32xf32> to vector<8x32xf32>
    %17 = arith.addf %14, %16 : vector<8x32xf32>
    %18 = arith.addf %1, %17 : vector<8x32xf32>
    %cst_12 = arith.constant dense<0.000000e+00> : vector<8xf32>
    %19 = vector.multi_reduction <add>, %18, %cst_12 [1] : vector<8x32xf32> to vector<8xf32>
    %20 = vector.shape_cast %19 : vector<8xf32> to vector<8x1xf32>
    %cst_13 = arith.constant 3.200000e+01 : f32
    %21 = vector.broadcast %cst_13 : f32 to vector<8x1xf32>
    %22 = arith.divf %20, %21 : vector<8x1xf32>
    %23 = vector.broadcast %22 : vector<8x1xf32> to vector<8x32xf32>
    %24 = arith.subf %18, %23 : vector<8x32xf32>
    %25 = arith.mulf %24, %24 : vector<8x32xf32>
    %cst_14 = arith.constant dense<0.000000e+00> : vector<8xf32>
    %26 = vector.multi_reduction <add>, %25, %cst_14 [1] : vector<8x32xf32> to vector<8xf32>
    %27 = vector.shape_cast %26 : vector<8xf32> to vector<8x1xf32>
    %cst_15 = arith.constant 3.200000e+01 : f32
    %28 = vector.broadcast %cst_15 : f32 to vector<8x1xf32>
    %29 = arith.divf %27, %28 : vector<8x1xf32>
    %30 = vector.broadcast %22 : vector<8x1xf32> to vector<8x32xf32>
    %31 = arith.subf %18, %30 : vector<8x32xf32>
    %cst_16 = arith.constant 9.99999974E-6 : f32
    %32 = vector.broadcast %cst_16 : f32 to vector<8x1xf32>
    %33 = arith.addf %29, %32 : vector<8x1xf32>
    %34 = math.rsqrt %33 : vector<8x1xf32>
    %35 = vector.broadcast %34 : vector<8x1xf32> to vector<8x32xf32>
    %36 = arith.mulf %31, %35 : vector<8x32xf32>
    %c0_17 = arith.constant 0 : index
    %c0_18 = arith.constant 0 : index
    %37 = vector.load %arg6[%c0_17, %c0_18] : memref<1x32xf32, #tpu.memory_space<vmem>>, vector<1x32xf32>
    %38 = vector.broadcast %37 : vector<1x32xf32> to vector<8x32xf32>
    %39 = arith.mulf %36, %38 : vector<8x32xf32>
    %c0_19 = arith.constant 0 : index
    %c0_20 = arith.constant 0 : index
    %40 = vector.load %arg7[%c0_19, %c0_20] : memref<1x32xf32, #tpu.memory_space<vmem>>, vector<1x32xf32>
    %41 = vector.broadcast %40 : vector<1x32xf32> to vector<8x32xf32>
    %42 = arith.addf %39, %41 : vector<8x32xf32>
    %c0_21 = arith.constant 0 : index
    %c0_22 = arith.constant 0 : index
    %c0_23 = arith.constant 0 : index
    %43 = vector.load %arg8[%c0_21, %c0_22, %c0_23] : memref<1x8x32xf32, #tpu.memory_space<vmem>>, vector<1x8x32xf32>
    %44 = vector.shape_cast %43 : vector<1x8x32xf32> to vector<8x32xf32>
    %45 = vector.shape_cast %42 : vector<8x32xf32> to vector<1x8x32xf32>
    tpu.vector_store %arg8[%c0_21, %c0_22, %c0_23], %45 {strides = array<i32>} : memref<1x8x32xf32, #tpu.memory_space<vmem>>, vector<1x8x32xf32>,
    return
  }
  func.func @transform_0(%arg0: i32) -> (i32, i32, i32) {
    %c0_i32 = arith.constant 0 : i32
    %c0_i32_0 = arith.constant 0 : i32
    %c0_i32_1 = arith.constant 0 : i32
    return %arg0, %c0_i32, %c0_i32_0 : i32, i32, i32
  }
  func.func @transform_1(%arg0: i32) -> (i32, i32) {
    %c0_i32 = arith.constant 0 : i32
    %c0_i32_0 = arith.constant 0 : i32
    %c0_i32_1 = arith.constant 0 : i32
    return %c0_i32, %c0_i32_0 : i32, i32
  }
  func.func @transform_2(%arg0: i32) -> (i32, i32) {
    %c0_i32 = arith.constant 0 : i32
    %c0_i32_0 = arith.constant 0 : i32
    %c0_i32_1 = arith.constant 0 : i32
    return %c0_i32, %c0_i32_0 : i32, i32
  }
  func.func @transform_3(%arg0: i32) -> (i32, i32) {
    %c0_i32 = arith.constant 0 : i32
    %c0_i32_0 = arith.constant 0 : i32
    %c0_i32_1 = arith.constant 0 : i32
    return %c0_i32, %c0_i32_0 : i32, i32
  }
  func.func @transform_4(%arg0: i32) -> (i32, i32) {
    %c0_i32 = arith.constant 0 : i32
    %c0_i32_0 = arith.constant 0 : i32
    %c0_i32_1 = arith.constant 0 : i32
    return %c0_i32, %c0_i32_0 : i32, i32
  }
  func.func @transform_5(%arg0: i32) -> (i32, i32) {
    %c0_i32 = arith.constant 0 : i32
    %c0_i32_0 = arith.constant 0 : i32
    %c0_i32_1 = arith.constant 0 : i32
    return %c0_i32, %c0_i32_0 : i32, i32
  }
  func.func @transform_6(%arg0: i32) -> (i32, i32) {
    %c0_i32 = arith.constant 0 : i32
    %c0_i32_0 = arith.constant 0 : i32
    %c0_i32_1 = arith.constant 0 : i32
    return %c0_i32, %c0_i32_0 : i32, i32
  }
  func.func @transform_7(%arg0: i32) -> (i32, i32, i32) {
    %c0_i32 = arith.constant 0 : i32
    %c0_i32_0 = arith.constant 0 : i32
    %c0_i32_1 = arith.constant 0 : i32
    return %arg0, %c0_i32, %c0_i32_0 : i32, i32, i32
  }
}

module attributes {stable_mosaic.version = 11 : i64} {
  func.func @_cross_attn_ln_kernel(%arg0: i32, %arg1: memref<1x8x32xf32, #tpu.memory_space<vmem>>, %arg2: memref<1x8x32xf32, #tpu.memory_space<vmem>>, %arg3: memref<32x96xf32, #tpu.memory_space<vmem>>, %arg4: memref<32x32xf32, #tpu.memory_space<vmem>>, %arg5: memref<1x32xf32, #tpu.memory_space<vmem>>, %arg6: memref<1x32xf32, #tpu.memory_space<vmem>>, %arg7: memref<1x8x32xf32, #tpu.memory_space<vmem>>) attributes {dimension_semantics = [#tpu.dimension_semantics<parallel>], iteration_bounds = array<i64: 2>, scalar_prefetch = 0 : i64, scratch_operands = 0 : i64, tpu.core_type = #tpu.core_type<tc>, window_params = [{transform_indices = @transform_0, window_bounds = array<i64: 1, 8, 32>}, {transform_indices = @transform_1, window_bounds = array<i64: 1, 8, 32>}, {pipeline_mode = #tpu.pipeline_mode<synchronous>, transform_indices = @transform_2, window_bounds = array<i64: 32, 96>}, {pipeline_mode = #tpu.pipeline_mode<synchronous>, transform_indices = @transform_3, window_bounds = array<i64: 32, 32>}, {pipeline_mode = #tpu.pipeline_mode<synchronous>, transform_indices = @transform_4, window_bounds = array<i64: 1, 32>}, {pipeline_mode = #tpu.pipeline_mode<synchronous>, transform_indices = @transform_5, window_bounds = array<i64: 1, 32>}, {transform_indices = @transform_6, window_bounds = array<i64: 1, 8, 32>}]} {
    %c0 = arith.constant 0 : index
    %c0_0 = arith.constant 0 : index
    %c0_1 = arith.constant 0 : index
    %0 = vector.load %arg1[%c0, %c0_0, %c0_1] : memref<1x8x32xf32, #tpu.memory_space<vmem>>, vector<1x8x32xf32>
    %1 = vector.shape_cast %0 : vector<1x8x32xf32> to vector<8x32xf32>
    %c0_2 = arith.constant 0 : index
    %c0_3 = arith.constant 0 : index
    %c0_4 = arith.constant 0 : index
    %2 = vector.load %arg2[%c0_2, %c0_3, %c0_4] : memref<1x8x32xf32, #tpu.memory_space<vmem>>, vector<1x8x32xf32>
    %3 = vector.shape_cast %2 : vector<1x8x32xf32> to vector<8x32xf32>
    %c0_5 = arith.constant 0 : index
    %c0_6 = arith.constant 0 : index
    %4 = vector.load %arg3[%c0_5, %c0_6] : memref<32x96xf32, #tpu.memory_space<vmem>>, vector<32x96xf32>
    %5 = arith.truncf %4 : vector<32x96xf32> to vector<32x96xbf16>
    %6 = arith.truncf %1 : vector<8x32xf32> to vector<8x32xbf16>
    %7 = vector.extract_strided_slice %5 {offsets = [0, 0], sizes = [32, 32], strides = [1, 1]} : vector<32x96xbf16> to vector<32x32xbf16>
    %cst = arith.constant dense<0.000000e+00> : vector<8x32xf32>
    %8 = tpu.matmul %6, %7, %cst {dimension_numbers = #tpu.dot_dimension_numbers<[1], [0], [0], [1], [0, 0, 1, 1], [], []>} : vector<8x32xbf16>, vector<32x32xbf16>, vector<8x32xf32> -> vector<8x32xf32>
    %9 = arith.truncf %3 : vector<8x32xf32> to vector<8x32xbf16>
    %10 = vector.extract_strided_slice %5 {offsets = [0, 32], sizes = [32, 64], strides = [1, 1]} : vector<32x96xbf16> to vector<32x64xbf16>
    %cst_7 = arith.constant dense<0.000000e+00> : vector<8x64xf32>
    %11 = tpu.matmul %9, %10, %cst_7 {dimension_numbers = #tpu.dot_dimension_numbers<[1], [0], [0], [1], [0, 0, 1, 1], [], []>} : vector<8x32xbf16>, vector<32x64xbf16>, vector<8x64xf32> -> vector<8x64xf32>
    %12 = vector.extract_strided_slice %11 {offsets = [0, 0], sizes = [8, 32], strides = [1, 1]} : vector<8x64xf32> to vector<8x32xf32>
    %13 = vector.extract_strided_slice %11 {offsets = [0, 32], sizes = [8, 32], strides = [1, 1]} : vector<8x64xf32> to vector<8x32xf32>
    %c0_8 = arith.constant 0 : index
    %c0_9 = arith.constant 0 : index
    %14 = vector.load %arg4[%c0_8, %c0_9] : memref<32x32xf32, #tpu.memory_space<vmem>>, vector<32x32xf32>
    %cst_10 = arith.constant 0.000000e+00 : f32
    %15 = vector.broadcast %cst_10 : f32 to vector<8x32xf32>
    %16 = vector.extract_strided_slice %8 {offsets = [0, 0], sizes = [8, 8], strides = [1, 1]} : vector<8x32xf32> to vector<8x8xf32>
    %17 = arith.truncf %16 : vector<8x8xf32> to vector<8x8xbf16>
    %18 = vector.extract_strided_slice %12 {offsets = [0, 0], sizes = [8, 8], strides = [1, 1]} : vector<8x32xf32> to vector<8x8xf32>
    %19 = arith.truncf %18 : vector<8x8xf32> to vector<8x8xbf16>
    %20 = vector.extract_strided_slice %13 {offsets = [0, 0], sizes = [8, 8], strides = [1, 1]} : vector<8x32xf32> to vector<8x8xf32>
    %21 = arith.truncf %20 : vector<8x8xf32> to vector<8x8xbf16>
    %cst_11 = arith.constant dense<0.000000e+00> : vector<8x8xf32>
    %22 = tpu.matmul %17, %19, %cst_11 {dimension_numbers = #tpu.dot_dimension_numbers<[1], [1], [0], [0], [0, 0, 1, 0], [], []>} : vector<8x8xbf16>, vector<8x8xbf16>, vector<8x8xf32> -> vector<8x8xf32>
    %cst_12 = arith.constant 0.353553385 : f32
    %23 = vector.broadcast %cst_12 : f32 to vector<8x8xf32>
    %24 = arith.mulf %22, %23 : vector<8x8xf32>
    %cst_13 = arith.constant dense<0xFF800000> : vector<8xf32>
    %25 = vector.multi_reduction <maximumf>, %24, %cst_13 [1] : vector<8x8xf32> to vector<8xf32>
    %26 = vector.shape_cast %25 : vector<8xf32> to vector<8x1xf32>
    %27 = vector.broadcast %26 : vector<8x1xf32> to vector<8x8xf32>
    %28 = arith.subf %24, %27 : vector<8x8xf32>
    %29 = math.exp %28 : vector<8x8xf32>
    %cst_14 = arith.constant dense<0.000000e+00> : vector<8xf32>
    %30 = vector.multi_reduction <add>, %29, %cst_14 [1] : vector<8x8xf32> to vector<8xf32>
    %31 = vector.shape_cast %30 : vector<8xf32> to vector<8x1xf32>
    %32 = tpu.reciprocal %31 {approx = true} : vector<8x1xf32> -> vector<8x1xf32>
    %33 = vector.broadcast %32 : vector<8x1xf32> to vector<8x8xf32>
    %34 = arith.mulf %29, %33 : vector<8x8xf32>
    %35 = arith.truncf %34 : vector<8x8xf32> to vector<8x8xbf16>
    %cst_15 = arith.constant dense<0.000000e+00> : vector<8x8xf32>
    %36 = tpu.matmul %35, %21, %cst_15 {dimension_numbers = #tpu.dot_dimension_numbers<[1], [0], [0], [1], [0, 0, 1, 1], [], []>} : vector<8x8xbf16>, vector<8x8xbf16>, vector<8x8xf32> -> vector<8x8xf32>
    %37 = vector.extract_strided_slice %14 {offsets = [0, 0], sizes = [8, 32], strides = [1, 1]} : vector<32x32xf32> to vector<8x32xf32>
    %38 = arith.truncf %37 : vector<8x32xf32> to vector<8x32xbf16>
    %39 = arith.truncf %36 : vector<8x8xf32> to vector<8x8xbf16>
    %cst_16 = arith.constant dense<0.000000e+00> : vector<8x32xf32>
    %40 = tpu.matmul %39, %38, %cst_16 {dimension_numbers = #tpu.dot_dimension_numbers<[1], [0], [0], [1], [0, 0, 1, 1], [], []>} : vector<8x8xbf16>, vector<8x32xbf16>, vector<8x32xf32> -> vector<8x32xf32>
    %41 = arith.addf %15, %40 : vector<8x32xf32>
    %42 = vector.extract_strided_slice %8 {offsets = [0, 8], sizes = [8, 8], strides = [1, 1]} : vector<8x32xf32> to vector<8x8xf32>
    %43 = arith.truncf %42 : vector<8x8xf32> to vector<8x8xbf16>
    %44 = vector.extract_strided_slice %12 {offsets = [0, 8], sizes = [8, 8], strides = [1, 1]} : vector<8x32xf32> to vector<8x8xf32>
    %45 = arith.truncf %44 : vector<8x8xf32> to vector<8x8xbf16>
    %46 = vector.extract_strided_slice %13 {offsets = [0, 8], sizes = [8, 8], strides = [1, 1]} : vector<8x32xf32> to vector<8x8xf32>
    %47 = arith.truncf %46 : vector<8x8xf32> to vector<8x8xbf16>
    %cst_17 = arith.constant dense<0.000000e+00> : vector<8x8xf32>
    %48 = tpu.matmul %43, %45, %cst_17 {dimension_numbers = #tpu.dot_dimension_numbers<[1], [1], [0], [0], [0, 0, 1, 0], [], []>} : vector<8x8xbf16>, vector<8x8xbf16>, vector<8x8xf32> -> vector<8x8xf32>
    %cst_18 = arith.constant 0.353553385 : f32
    %49 = vector.broadcast %cst_18 : f32 to vector<8x8xf32>
    %50 = arith.mulf %48, %49 : vector<8x8xf32>
    %cst_19 = arith.constant dense<0xFF800000> : vector<8xf32>
    %51 = vector.multi_reduction <maximumf>, %50, %cst_19 [1] : vector<8x8xf32> to vector<8xf32>
    %52 = vector.shape_cast %51 : vector<8xf32> to vector<8x1xf32>
    %53 = vector.broadcast %52 : vector<8x1xf32> to vector<8x8xf32>
    %54 = arith.subf %50, %53 : vector<8x8xf32>
    %55 = math.exp %54 : vector<8x8xf32>
    %cst_20 = arith.constant dense<0.000000e+00> : vector<8xf32>
    %56 = vector.multi_reduction <add>, %55, %cst_20 [1] : vector<8x8xf32> to vector<8xf32>
    %57 = vector.shape_cast %56 : vector<8xf32> to vector<8x1xf32>
    %58 = tpu.reciprocal %57 {approx = true} : vector<8x1xf32> -> vector<8x1xf32>
    %59 = vector.broadcast %58 : vector<8x1xf32> to vector<8x8xf32>
    %60 = arith.mulf %55, %59 : vector<8x8xf32>
    %61 = arith.truncf %60 : vector<8x8xf32> to vector<8x8xbf16>
    %cst_21 = arith.constant dense<0.000000e+00> : vector<8x8xf32>
    %62 = tpu.matmul %61, %47, %cst_21 {dimension_numbers = #tpu.dot_dimension_numbers<[1], [0], [0], [1], [0, 0, 1, 1], [], []>} : vector<8x8xbf16>, vector<8x8xbf16>, vector<8x8xf32> -> vector<8x8xf32>
    %63 = vector.extract_strided_slice %14 {offsets = [8, 0], sizes = [8, 32], strides = [1, 1]} : vector<32x32xf32> to vector<8x32xf32>
    %64 = arith.truncf %63 : vector<8x32xf32> to vector<8x32xbf16>
    %65 = arith.truncf %62 : vector<8x8xf32> to vector<8x8xbf16>
    %cst_22 = arith.constant dense<0.000000e+00> : vector<8x32xf32>
    %66 = tpu.matmul %65, %64, %cst_22 {dimension_numbers = #tpu.dot_dimension_numbers<[1], [0], [0], [1], [0, 0, 1, 1], [], []>} : vector<8x8xbf16>, vector<8x32xbf16>, vector<8x32xf32> -> vector<8x32xf32>
    %67 = arith.addf %41, %66 : vector<8x32xf32>
    %68 = vector.extract_strided_slice %8 {offsets = [0, 16], sizes = [8, 8], strides = [1, 1]} : vector<8x32xf32> to vector<8x8xf32>
    %69 = arith.truncf %68 : vector<8x8xf32> to vector<8x8xbf16>
    %70 = vector.extract_strided_slice %12 {offsets = [0, 16], sizes = [8, 8], strides = [1, 1]} : vector<8x32xf32> to vector<8x8xf32>
    %71 = arith.truncf %70 : vector<8x8xf32> to vector<8x8xbf16>
    %72 = vector.extract_strided_slice %13 {offsets = [0, 16], sizes = [8, 8], strides = [1, 1]} : vector<8x32xf32> to vector<8x8xf32>
    %73 = arith.truncf %72 : vector<8x8xf32> to vector<8x8xbf16>
    %cst_23 = arith.constant dense<0.000000e+00> : vector<8x8xf32>
    %74 = tpu.matmul %69, %71, %cst_23 {dimension_numbers = #tpu.dot_dimension_numbers<[1], [1], [0], [0], [0, 0, 1, 0], [], []>} : vector<8x8xbf16>, vector<8x8xbf16>, vector<8x8xf32> -> vector<8x8xf32>
    %cst_24 = arith.constant 0.353553385 : f32
    %75 = vector.broadcast %cst_24 : f32 to vector<8x8xf32>
    %76 = arith.mulf %74, %75 : vector<8x8xf32>
    %cst_25 = arith.constant dense<0xFF800000> : vector<8xf32>
    %77 = vector.multi_reduction <maximumf>, %76, %cst_25 [1] : vector<8x8xf32> to vector<8xf32>
    %78 = vector.shape_cast %77 : vector<8xf32> to vector<8x1xf32>
    %79 = vector.broadcast %78 : vector<8x1xf32> to vector<8x8xf32>
    %80 = arith.subf %76, %79 : vector<8x8xf32>
    %81 = math.exp %80 : vector<8x8xf32>
    %cst_26 = arith.constant dense<0.000000e+00> : vector<8xf32>
    %82 = vector.multi_reduction <add>, %81, %cst_26 [1] : vector<8x8xf32> to vector<8xf32>
    %83 = vector.shape_cast %82 : vector<8xf32> to vector<8x1xf32>
    %84 = tpu.reciprocal %83 {approx = true} : vector<8x1xf32> -> vector<8x1xf32>
    %85 = vector.broadcast %84 : vector<8x1xf32> to vector<8x8xf32>
    %86 = arith.mulf %81, %85 : vector<8x8xf32>
    %87 = arith.truncf %86 : vector<8x8xf32> to vector<8x8xbf16>
    %cst_27 = arith.constant dense<0.000000e+00> : vector<8x8xf32>
    %88 = tpu.matmul %87, %73, %cst_27 {dimension_numbers = #tpu.dot_dimension_numbers<[1], [0], [0], [1], [0, 0, 1, 1], [], []>} : vector<8x8xbf16>, vector<8x8xbf16>, vector<8x8xf32> -> vector<8x8xf32>
    %89 = vector.extract_strided_slice %14 {offsets = [16, 0], sizes = [8, 32], strides = [1, 1]} : vector<32x32xf32> to vector<8x32xf32>
    %90 = arith.truncf %89 : vector<8x32xf32> to vector<8x32xbf16>
    %91 = arith.truncf %88 : vector<8x8xf32> to vector<8x8xbf16>
    %cst_28 = arith.constant dense<0.000000e+00> : vector<8x32xf32>
    %92 = tpu.matmul %91, %90, %cst_28 {dimension_numbers = #tpu.dot_dimension_numbers<[1], [0], [0], [1], [0, 0, 1, 1], [], []>} : vector<8x8xbf16>, vector<8x32xbf16>, vector<8x32xf32> -> vector<8x32xf32>
    %93 = arith.addf %67, %92 : vector<8x32xf32>
    %94 = vector.extract_strided_slice %8 {offsets = [0, 24], sizes = [8, 8], strides = [1, 1]} : vector<8x32xf32> to vector<8x8xf32>
    %95 = arith.truncf %94 : vector<8x8xf32> to vector<8x8xbf16>
    %96 = vector.extract_strided_slice %12 {offsets = [0, 24], sizes = [8, 8], strides = [1, 1]} : vector<8x32xf32> to vector<8x8xf32>
    %97 = arith.truncf %96 : vector<8x8xf32> to vector<8x8xbf16>
    %98 = vector.extract_strided_slice %13 {offsets = [0, 24], sizes = [8, 8], strides = [1, 1]} : vector<8x32xf32> to vector<8x8xf32>
    %99 = arith.truncf %98 : vector<8x8xf32> to vector<8x8xbf16>
    %cst_29 = arith.constant dense<0.000000e+00> : vector<8x8xf32>
    %100 = tpu.matmul %95, %97, %cst_29 {dimension_numbers = #tpu.dot_dimension_numbers<[1], [1], [0], [0], [0, 0, 1, 0], [], []>} : vector<8x8xbf16>, vector<8x8xbf16>, vector<8x8xf32> -> vector<8x8xf32>
    %cst_30 = arith.constant 0.353553385 : f32
    %101 = vector.broadcast %cst_30 : f32 to vector<8x8xf32>
    %102 = arith.mulf %100, %101 : vector<8x8xf32>
    %cst_31 = arith.constant dense<0xFF800000> : vector<8xf32>
    %103 = vector.multi_reduction <maximumf>, %102, %cst_31 [1] : vector<8x8xf32> to vector<8xf32>
    %104 = vector.shape_cast %103 : vector<8xf32> to vector<8x1xf32>
    %105 = vector.broadcast %104 : vector<8x1xf32> to vector<8x8xf32>
    %106 = arith.subf %102, %105 : vector<8x8xf32>
    %107 = math.exp %106 : vector<8x8xf32>
    %cst_32 = arith.constant dense<0.000000e+00> : vector<8xf32>
    %108 = vector.multi_reduction <add>, %107, %cst_32 [1] : vector<8x8xf32> to vector<8xf32>
    %109 = vector.shape_cast %108 : vector<8xf32> to vector<8x1xf32>
    %110 = tpu.reciprocal %109 {approx = true} : vector<8x1xf32> -> vector<8x1xf32>
    %111 = vector.broadcast %110 : vector<8x1xf32> to vector<8x8xf32>
    %112 = arith.mulf %107, %111 : vector<8x8xf32>
    %113 = arith.truncf %112 : vector<8x8xf32> to vector<8x8xbf16>
    %cst_33 = arith.constant dense<0.000000e+00> : vector<8x8xf32>
    %114 = tpu.matmul %113, %99, %cst_33 {dimension_numbers = #tpu.dot_dimension_numbers<[1], [0], [0], [1], [0, 0, 1, 1], [], []>} : vector<8x8xbf16>, vector<8x8xbf16>, vector<8x8xf32> -> vector<8x8xf32>
    %115 = vector.extract_strided_slice %14 {offsets = [24, 0], sizes = [8, 32], strides = [1, 1]} : vector<32x32xf32> to vector<8x32xf32>
    %116 = arith.truncf %115 : vector<8x32xf32> to vector<8x32xbf16>
    %117 = arith.truncf %114 : vector<8x8xf32> to vector<8x8xbf16>
    %cst_34 = arith.constant dense<0.000000e+00> : vector<8x32xf32>
    %118 = tpu.matmul %117, %116, %cst_34 {dimension_numbers = #tpu.dot_dimension_numbers<[1], [0], [0], [1], [0, 0, 1, 1], [], []>} : vector<8x8xbf16>, vector<8x32xbf16>, vector<8x32xf32> -> vector<8x32xf32>
    %119 = arith.addf %93, %118 : vector<8x32xf32>
    %120 = arith.addf %1, %119 : vector<8x32xf32>
    %cst_35 = arith.constant dense<0.000000e+00> : vector<8xf32>
    %121 = vector.multi_reduction <add>, %120, %cst_35 [1] : vector<8x32xf32> to vector<8xf32>
    %122 = vector.shape_cast %121 : vector<8xf32> to vector<8x1xf32>
    %cst_36 = arith.constant 3.200000e+01 : f32
    %123 = vector.broadcast %cst_36 : f32 to vector<8x1xf32>
    %124 = arith.divf %122, %123 : vector<8x1xf32>
    %125 = vector.broadcast %124 : vector<8x1xf32> to vector<8x32xf32>
    %126 = arith.subf %120, %125 : vector<8x32xf32>
    %127 = arith.mulf %126, %126 : vector<8x32xf32>
    %cst_37 = arith.constant dense<0.000000e+00> : vector<8xf32>
    %128 = vector.multi_reduction <add>, %127, %cst_37 [1] : vector<8x32xf32> to vector<8xf32>
    %129 = vector.shape_cast %128 : vector<8xf32> to vector<8x1xf32>
    %cst_38 = arith.constant 3.200000e+01 : f32
    %130 = vector.broadcast %cst_38 : f32 to vector<8x1xf32>
    %131 = arith.divf %129, %130 : vector<8x1xf32>
    %132 = vector.broadcast %124 : vector<8x1xf32> to vector<8x32xf32>
    %133 = arith.subf %120, %132 : vector<8x32xf32>
    %cst_39 = arith.constant 9.99999974E-6 : f32
    %134 = vector.broadcast %cst_39 : f32 to vector<8x1xf32>
    %135 = arith.addf %131, %134 : vector<8x1xf32>
    %136 = math.rsqrt %135 : vector<8x1xf32>
    %137 = vector.broadcast %136 : vector<8x1xf32> to vector<8x32xf32>
    %138 = arith.mulf %133, %137 : vector<8x32xf32>
    %c0_40 = arith.constant 0 : index
    %c0_41 = arith.constant 0 : index
    %139 = vector.load %arg5[%c0_40, %c0_41] : memref<1x32xf32, #tpu.memory_space<vmem>>, vector<1x32xf32>
    %140 = vector.broadcast %139 : vector<1x32xf32> to vector<8x32xf32>
    %141 = arith.mulf %138, %140 : vector<8x32xf32>
    %c0_42 = arith.constant 0 : index
    %c0_43 = arith.constant 0 : index
    %142 = vector.load %arg6[%c0_42, %c0_43] : memref<1x32xf32, #tpu.memory_space<vmem>>, vector<1x32xf32>
    %143 = vector.broadcast %142 : vector<1x32xf32> to vector<8x32xf32>
    %144 = arith.addf %141, %143 : vector<8x32xf32>
    %c0_44 = arith.constant 0 : index
    %c0_45 = arith.constant 0 : index
    %c0_46 = arith.constant 0 : index
    %145 = vector.load %arg7[%c0_44, %c0_45, %c0_46] : memref<1x8x32xf32, #tpu.memory_space<vmem>>, vector<1x8x32xf32>
    %146 = vector.shape_cast %145 : vector<1x8x32xf32> to vector<8x32xf32>
    %147 = vector.shape_cast %144 : vector<8x32xf32> to vector<1x8x32xf32>
    tpu.vector_store %arg7[%c0_44, %c0_45, %c0_46], %147 {strides = array<i32>} : memref<1x8x32xf32, #tpu.memory_space<vmem>>, vector<1x8x32xf32>,
    return
  }
  func.func @transform_0(%arg0: i32) -> (i32, i32, i32) {
    %c0_i32 = arith.constant 0 : i32
    %c0_i32_0 = arith.constant 0 : i32
    %c0_i32_1 = arith.constant 0 : i32
    return %arg0, %c0_i32, %c0_i32_0 : i32, i32, i32
  }
  func.func @transform_1(%arg0: i32) -> (i32, i32, i32) {
    %c0_i32 = arith.constant 0 : i32
    %c0_i32_0 = arith.constant 0 : i32
    %c0_i32_1 = arith.constant 0 : i32
    return %arg0, %c0_i32, %c0_i32_0 : i32, i32, i32
  }
  func.func @transform_2(%arg0: i32) -> (i32, i32) {
    %c0_i32 = arith.constant 0 : i32
    %c0_i32_0 = arith.constant 0 : i32
    %c0_i32_1 = arith.constant 0 : i32
    return %c0_i32, %c0_i32_0 : i32, i32
  }
  func.func @transform_3(%arg0: i32) -> (i32, i32) {
    %c0_i32 = arith.constant 0 : i32
    %c0_i32_0 = arith.constant 0 : i32
    %c0_i32_1 = arith.constant 0 : i32
    return %c0_i32, %c0_i32_0 : i32, i32
  }
  func.func @transform_4(%arg0: i32) -> (i32, i32) {
    %c0_i32 = arith.constant 0 : i32
    %c0_i32_0 = arith.constant 0 : i32
    %c0_i32_1 = arith.constant 0 : i32
    return %c0_i32, %c0_i32_0 : i32, i32
  }
  func.func @transform_5(%arg0: i32) -> (i32, i32) {
    %c0_i32 = arith.constant 0 : i32
    %c0_i32_0 = arith.constant 0 : i32
    %c0_i32_1 = arith.constant 0 : i32
    return %c0_i32, %c0_i32_0 : i32, i32
  }
  func.func @transform_6(%arg0: i32) -> (i32, i32, i32) {
    %c0_i32 = arith.constant 0 : i32
    %c0_i32_0 = arith.constant 0 : i32
    %c0_i32_1 = arith.constant 0 : i32
    return %arg0, %c0_i32, %c0_i32_0 : i32, i32, i32
  }
}

module attributes {stable_mosaic.version = 11 : i64} {
  func.func @_self_attn_ln_kernel(%arg0: i32, %arg1: memref<1x8x32xf32, #tpu.memory_space<vmem>>, %arg2: memref<32x96xf32, #tpu.memory_space<vmem>>, %arg3: memref<32x32xf32, #tpu.memory_space<vmem>>, %arg4: memref<1x32xf32, #tpu.memory_space<vmem>>, %arg5: memref<1x32xf32, #tpu.memory_space<vmem>>, %arg6: memref<1x8x32xf32, #tpu.memory_space<vmem>>) attributes {dimension_semantics = [#tpu.dimension_semantics<parallel>], iteration_bounds = array<i64: 2>, scalar_prefetch = 0 : i64, scratch_operands = 0 : i64, tpu.core_type = #tpu.core_type<tc>, window_params = [{transform_indices = @transform_0, window_bounds = array<i64: 1, 8, 32>}, {pipeline_mode = #tpu.pipeline_mode<synchronous>, transform_indices = @transform_1, window_bounds = array<i64: 32, 96>}, {pipeline_mode = #tpu.pipeline_mode<synchronous>, transform_indices = @transform_2, window_bounds = array<i64: 32, 32>}, {pipeline_mode = #tpu.pipeline_mode<synchronous>, transform_indices = @transform_3, window_bounds = array<i64: 1, 32>}, {pipeline_mode = #tpu.pipeline_mode<synchronous>, transform_indices = @transform_4, window_bounds = array<i64: 1, 32>}, {transform_indices = @transform_5, window_bounds = array<i64: 1, 8, 32>}]} {
    %c0 = arith.constant 0 : index
    %c0_0 = arith.constant 0 : index
    %c0_1 = arith.constant 0 : index
    %0 = vector.load %arg1[%c0, %c0_0, %c0_1] : memref<1x8x32xf32, #tpu.memory_space<vmem>>, vector<1x8x32xf32>
    %1 = vector.shape_cast %0 : vector<1x8x32xf32> to vector<8x32xf32>
    %2 = arith.truncf %1 : vector<8x32xf32> to vector<8x32xbf16>
    %c0_2 = arith.constant 0 : index
    %c0_3 = arith.constant 0 : index
    %3 = vector.load %arg2[%c0_2, %c0_3] : memref<32x96xf32, #tpu.memory_space<vmem>>, vector<32x96xf32>
    %4 = arith.truncf %3 : vector<32x96xf32> to vector<32x96xbf16>
    %cst = arith.constant dense<0.000000e+00> : vector<8x96xf32>
    %5 = tpu.matmul %2, %4, %cst {dimension_numbers = #tpu.dot_dimension_numbers<[1], [0], [0], [1], [0, 0, 1, 1], [], []>} : vector<8x32xbf16>, vector<32x96xbf16>, vector<8x96xf32> -> vector<8x96xf32>
    %6 = vector.extract_strided_slice %5 {offsets = [0, 0], sizes = [8, 32], strides = [1, 1]} : vector<8x96xf32> to vector<8x32xf32>
    %7 = vector.extract_strided_slice %5 {offsets = [0, 32], sizes = [8, 32], strides = [1, 1]} : vector<8x96xf32> to vector<8x32xf32>
    %8 = vector.extract_strided_slice %5 {offsets = [0, 64], sizes = [8, 32], strides = [1, 1]} : vector<8x96xf32> to vector<8x32xf32>
    %c0_4 = arith.constant 0 : index
    %c0_5 = arith.constant 0 : index
    %9 = vector.load %arg3[%c0_4, %c0_5] : memref<32x32xf32, #tpu.memory_space<vmem>>, vector<32x32xf32>
    %cst_6 = arith.constant 0.000000e+00 : f32
    %10 = vector.broadcast %cst_6 : f32 to vector<8x32xf32>
    %11 = vector.extract_strided_slice %6 {offsets = [0, 0], sizes = [8, 8], strides = [1, 1]} : vector<8x32xf32> to vector<8x8xf32>
    %12 = arith.truncf %11 : vector<8x8xf32> to vector<8x8xbf16>
    %13 = vector.extract_strided_slice %7 {offsets = [0, 0], sizes = [8, 8], strides = [1, 1]} : vector<8x32xf32> to vector<8x8xf32>
    %14 = arith.truncf %13 : vector<8x8xf32> to vector<8x8xbf16>
    %15 = vector.extract_strided_slice %8 {offsets = [0, 0], sizes = [8, 8], strides = [1, 1]} : vector<8x32xf32> to vector<8x8xf32>
    %16 = arith.truncf %15 : vector<8x8xf32> to vector<8x8xbf16>
    %cst_7 = arith.constant dense<0.000000e+00> : vector<8x8xf32>
    %17 = tpu.matmul %12, %14, %cst_7 {dimension_numbers = #tpu.dot_dimension_numbers<[1], [1], [0], [0], [0, 0, 1, 0], [], []>} : vector<8x8xbf16>, vector<8x8xbf16>, vector<8x8xf32> -> vector<8x8xf32>
    %cst_8 = arith.constant 0.353553385 : f32
    %18 = vector.broadcast %cst_8 : f32 to vector<8x8xf32>
    %19 = arith.mulf %17, %18 : vector<8x8xf32>
    %cst_9 = arith.constant dense<0xFF800000> : vector<8xf32>
    %20 = vector.multi_reduction <maximumf>, %19, %cst_9 [1] : vector<8x8xf32> to vector<8xf32>
    %21 = vector.shape_cast %20 : vector<8xf32> to vector<8x1xf32>
    %22 = vector.broadcast %21 : vector<8x1xf32> to vector<8x8xf32>
    %23 = arith.subf %19, %22 : vector<8x8xf32>
    %24 = math.exp %23 : vector<8x8xf32>
    %cst_10 = arith.constant dense<0.000000e+00> : vector<8xf32>
    %25 = vector.multi_reduction <add>, %24, %cst_10 [1] : vector<8x8xf32> to vector<8xf32>
    %26 = vector.shape_cast %25 : vector<8xf32> to vector<8x1xf32>
    %27 = tpu.reciprocal %26 {approx = true} : vector<8x1xf32> -> vector<8x1xf32>
    %28 = vector.broadcast %27 : vector<8x1xf32> to vector<8x8xf32>
    %29 = arith.mulf %24, %28 : vector<8x8xf32>
    %30 = arith.truncf %29 : vector<8x8xf32> to vector<8x8xbf16>
    %cst_11 = arith.constant dense<0.000000e+00> : vector<8x8xf32>
    %31 = tpu.matmul %30, %16, %cst_11 {dimension_numbers = #tpu.dot_dimension_numbers<[1], [0], [0], [1], [0, 0, 1, 1], [], []>} : vector<8x8xbf16>, vector<8x8xbf16>, vector<8x8xf32> -> vector<8x8xf32>
    %32 = vector.extract_strided_slice %9 {offsets = [0, 0], sizes = [8, 32], strides = [1, 1]} : vector<32x32xf32> to vector<8x32xf32>
    %33 = arith.truncf %32 : vector<8x32xf32> to vector<8x32xbf16>
    %34 = arith.truncf %31 : vector<8x8xf32> to vector<8x8xbf16>
    %cst_12 = arith.constant dense<0.000000e+00> : vector<8x32xf32>
    %35 = tpu.matmul %34, %33, %cst_12 {dimension_numbers = #tpu.dot_dimension_numbers<[1], [0], [0], [1], [0, 0, 1, 1], [], []>} : vector<8x8xbf16>, vector<8x32xbf16>, vector<8x32xf32> -> vector<8x32xf32>
    %36 = arith.addf %10, %35 : vector<8x32xf32>
    %37 = vector.extract_strided_slice %6 {offsets = [0, 8], sizes = [8, 8], strides = [1, 1]} : vector<8x32xf32> to vector<8x8xf32>
    %38 = arith.truncf %37 : vector<8x8xf32> to vector<8x8xbf16>
    %39 = vector.extract_strided_slice %7 {offsets = [0, 8], sizes = [8, 8], strides = [1, 1]} : vector<8x32xf32> to vector<8x8xf32>
    %40 = arith.truncf %39 : vector<8x8xf32> to vector<8x8xbf16>
    %41 = vector.extract_strided_slice %8 {offsets = [0, 8], sizes = [8, 8], strides = [1, 1]} : vector<8x32xf32> to vector<8x8xf32>
    %42 = arith.truncf %41 : vector<8x8xf32> to vector<8x8xbf16>
    %cst_13 = arith.constant dense<0.000000e+00> : vector<8x8xf32>
    %43 = tpu.matmul %38, %40, %cst_13 {dimension_numbers = #tpu.dot_dimension_numbers<[1], [1], [0], [0], [0, 0, 1, 0], [], []>} : vector<8x8xbf16>, vector<8x8xbf16>, vector<8x8xf32> -> vector<8x8xf32>
    %cst_14 = arith.constant 0.353553385 : f32
    %44 = vector.broadcast %cst_14 : f32 to vector<8x8xf32>
    %45 = arith.mulf %43, %44 : vector<8x8xf32>
    %cst_15 = arith.constant dense<0xFF800000> : vector<8xf32>
    %46 = vector.multi_reduction <maximumf>, %45, %cst_15 [1] : vector<8x8xf32> to vector<8xf32>
    %47 = vector.shape_cast %46 : vector<8xf32> to vector<8x1xf32>
    %48 = vector.broadcast %47 : vector<8x1xf32> to vector<8x8xf32>
    %49 = arith.subf %45, %48 : vector<8x8xf32>
    %50 = math.exp %49 : vector<8x8xf32>
    %cst_16 = arith.constant dense<0.000000e+00> : vector<8xf32>
    %51 = vector.multi_reduction <add>, %50, %cst_16 [1] : vector<8x8xf32> to vector<8xf32>
    %52 = vector.shape_cast %51 : vector<8xf32> to vector<8x1xf32>
    %53 = tpu.reciprocal %52 {approx = true} : vector<8x1xf32> -> vector<8x1xf32>
    %54 = vector.broadcast %53 : vector<8x1xf32> to vector<8x8xf32>
    %55 = arith.mulf %50, %54 : vector<8x8xf32>
    %56 = arith.truncf %55 : vector<8x8xf32> to vector<8x8xbf16>
    %cst_17 = arith.constant dense<0.000000e+00> : vector<8x8xf32>
    %57 = tpu.matmul %56, %42, %cst_17 {dimension_numbers = #tpu.dot_dimension_numbers<[1], [0], [0], [1], [0, 0, 1, 1], [], []>} : vector<8x8xbf16>, vector<8x8xbf16>, vector<8x8xf32> -> vector<8x8xf32>
    %58 = vector.extract_strided_slice %9 {offsets = [8, 0], sizes = [8, 32], strides = [1, 1]} : vector<32x32xf32> to vector<8x32xf32>
    %59 = arith.truncf %58 : vector<8x32xf32> to vector<8x32xbf16>
    %60 = arith.truncf %57 : vector<8x8xf32> to vector<8x8xbf16>
    %cst_18 = arith.constant dense<0.000000e+00> : vector<8x32xf32>
    %61 = tpu.matmul %60, %59, %cst_18 {dimension_numbers = #tpu.dot_dimension_numbers<[1], [0], [0], [1], [0, 0, 1, 1], [], []>} : vector<8x8xbf16>, vector<8x32xbf16>, vector<8x32xf32> -> vector<8x32xf32>
    %62 = arith.addf %36, %61 : vector<8x32xf32>
    %63 = vector.extract_strided_slice %6 {offsets = [0, 16], sizes = [8, 8], strides = [1, 1]} : vector<8x32xf32> to vector<8x8xf32>
    %64 = arith.truncf %63 : vector<8x8xf32> to vector<8x8xbf16>
    %65 = vector.extract_strided_slice %7 {offsets = [0, 16], sizes = [8, 8], strides = [1, 1]} : vector<8x32xf32> to vector<8x8xf32>
    %66 = arith.truncf %65 : vector<8x8xf32> to vector<8x8xbf16>
    %67 = vector.extract_strided_slice %8 {offsets = [0, 16], sizes = [8, 8], strides = [1, 1]} : vector<8x32xf32> to vector<8x8xf32>
    %68 = arith.truncf %67 : vector<8x8xf32> to vector<8x8xbf16>
    %cst_19 = arith.constant dense<0.000000e+00> : vector<8x8xf32>
    %69 = tpu.matmul %64, %66, %cst_19 {dimension_numbers = #tpu.dot_dimension_numbers<[1], [1], [0], [0], [0, 0, 1, 0], [], []>} : vector<8x8xbf16>, vector<8x8xbf16>, vector<8x8xf32> -> vector<8x8xf32>
    %cst_20 = arith.constant 0.353553385 : f32
    %70 = vector.broadcast %cst_20 : f32 to vector<8x8xf32>
    %71 = arith.mulf %69, %70 : vector<8x8xf32>
    %cst_21 = arith.constant dense<0xFF800000> : vector<8xf32>
    %72 = vector.multi_reduction <maximumf>, %71, %cst_21 [1] : vector<8x8xf32> to vector<8xf32>
    %73 = vector.shape_cast %72 : vector<8xf32> to vector<8x1xf32>
    %74 = vector.broadcast %73 : vector<8x1xf32> to vector<8x8xf32>
    %75 = arith.subf %71, %74 : vector<8x8xf32>
    %76 = math.exp %75 : vector<8x8xf32>
    %cst_22 = arith.constant dense<0.000000e+00> : vector<8xf32>
    %77 = vector.multi_reduction <add>, %76, %cst_22 [1] : vector<8x8xf32> to vector<8xf32>
    %78 = vector.shape_cast %77 : vector<8xf32> to vector<8x1xf32>
    %79 = tpu.reciprocal %78 {approx = true} : vector<8x1xf32> -> vector<8x1xf32>
    %80 = vector.broadcast %79 : vector<8x1xf32> to vector<8x8xf32>
    %81 = arith.mulf %76, %80 : vector<8x8xf32>
    %82 = arith.truncf %81 : vector<8x8xf32> to vector<8x8xbf16>
    %cst_23 = arith.constant dense<0.000000e+00> : vector<8x8xf32>
    %83 = tpu.matmul %82, %68, %cst_23 {dimension_numbers = #tpu.dot_dimension_numbers<[1], [0], [0], [1], [0, 0, 1, 1], [], []>} : vector<8x8xbf16>, vector<8x8xbf16>, vector<8x8xf32> -> vector<8x8xf32>
    %84 = vector.extract_strided_slice %9 {offsets = [16, 0], sizes = [8, 32], strides = [1, 1]} : vector<32x32xf32> to vector<8x32xf32>
    %85 = arith.truncf %84 : vector<8x32xf32> to vector<8x32xbf16>
    %86 = arith.truncf %83 : vector<8x8xf32> to vector<8x8xbf16>
    %cst_24 = arith.constant dense<0.000000e+00> : vector<8x32xf32>
    %87 = tpu.matmul %86, %85, %cst_24 {dimension_numbers = #tpu.dot_dimension_numbers<[1], [0], [0], [1], [0, 0, 1, 1], [], []>} : vector<8x8xbf16>, vector<8x32xbf16>, vector<8x32xf32> -> vector<8x32xf32>
    %88 = arith.addf %62, %87 : vector<8x32xf32>
    %89 = vector.extract_strided_slice %6 {offsets = [0, 24], sizes = [8, 8], strides = [1, 1]} : vector<8x32xf32> to vector<8x8xf32>
    %90 = arith.truncf %89 : vector<8x8xf32> to vector<8x8xbf16>
    %91 = vector.extract_strided_slice %7 {offsets = [0, 24], sizes = [8, 8], strides = [1, 1]} : vector<8x32xf32> to vector<8x8xf32>
    %92 = arith.truncf %91 : vector<8x8xf32> to vector<8x8xbf16>
    %93 = vector.extract_strided_slice %8 {offsets = [0, 24], sizes = [8, 8], strides = [1, 1]} : vector<8x32xf32> to vector<8x8xf32>
    %94 = arith.truncf %93 : vector<8x8xf32> to vector<8x8xbf16>
    %cst_25 = arith.constant dense<0.000000e+00> : vector<8x8xf32>
    %95 = tpu.matmul %90, %92, %cst_25 {dimension_numbers = #tpu.dot_dimension_numbers<[1], [1], [0], [0], [0, 0, 1, 0], [], []>} : vector<8x8xbf16>, vector<8x8xbf16>, vector<8x8xf32> -> vector<8x8xf32>
    %cst_26 = arith.constant 0.353553385 : f32
    %96 = vector.broadcast %cst_26 : f32 to vector<8x8xf32>
    %97 = arith.mulf %95, %96 : vector<8x8xf32>
    %cst_27 = arith.constant dense<0xFF800000> : vector<8xf32>
    %98 = vector.multi_reduction <maximumf>, %97, %cst_27 [1] : vector<8x8xf32> to vector<8xf32>
    %99 = vector.shape_cast %98 : vector<8xf32> to vector<8x1xf32>
    %100 = vector.broadcast %99 : vector<8x1xf32> to vector<8x8xf32>
    %101 = arith.subf %97, %100 : vector<8x8xf32>
    %102 = math.exp %101 : vector<8x8xf32>
    %cst_28 = arith.constant dense<0.000000e+00> : vector<8xf32>
    %103 = vector.multi_reduction <add>, %102, %cst_28 [1] : vector<8x8xf32> to vector<8xf32>
    %104 = vector.shape_cast %103 : vector<8xf32> to vector<8x1xf32>
    %105 = tpu.reciprocal %104 {approx = true} : vector<8x1xf32> -> vector<8x1xf32>
    %106 = vector.broadcast %105 : vector<8x1xf32> to vector<8x8xf32>
    %107 = arith.mulf %102, %106 : vector<8x8xf32>
    %108 = arith.truncf %107 : vector<8x8xf32> to vector<8x8xbf16>
    %cst_29 = arith.constant dense<0.000000e+00> : vector<8x8xf32>
    %109 = tpu.matmul %108, %94, %cst_29 {dimension_numbers = #tpu.dot_dimension_numbers<[1], [0], [0], [1], [0, 0, 1, 1], [], []>} : vector<8x8xbf16>, vector<8x8xbf16>, vector<8x8xf32> -> vector<8x8xf32>
    %110 = vector.extract_strided_slice %9 {offsets = [24, 0], sizes = [8, 32], strides = [1, 1]} : vector<32x32xf32> to vector<8x32xf32>
    %111 = arith.truncf %110 : vector<8x32xf32> to vector<8x32xbf16>
    %112 = arith.truncf %109 : vector<8x8xf32> to vector<8x8xbf16>
    %cst_30 = arith.constant dense<0.000000e+00> : vector<8x32xf32>
    %113 = tpu.matmul %112, %111, %cst_30 {dimension_numbers = #tpu.dot_dimension_numbers<[1], [0], [0], [1], [0, 0, 1, 1], [], []>} : vector<8x8xbf16>, vector<8x32xbf16>, vector<8x32xf32> -> vector<8x32xf32>
    %114 = arith.addf %88, %113 : vector<8x32xf32>
    %115 = arith.addf %1, %114 : vector<8x32xf32>
    %cst_31 = arith.constant dense<0.000000e+00> : vector<8xf32>
    %116 = vector.multi_reduction <add>, %115, %cst_31 [1] : vector<8x32xf32> to vector<8xf32>
    %117 = vector.shape_cast %116 : vector<8xf32> to vector<8x1xf32>
    %cst_32 = arith.constant 3.200000e+01 : f32
    %118 = vector.broadcast %cst_32 : f32 to vector<8x1xf32>
    %119 = arith.divf %117, %118 : vector<8x1xf32>
    %120 = vector.broadcast %119 : vector<8x1xf32> to vector<8x32xf32>
    %121 = arith.subf %115, %120 : vector<8x32xf32>
    %122 = arith.mulf %121, %121 : vector<8x32xf32>
    %cst_33 = arith.constant dense<0.000000e+00> : vector<8xf32>
    %123 = vector.multi_reduction <add>, %122, %cst_33 [1] : vector<8x32xf32> to vector<8xf32>
    %124 = vector.shape_cast %123 : vector<8xf32> to vector<8x1xf32>
    %cst_34 = arith.constant 3.200000e+01 : f32
    %125 = vector.broadcast %cst_34 : f32 to vector<8x1xf32>
    %126 = arith.divf %124, %125 : vector<8x1xf32>
    %127 = vector.broadcast %119 : vector<8x1xf32> to vector<8x32xf32>
    %128 = arith.subf %115, %127 : vector<8x32xf32>
    %cst_35 = arith.constant 9.99999974E-6 : f32
    %129 = vector.broadcast %cst_35 : f32 to vector<8x1xf32>
    %130 = arith.addf %126, %129 : vector<8x1xf32>
    %131 = math.rsqrt %130 : vector<8x1xf32>
    %132 = vector.broadcast %131 : vector<8x1xf32> to vector<8x32xf32>
    %133 = arith.mulf %128, %132 : vector<8x32xf32>
    %c0_36 = arith.constant 0 : index
    %c0_37 = arith.constant 0 : index
    %134 = vector.load %arg4[%c0_36, %c0_37] : memref<1x32xf32, #tpu.memory_space<vmem>>, vector<1x32xf32>
    %135 = vector.broadcast %134 : vector<1x32xf32> to vector<8x32xf32>
    %136 = arith.mulf %133, %135 : vector<8x32xf32>
    %c0_38 = arith.constant 0 : index
    %c0_39 = arith.constant 0 : index
    %137 = vector.load %arg5[%c0_38, %c0_39] : memref<1x32xf32, #tpu.memory_space<vmem>>, vector<1x32xf32>
    %138 = vector.broadcast %137 : vector<1x32xf32> to vector<8x32xf32>
    %139 = arith.addf %136, %138 : vector<8x32xf32>
    %c0_40 = arith.constant 0 : index
    %c0_41 = arith.constant 0 : index
    %c0_42 = arith.constant 0 : index
    %140 = vector.load %arg6[%c0_40, %c0_41, %c0_42] : memref<1x8x32xf32, #tpu.memory_space<vmem>>, vector<1x8x32xf32>
    %141 = vector.shape_cast %140 : vector<1x8x32xf32> to vector<8x32xf32>
    %142 = vector.shape_cast %139 : vector<8x32xf32> to vector<1x8x32xf32>
    tpu.vector_store %arg6[%c0_40, %c0_41, %c0_42], %142 {strides = array<i32>} : memref<1x8x32xf32, #tpu.memory_space<vmem>>, vector<1x8x32xf32>,
    return
  }
  func.func @transform_0(%arg0: i32) -> (i32, i32, i32) {
    %c0_i32 = arith.constant 0 : i32
    %c0_i32_0 = arith.constant 0 : i32
    %c0_i32_1 = arith.constant 0 : i32
    return %arg0, %c0_i32, %c0_i32_0 : i32, i32, i32
  }
  func.func @transform_1(%arg0: i32) -> (i32, i32) {
    %c0_i32 = arith.constant 0 : i32
    %c0_i32_0 = arith.constant 0 : i32
    %c0_i32_1 = arith.constant 0 : i32
    return %c0_i32, %c0_i32_0 : i32, i32
  }
  func.func @transform_2(%arg0: i32) -> (i32, i32) {
    %c0_i32 = arith.constant 0 : i32
    %c0_i32_0 = arith.constant 0 : i32
    %c0_i32_1 = arith.constant 0 : i32
    return %c0_i32, %c0_i32_0 : i32, i32
  }
  func.func @transform_3(%arg0: i32) -> (i32, i32) {
    %c0_i32 = arith.constant 0 : i32
    %c0_i32_0 = arith.constant 0 : i32
    %c0_i32_1 = arith.constant 0 : i32
    return %c0_i32, %c0_i32_0 : i32, i32
  }
  func.func @transform_4(%arg0: i32) -> (i32, i32) {
    %c0_i32 = arith.constant 0 : i32
    %c0_i32_0 = arith.constant 0 : i32
    %c0_i32_1 = arith.constant 0 : i32
    return %c0_i32, %c0_i32_0 : i32, i32
  }
  func.func @transform_5(%arg0: i32) -> (i32, i32, i32) {
    %c0_i32 = arith.constant 0 : i32
    %c0_i32_0 = arith.constant 0 : i32
    %c0_i32_1 = arith.constant 0 : i32
    return %arg0, %c0_i32, %c0_i32_0 : i32, i32, i32
  }
}

module attributes {stable_mosaic.version = 11 : i64} {
  func.func @_cross_attn_ln_kernel(%arg0: i32, %arg1: memref<1x8x32xf32, #tpu.memory_space<vmem>>, %arg2: memref<1x8x32xf32, #tpu.memory_space<vmem>>, %arg3: memref<32x96xf32, #tpu.memory_space<vmem>>, %arg4: memref<32x32xf32, #tpu.memory_space<vmem>>, %arg5: memref<1x32xf32, #tpu.memory_space<vmem>>, %arg6: memref<1x32xf32, #tpu.memory_space<vmem>>, %arg7: memref<1x8x32xf32, #tpu.memory_space<vmem>>) attributes {dimension_semantics = [#tpu.dimension_semantics<parallel>], iteration_bounds = array<i64: 2>, scalar_prefetch = 0 : i64, scratch_operands = 0 : i64, tpu.core_type = #tpu.core_type<tc>, window_params = [{transform_indices = @transform_0, window_bounds = array<i64: 1, 8, 32>}, {transform_indices = @transform_1, window_bounds = array<i64: 1, 8, 32>}, {pipeline_mode = #tpu.pipeline_mode<synchronous>, transform_indices = @transform_2, window_bounds = array<i64: 32, 96>}, {pipeline_mode = #tpu.pipeline_mode<synchronous>, transform_indices = @transform_3, window_bounds = array<i64: 32, 32>}, {pipeline_mode = #tpu.pipeline_mode<synchronous>, transform_indices = @transform_4, window_bounds = array<i64: 1, 32>}, {pipeline_mode = #tpu.pipeline_mode<synchronous>, transform_indices = @transform_5, window_bounds = array<i64: 1, 32>}, {transform_indices = @transform_6, window_bounds = array<i64: 1, 8, 32>}]} {
    %c0 = arith.constant 0 : index
    %c0_0 = arith.constant 0 : index
    %c0_1 = arith.constant 0 : index
    %0 = vector.load %arg1[%c0, %c0_0, %c0_1] : memref<1x8x32xf32, #tpu.memory_space<vmem>>, vector<1x8x32xf32>
    %1 = vector.shape_cast %0 : vector<1x8x32xf32> to vector<8x32xf32>
    %c0_2 = arith.constant 0 : index
    %c0_3 = arith.constant 0 : index
    %c0_4 = arith.constant 0 : index
    %2 = vector.load %arg2[%c0_2, %c0_3, %c0_4] : memref<1x8x32xf32, #tpu.memory_space<vmem>>, vector<1x8x32xf32>
    %3 = vector.shape_cast %2 : vector<1x8x32xf32> to vector<8x32xf32>
    %c0_5 = arith.constant 0 : index
    %c0_6 = arith.constant 0 : index
    %4 = vector.load %arg3[%c0_5, %c0_6] : memref<32x96xf32, #tpu.memory_space<vmem>>, vector<32x96xf32>
    %5 = arith.truncf %4 : vector<32x96xf32> to vector<32x96xbf16>
    %6 = arith.truncf %1 : vector<8x32xf32> to vector<8x32xbf16>
    %7 = vector.extract_strided_slice %5 {offsets = [0, 0], sizes = [32, 32], strides = [1, 1]} : vector<32x96xbf16> to vector<32x32xbf16>
    %cst = arith.constant dense<0.000000e+00> : vector<8x32xf32>
    %8 = tpu.matmul %6, %7, %cst {dimension_numbers = #tpu.dot_dimension_numbers<[1], [0], [0], [1], [0, 0, 1, 1], [], []>} : vector<8x32xbf16>, vector<32x32xbf16>, vector<8x32xf32> -> vector<8x32xf32>
    %9 = arith.truncf %3 : vector<8x32xf32> to vector<8x32xbf16>
    %10 = vector.extract_strided_slice %5 {offsets = [0, 32], sizes = [32, 64], strides = [1, 1]} : vector<32x96xbf16> to vector<32x64xbf16>
    %cst_7 = arith.constant dense<0.000000e+00> : vector<8x64xf32>
    %11 = tpu.matmul %9, %10, %cst_7 {dimension_numbers = #tpu.dot_dimension_numbers<[1], [0], [0], [1], [0, 0, 1, 1], [], []>} : vector<8x32xbf16>, vector<32x64xbf16>, vector<8x64xf32> -> vector<8x64xf32>
    %12 = vector.extract_strided_slice %11 {offsets = [0, 0], sizes = [8, 32], strides = [1, 1]} : vector<8x64xf32> to vector<8x32xf32>
    %13 = vector.extract_strided_slice %11 {offsets = [0, 32], sizes = [8, 32], strides = [1, 1]} : vector<8x64xf32> to vector<8x32xf32>
    %c0_8 = arith.constant 0 : index
    %c0_9 = arith.constant 0 : index
    %14 = vector.load %arg4[%c0_8, %c0_9] : memref<32x32xf32, #tpu.memory_space<vmem>>, vector<32x32xf32>
    %cst_10 = arith.constant 0.000000e+00 : f32
    %15 = vector.broadcast %cst_10 : f32 to vector<8x32xf32>
    %16 = vector.extract_strided_slice %8 {offsets = [0, 0], sizes = [8, 8], strides = [1, 1]} : vector<8x32xf32> to vector<8x8xf32>
    %17 = arith.truncf %16 : vector<8x8xf32> to vector<8x8xbf16>
    %18 = vector.extract_strided_slice %12 {offsets = [0, 0], sizes = [8, 8], strides = [1, 1]} : vector<8x32xf32> to vector<8x8xf32>
    %19 = arith.truncf %18 : vector<8x8xf32> to vector<8x8xbf16>
    %20 = vector.extract_strided_slice %13 {offsets = [0, 0], sizes = [8, 8], strides = [1, 1]} : vector<8x32xf32> to vector<8x8xf32>
    %21 = arith.truncf %20 : vector<8x8xf32> to vector<8x8xbf16>
    %cst_11 = arith.constant dense<0.000000e+00> : vector<8x8xf32>
    %22 = tpu.matmul %17, %19, %cst_11 {dimension_numbers = #tpu.dot_dimension_numbers<[1], [1], [0], [0], [0, 0, 1, 0], [], []>} : vector<8x8xbf16>, vector<8x8xbf16>, vector<8x8xf32> -> vector<8x8xf32>
    %cst_12 = arith.constant 0.353553385 : f32
    %23 = vector.broadcast %cst_12 : f32 to vector<8x8xf32>
    %24 = arith.mulf %22, %23 : vector<8x8xf32>
    %cst_13 = arith.constant dense<0xFF800000> : vector<8xf32>
    %25 = vector.multi_reduction <maximumf>, %24, %cst_13 [1] : vector<8x8xf32> to vector<8xf32>
    %26 = vector.shape_cast %25 : vector<8xf32> to vector<8x1xf32>
    %27 = vector.broadcast %26 : vector<8x1xf32> to vector<8x8xf32>
    %28 = arith.subf %24, %27 : vector<8x8xf32>
    %29 = math.exp %28 : vector<8x8xf32>
    %cst_14 = arith.constant dense<0.000000e+00> : vector<8xf32>
    %30 = vector.multi_reduction <add>, %29, %cst_14 [1] : vector<8x8xf32> to vector<8xf32>
    %31 = vector.shape_cast %30 : vector<8xf32> to vector<8x1xf32>
    %32 = tpu.reciprocal %31 {approx = true} : vector<8x1xf32> -> vector<8x1xf32>
    %33 = vector.broadcast %32 : vector<8x1xf32> to vector<8x8xf32>
    %34 = arith.mulf %29, %33 : vector<8x8xf32>
    %35 = arith.truncf %34 : vector<8x8xf32> to vector<8x8xbf16>
    %cst_15 = arith.constant dense<0.000000e+00> : vector<8x8xf32>
    %36 = tpu.matmul %35, %21, %cst_15 {dimension_numbers = #tpu.dot_dimension_numbers<[1], [0], [0], [1], [0, 0, 1, 1], [], []>} : vector<8x8xbf16>, vector<8x8xbf16>, vector<8x8xf32> -> vector<8x8xf32>
    %37 = vector.extract_strided_slice %14 {offsets = [0, 0], sizes = [8, 32], strides = [1, 1]} : vector<32x32xf32> to vector<8x32xf32>
    %38 = arith.truncf %37 : vector<8x32xf32> to vector<8x32xbf16>
    %39 = arith.truncf %36 : vector<8x8xf32> to vector<8x8xbf16>
    %cst_16 = arith.constant dense<0.000000e+00> : vector<8x32xf32>
    %40 = tpu.matmul %39, %38, %cst_16 {dimension_numbers = #tpu.dot_dimension_numbers<[1], [0], [0], [1], [0, 0, 1, 1], [], []>} : vector<8x8xbf16>, vector<8x32xbf16>, vector<8x32xf32> -> vector<8x32xf32>
    %41 = arith.addf %15, %40 : vector<8x32xf32>
    %42 = vector.extract_strided_slice %8 {offsets = [0, 8], sizes = [8, 8], strides = [1, 1]} : vector<8x32xf32> to vector<8x8xf32>
    %43 = arith.truncf %42 : vector<8x8xf32> to vector<8x8xbf16>
    %44 = vector.extract_strided_slice %12 {offsets = [0, 8], sizes = [8, 8], strides = [1, 1]} : vector<8x32xf32> to vector<8x8xf32>
    %45 = arith.truncf %44 : vector<8x8xf32> to vector<8x8xbf16>
    %46 = vector.extract_strided_slice %13 {offsets = [0, 8], sizes = [8, 8], strides = [1, 1]} : vector<8x32xf32> to vector<8x8xf32>
    %47 = arith.truncf %46 : vector<8x8xf32> to vector<8x8xbf16>
    %cst_17 = arith.constant dense<0.000000e+00> : vector<8x8xf32>
    %48 = tpu.matmul %43, %45, %cst_17 {dimension_numbers = #tpu.dot_dimension_numbers<[1], [1], [0], [0], [0, 0, 1, 0], [], []>} : vector<8x8xbf16>, vector<8x8xbf16>, vector<8x8xf32> -> vector<8x8xf32>
    %cst_18 = arith.constant 0.353553385 : f32
    %49 = vector.broadcast %cst_18 : f32 to vector<8x8xf32>
    %50 = arith.mulf %48, %49 : vector<8x8xf32>
    %cst_19 = arith.constant dense<0xFF800000> : vector<8xf32>
    %51 = vector.multi_reduction <maximumf>, %50, %cst_19 [1] : vector<8x8xf32> to vector<8xf32>
    %52 = vector.shape_cast %51 : vector<8xf32> to vector<8x1xf32>
    %53 = vector.broadcast %52 : vector<8x1xf32> to vector<8x8xf32>
    %54 = arith.subf %50, %53 : vector<8x8xf32>
    %55 = math.exp %54 : vector<8x8xf32>
    %cst_20 = arith.constant dense<0.000000e+00> : vector<8xf32>
    %56 = vector.multi_reduction <add>, %55, %cst_20 [1] : vector<8x8xf32> to vector<8xf32>
    %57 = vector.shape_cast %56 : vector<8xf32> to vector<8x1xf32>
    %58 = tpu.reciprocal %57 {approx = true} : vector<8x1xf32> -> vector<8x1xf32>
    %59 = vector.broadcast %58 : vector<8x1xf32> to vector<8x8xf32>
    %60 = arith.mulf %55, %59 : vector<8x8xf32>
    %61 = arith.truncf %60 : vector<8x8xf32> to vector<8x8xbf16>
    %cst_21 = arith.constant dense<0.000000e+00> : vector<8x8xf32>
    %62 = tpu.matmul %61, %47, %cst_21 {dimension_numbers = #tpu.dot_dimension_numbers<[1], [0], [0], [1], [0, 0, 1, 1], [], []>} : vector<8x8xbf16>, vector<8x8xbf16>, vector<8x8xf32> -> vector<8x8xf32>
    %63 = vector.extract_strided_slice %14 {offsets = [8, 0], sizes = [8, 32], strides = [1, 1]} : vector<32x32xf32> to vector<8x32xf32>
    %64 = arith.truncf %63 : vector<8x32xf32> to vector<8x32xbf16>
    %65 = arith.truncf %62 : vector<8x8xf32> to vector<8x8xbf16>
    %cst_22 = arith.constant dense<0.000000e+00> : vector<8x32xf32>
    %66 = tpu.matmul %65, %64, %cst_22 {dimension_numbers = #tpu.dot_dimension_numbers<[1], [0], [0], [1], [0, 0, 1, 1], [], []>} : vector<8x8xbf16>, vector<8x32xbf16>, vector<8x32xf32> -> vector<8x32xf32>
    %67 = arith.addf %41, %66 : vector<8x32xf32>
    %68 = vector.extract_strided_slice %8 {offsets = [0, 16], sizes = [8, 8], strides = [1, 1]} : vector<8x32xf32> to vector<8x8xf32>
    %69 = arith.truncf %68 : vector<8x8xf32> to vector<8x8xbf16>
    %70 = vector.extract_strided_slice %12 {offsets = [0, 16], sizes = [8, 8], strides = [1, 1]} : vector<8x32xf32> to vector<8x8xf32>
    %71 = arith.truncf %70 : vector<8x8xf32> to vector<8x8xbf16>
    %72 = vector.extract_strided_slice %13 {offsets = [0, 16], sizes = [8, 8], strides = [1, 1]} : vector<8x32xf32> to vector<8x8xf32>
    %73 = arith.truncf %72 : vector<8x8xf32> to vector<8x8xbf16>
    %cst_23 = arith.constant dense<0.000000e+00> : vector<8x8xf32>
    %74 = tpu.matmul %69, %71, %cst_23 {dimension_numbers = #tpu.dot_dimension_numbers<[1], [1], [0], [0], [0, 0, 1, 0], [], []>} : vector<8x8xbf16>, vector<8x8xbf16>, vector<8x8xf32> -> vector<8x8xf32>
    %cst_24 = arith.constant 0.353553385 : f32
    %75 = vector.broadcast %cst_24 : f32 to vector<8x8xf32>
    %76 = arith.mulf %74, %75 : vector<8x8xf32>
    %cst_25 = arith.constant dense<0xFF800000> : vector<8xf32>
    %77 = vector.multi_reduction <maximumf>, %76, %cst_25 [1] : vector<8x8xf32> to vector<8xf32>
    %78 = vector.shape_cast %77 : vector<8xf32> to vector<8x1xf32>
    %79 = vector.broadcast %78 : vector<8x1xf32> to vector<8x8xf32>
    %80 = arith.subf %76, %79 : vector<8x8xf32>
    %81 = math.exp %80 : vector<8x8xf32>
    %cst_26 = arith.constant dense<0.000000e+00> : vector<8xf32>
    %82 = vector.multi_reduction <add>, %81, %cst_26 [1] : vector<8x8xf32> to vector<8xf32>
    %83 = vector.shape_cast %82 : vector<8xf32> to vector<8x1xf32>
    %84 = tpu.reciprocal %83 {approx = true} : vector<8x1xf32> -> vector<8x1xf32>
    %85 = vector.broadcast %84 : vector<8x1xf32> to vector<8x8xf32>
    %86 = arith.mulf %81, %85 : vector<8x8xf32>
    %87 = arith.truncf %86 : vector<8x8xf32> to vector<8x8xbf16>
    %cst_27 = arith.constant dense<0.000000e+00> : vector<8x8xf32>
    %88 = tpu.matmul %87, %73, %cst_27 {dimension_numbers = #tpu.dot_dimension_numbers<[1], [0], [0], [1], [0, 0, 1, 1], [], []>} : vector<8x8xbf16>, vector<8x8xbf16>, vector<8x8xf32> -> vector<8x8xf32>
    %89 = vector.extract_strided_slice %14 {offsets = [16, 0], sizes = [8, 32], strides = [1, 1]} : vector<32x32xf32> to vector<8x32xf32>
    %90 = arith.truncf %89 : vector<8x32xf32> to vector<8x32xbf16>
    %91 = arith.truncf %88 : vector<8x8xf32> to vector<8x8xbf16>
    %cst_28 = arith.constant dense<0.000000e+00> : vector<8x32xf32>
    %92 = tpu.matmul %91, %90, %cst_28 {dimension_numbers = #tpu.dot_dimension_numbers<[1], [0], [0], [1], [0, 0, 1, 1], [], []>} : vector<8x8xbf16>, vector<8x32xbf16>, vector<8x32xf32> -> vector<8x32xf32>
    %93 = arith.addf %67, %92 : vector<8x32xf32>
    %94 = vector.extract_strided_slice %8 {offsets = [0, 24], sizes = [8, 8], strides = [1, 1]} : vector<8x32xf32> to vector<8x8xf32>
    %95 = arith.truncf %94 : vector<8x8xf32> to vector<8x8xbf16>
    %96 = vector.extract_strided_slice %12 {offsets = [0, 24], sizes = [8, 8], strides = [1, 1]} : vector<8x32xf32> to vector<8x8xf32>
    %97 = arith.truncf %96 : vector<8x8xf32> to vector<8x8xbf16>
    %98 = vector.extract_strided_slice %13 {offsets = [0, 24], sizes = [8, 8], strides = [1, 1]} : vector<8x32xf32> to vector<8x8xf32>
    %99 = arith.truncf %98 : vector<8x8xf32> to vector<8x8xbf16>
    %cst_29 = arith.constant dense<0.000000e+00> : vector<8x8xf32>
    %100 = tpu.matmul %95, %97, %cst_29 {dimension_numbers = #tpu.dot_dimension_numbers<[1], [1], [0], [0], [0, 0, 1, 0], [], []>} : vector<8x8xbf16>, vector<8x8xbf16>, vector<8x8xf32> -> vector<8x8xf32>
    %cst_30 = arith.constant 0.353553385 : f32
    %101 = vector.broadcast %cst_30 : f32 to vector<8x8xf32>
    %102 = arith.mulf %100, %101 : vector<8x8xf32>
    %cst_31 = arith.constant dense<0xFF800000> : vector<8xf32>
    %103 = vector.multi_reduction <maximumf>, %102, %cst_31 [1] : vector<8x8xf32> to vector<8xf32>
    %104 = vector.shape_cast %103 : vector<8xf32> to vector<8x1xf32>
    %105 = vector.broadcast %104 : vector<8x1xf32> to vector<8x8xf32>
    %106 = arith.subf %102, %105 : vector<8x8xf32>
    %107 = math.exp %106 : vector<8x8xf32>
    %cst_32 = arith.constant dense<0.000000e+00> : vector<8xf32>
    %108 = vector.multi_reduction <add>, %107, %cst_32 [1] : vector<8x8xf32> to vector<8xf32>
    %109 = vector.shape_cast %108 : vector<8xf32> to vector<8x1xf32>
    %110 = tpu.reciprocal %109 {approx = true} : vector<8x1xf32> -> vector<8x1xf32>
    %111 = vector.broadcast %110 : vector<8x1xf32> to vector<8x8xf32>
    %112 = arith.mulf %107, %111 : vector<8x8xf32>
    %113 = arith.truncf %112 : vector<8x8xf32> to vector<8x8xbf16>
    %cst_33 = arith.constant dense<0.000000e+00> : vector<8x8xf32>
    %114 = tpu.matmul %113, %99, %cst_33 {dimension_numbers = #tpu.dot_dimension_numbers<[1], [0], [0], [1], [0, 0, 1, 1], [], []>} : vector<8x8xbf16>, vector<8x8xbf16>, vector<8x8xf32> -> vector<8x8xf32>
    %115 = vector.extract_strided_slice %14 {offsets = [24, 0], sizes = [8, 32], strides = [1, 1]} : vector<32x32xf32> to vector<8x32xf32>
    %116 = arith.truncf %115 : vector<8x32xf32> to vector<8x32xbf16>
    %117 = arith.truncf %114 : vector<8x8xf32> to vector<8x8xbf16>
    %cst_34 = arith.constant dense<0.000000e+00> : vector<8x32xf32>
    %118 = tpu.matmul %117, %116, %cst_34 {dimension_numbers = #tpu.dot_dimension_numbers<[1], [0], [0], [1], [0, 0, 1, 1], [], []>} : vector<8x8xbf16>, vector<8x32xbf16>, vector<8x32xf32> -> vector<8x32xf32>
    %119 = arith.addf %93, %118 : vector<8x32xf32>
    %120 = arith.addf %1, %119 : vector<8x32xf32>
    %cst_35 = arith.constant dense<0.000000e+00> : vector<8xf32>
    %121 = vector.multi_reduction <add>, %120, %cst_35 [1] : vector<8x32xf32> to vector<8xf32>
    %122 = vector.shape_cast %121 : vector<8xf32> to vector<8x1xf32>
    %cst_36 = arith.constant 3.200000e+01 : f32
    %123 = vector.broadcast %cst_36 : f32 to vector<8x1xf32>
    %124 = arith.divf %122, %123 : vector<8x1xf32>
    %125 = vector.broadcast %124 : vector<8x1xf32> to vector<8x32xf32>
    %126 = arith.subf %120, %125 : vector<8x32xf32>
    %127 = arith.mulf %126, %126 : vector<8x32xf32>
    %cst_37 = arith.constant dense<0.000000e+00> : vector<8xf32>
    %128 = vector.multi_reduction <add>, %127, %cst_37 [1] : vector<8x32xf32> to vector<8xf32>
    %129 = vector.shape_cast %128 : vector<8xf32> to vector<8x1xf32>
    %cst_38 = arith.constant 3.200000e+01 : f32
    %130 = vector.broadcast %cst_38 : f32 to vector<8x1xf32>
    %131 = arith.divf %129, %130 : vector<8x1xf32>
    %132 = vector.broadcast %124 : vector<8x1xf32> to vector<8x32xf32>
    %133 = arith.subf %120, %132 : vector<8x32xf32>
    %cst_39 = arith.constant 9.99999974E-6 : f32
    %134 = vector.broadcast %cst_39 : f32 to vector<8x1xf32>
    %135 = arith.addf %131, %134 : vector<8x1xf32>
    %136 = math.rsqrt %135 : vector<8x1xf32>
    %137 = vector.broadcast %136 : vector<8x1xf32> to vector<8x32xf32>
    %138 = arith.mulf %133, %137 : vector<8x32xf32>
    %c0_40 = arith.constant 0 : index
    %c0_41 = arith.constant 0 : index
    %139 = vector.load %arg5[%c0_40, %c0_41] : memref<1x32xf32, #tpu.memory_space<vmem>>, vector<1x32xf32>
    %140 = vector.broadcast %139 : vector<1x32xf32> to vector<8x32xf32>
    %141 = arith.mulf %138, %140 : vector<8x32xf32>
    %c0_42 = arith.constant 0 : index
    %c0_43 = arith.constant 0 : index
    %142 = vector.load %arg6[%c0_42, %c0_43] : memref<1x32xf32, #tpu.memory_space<vmem>>, vector<1x32xf32>
    %143 = vector.broadcast %142 : vector<1x32xf32> to vector<8x32xf32>
    %144 = arith.addf %141, %143 : vector<8x32xf32>
    %c0_44 = arith.constant 0 : index
    %c0_45 = arith.constant 0 : index
    %c0_46 = arith.constant 0 : index
    %145 = vector.load %arg7[%c0_44, %c0_45, %c0_46] : memref<1x8x32xf32, #tpu.memory_space<vmem>>, vector<1x8x32xf32>
    %146 = vector.shape_cast %145 : vector<1x8x32xf32> to vector<8x32xf32>
    %147 = vector.shape_cast %144 : vector<8x32xf32> to vector<1x8x32xf32>
    tpu.vector_store %arg7[%c0_44, %c0_45, %c0_46], %147 {strides = array<i32>} : memref<1x8x32xf32, #tpu.memory_space<vmem>>, vector<1x8x32xf32>,
    return
  }
  func.func @transform_0(%arg0: i32) -> (i32, i32, i32) {
    %c0_i32 = arith.constant 0 : i32
    %c0_i32_0 = arith.constant 0 : i32
    %c0_i32_1 = arith.constant 0 : i32
    return %arg0, %c0_i32, %c0_i32_0 : i32, i32, i32
  }
  func.func @transform_1(%arg0: i32) -> (i32, i32, i32) {
    %c0_i32 = arith.constant 0 : i32
    %c0_i32_0 = arith.constant 0 : i32
    %c0_i32_1 = arith.constant 0 : i32
    return %arg0, %c0_i32, %c0_i32_0 : i32, i32, i32
  }
  func.func @transform_2(%arg0: i32) -> (i32, i32) {
    %c0_i32 = arith.constant 0 : i32
    %c0_i32_0 = arith.constant 0 : i32
    %c0_i32_1 = arith.constant 0 : i32
    return %c0_i32, %c0_i32_0 : i32, i32
  }
  func.func @transform_3(%arg0: i32) -> (i32, i32) {
    %c0_i32 = arith.constant 0 : i32
    %c0_i32_0 = arith.constant 0 : i32
    %c0_i32_1 = arith.constant 0 : i32
    return %c0_i32, %c0_i32_0 : i32, i32
  }
  func.func @transform_4(%arg0: i32) -> (i32, i32) {
    %c0_i32 = arith.constant 0 : i32
    %c0_i32_0 = arith.constant 0 : i32
    %c0_i32_1 = arith.constant 0 : i32
    return %c0_i32, %c0_i32_0 : i32, i32
  }
  func.func @transform_5(%arg0: i32) -> (i32, i32) {
    %c0_i32 = arith.constant 0 : i32
    %c0_i32_0 = arith.constant 0 : i32
    %c0_i32_1 = arith.constant 0 : i32
    return %c0_i32, %c0_i32_0 : i32, i32
  }
  func.func @transform_6(%arg0: i32) -> (i32, i32, i32) {
    %c0_i32 = arith.constant 0 : i32
    %c0_i32_0 = arith.constant 0 : i32
    %c0_i32_1 = arith.constant 0 : i32
    return %arg0, %c0_i32, %c0_i32_0 : i32, i32, i32
  }
}

module attributes {stable_mosaic.version = 11 : i64} {
  func.func @_proj_kernel(%arg0: i32, %arg1: memref<1x8x32xf32, #tpu.memory_space<vmem>>, %arg2: memref<32x16xf32, #tpu.memory_space<vmem>>, %arg3: memref<1x8x16xf32, #tpu.memory_space<vmem>>) attributes {dimension_semantics = [#tpu.dimension_semantics<parallel>], iteration_bounds = array<i64: 2>, scalar_prefetch = 0 : i64, scratch_operands = 0 : i64, tpu.core_type = #tpu.core_type<tc>, window_params = [{transform_indices = @transform_0, window_bounds = array<i64: 1, 8, 32>}, {pipeline_mode = #tpu.pipeline_mode<synchronous>, transform_indices = @transform_1, window_bounds = array<i64: 32, 16>}, {transform_indices = @transform_2, window_bounds = array<i64: 1, 8, 16>}]} {
    %c0 = arith.constant 0 : index
    %c0_0 = arith.constant 0 : index
    %c0_1 = arith.constant 0 : index
    %0 = vector.load %arg1[%c0, %c0_0, %c0_1] : memref<1x8x32xf32, #tpu.memory_space<vmem>>, vector<1x8x32xf32>
    %1 = vector.shape_cast %0 : vector<1x8x32xf32> to vector<8x32xf32>
    %2 = arith.truncf %1 : vector<8x32xf32> to vector<8x32xbf16>
    %c0_2 = arith.constant 0 : index
    %c0_3 = arith.constant 0 : index
    %3 = vector.load %arg2[%c0_2, %c0_3] : memref<32x16xf32, #tpu.memory_space<vmem>>, vector<32x16xf32>
    %4 = arith.truncf %3 : vector<32x16xf32> to vector<32x16xbf16>
    %cst = arith.constant dense<0.000000e+00> : vector<8x16xf32>
    %5 = tpu.matmul %2, %4, %cst {dimension_numbers = #tpu.dot_dimension_numbers<[1], [0], [0], [1], [0, 0, 1, 1], [], []>} : vector<8x32xbf16>, vector<32x16xbf16>, vector<8x16xf32> -> vector<8x16xf32>
    %c0_4 = arith.constant 0 : index
    %c0_5 = arith.constant 0 : index
    %c0_6 = arith.constant 0 : index
    %6 = vector.load %arg3[%c0_4, %c0_5, %c0_6] : memref<1x8x16xf32, #tpu.memory_space<vmem>>, vector<1x8x16xf32>
    %7 = vector.shape_cast %6 : vector<1x8x16xf32> to vector<8x16xf32>
    %8 = vector.shape_cast %5 : vector<8x16xf32> to vector<1x8x16xf32>
    tpu.vector_store %arg3[%c0_4, %c0_5, %c0_6], %8 {strides = array<i32>} : memref<1x8x16xf32, #tpu.memory_space<vmem>>, vector<1x8x16xf32>,
    return
  }
  func.func @transform_0(%arg0: i32) -> (i32, i32, i32) {
    %c0_i32 = arith.constant 0 : i32
    %c0_i32_0 = arith.constant 0 : i32
    %c0_i32_1 = arith.constant 0 : i32
    return %arg0, %c0_i32, %c0_i32_0 : i32, i32, i32
  }
  func.func @transform_1(%arg0: i32) -> (i32, i32) {
    %c0_i32 = arith.constant 0 : i32
    %c0_i32_0 = arith.constant 0 : i32
    %c0_i32_1 = arith.constant 0 : i32
    return %c0_i32, %c0_i32_0 : i32, i32
  }
  func.func @transform_2(%arg0: i32) -> (i32, i32, i32) {
    %c0_i32 = arith.constant 0 : i32
    %c0_i32_0 = arith.constant 0 : i32
    %c0_i32_1 = arith.constant 0 : i32
    return %arg0, %c0_i32, %c0_i32_0 : i32, i32, i32
  }
}

</mosaic_0001>

<bundles_post_ra>
// kernel: transformer_forward.12
= control target key start
LH: loop header
LB: loop body
LE: loop exit
PB: predicated region body
PF: predicated region fallthrough
CT: control target
= control target key end

     0   :  { %s510_s24 = smov 0   ;;  %s586_s0 = inlined_call_operand.vmem [shape: f32[2,8,32], index: 0, kind: input, shape index: {}]   ;;  %s587_s1 = inlined_call_operand.vmem [shape: f32[32,64], index: 1, kind: input, shape index: {}]   ;;  %s588_s2 = inlined_call_operand.vmem [shape: f32[1,64], index: 2, kind: input, shape index: {}]   ;;  %s589_s3 = inlined_call_operand.vmem [shape: f32[64,32], index: 3, kind: input, shape index: {}]   ;;  %s590_s4 = inlined_call_operand.vmem [shape: f32[1,32], index: 4, kind: input, shape index: {}]   ;;  %s591_s5 = inlined_call_operand.vmem [shape: f32[1,32], index: 5, kind: input, shape index: {}]   ;;  %s592_s6 = inlined_call_operand.vmem [shape: f32[1,32], index: 6, kind: input, shape index: {}]   ;;  %s593_s7 = inlined_call_operand.vmem [shape: f32[2,8,32], index: 7, kind: output, shape index: {}]  }
   0x1 LB: > { %s433_s25 = sadd.s32 4294967295, %s467_s24   ;;  %p437_p0 = scmp.ge.s32.totalorder %s467_s24, 1  ;;  %s467_s24 = sphi %s510_s24, %s17_s24  }
   0x2   : > { %p236_p1 = scmp.lt.s32.totalorder %s467_s24, 3 }
   0x4   : > { %p237_p2 = pnand %p437_p0, %p236_p1 }
   0x5   : > { %p266_p3 = scmp.lt.s32.totalorder (!%p237_p2), %s433_s25, 1 }
   0x6   : > { %240 = sbr.rel (%p237_p2) target bundleno = 552 (0x228), region = 48 }
   0xb   : > { %v279_v0 = vld [vmem:[%s587_s1 + $0x10] sm:$0xff]  ;;  %v280_v1 = vld [vmem:[%s587_s1 + $0x18] sm:$0xff]  ;;  %v277_v2 = vld [vmem:[%s587_s1] sm:$0xff]  ;;  %s595_s25 = smov (!%p266_p3, %s433_s25), 1  ;;  %vm287_vm0 = vcmask 261120   ;;  %vm322_vm1 = vcmask 523264  }
   0xc   : > { %v282_v3 = vpack.c.bf16 %v280_v1, %v279_v0  ;;  %v278_v4 = vld [vmem:[%s587_s1 + $0x8] sm:$0xff]  ;;  %v312_v5 = vld [vmem:[%s589_s3 + $0x30] sm:$0xff]  ;;  %v313_v6 = vld [vmem:[%s589_s3 + $0x38] sm:$0xff]  ;;  %s438_s19 = sshll.u32 %s595_s25, 3  ;;  %v469_v32 = vmov 32.0  }
   0xd   : > { %v317_v7 = vpack.c.bf16 %v313_v6, %v312_v5  ;;  %v310_v8 = vld [vmem:[%s589_s3 + $0x20] sm:$0xff]  ;;  %v311_v9 = vld [vmem:[%s589_s3 + $0x28] sm:$0xff]  ;;  %v281_v10 = vpack.c.bf16 %v278_v4, %v277_v2  ;;  %s269_s22 = scalar_lea.vmem %s586_s0, %s438_s19  ;;  %v308_v14 = vld [vmem:[%s589_s3 + $0x10] sm:$0xff]  ;;  %457 = vrcp.f32 %v469_v32  ;;  %s273_s21 = scalar_lea.vmem %s593_s7, %s438_s19 }
   0xe   : > { %297 = vmatpush.bf16.msra.mxu0 %v282_v3  ;;  %v316_v11 = vpack.c.bf16 %v311_v9, %v310_v8  ;;  %v275_v12 = vld [vmem:[%s269_s22] sm:$0xff]  ;;  %v309_v15 = vld [vmem:[%s589_s3 + $0x18] sm:$0xff]  ;;  %v307_v18 = vld [vmem:[%s589_s3 + $0x8] sm:$0xff] }
   0xf   : > { %330 = vmatpush.bf16.msra.mxu1 %v317_v7  ;;  %v276_v13 = vpack.c.bf16 %v275_v12, %v275_v12  ;;  %v315_v16 = vpack.c.bf16 %v309_v15, %v308_v14  ;;  %v306_v17 = vld [vmem:[%s589_s3] sm:$0xff] }
  0x10   : > { %v314_v19 = vpack.c.bf16 %v307_v18, %v306_v17  ;;  %v453_v20 = vld [vmem:[%s588_s2] ss:$0 sm:$0xff] }
  0x11   : > { %v454_v26 = vld [vmem:[%s590_s4] ss:$0 sm:$0xff] }
  0x12   : > { %298 = vmatpush.bf16.msra.mxu0 %v281_v10  ;;  %v455_v53 = vld [vmem:[%s591_s5] ss:$0 sm:$0xff] }
  0x13   : > { %331 = vmatpush.bf16.msra.mxu1 %v316_v11  ;;  %v458_v33 = vpop.eup %457  ;;  %v456_v55 = vld [vmem:[%s592_s6] ss:$0 sm:$0xff] }
  0x14   : > { %v344_v34 = vmul.f32 32.0, %v458_v33  ;;  %vm348_vm2 = vweird.f32 %v458_v33 }
  0x15   : > { %440 = vmatmul.msk.bf16.vlgmr.msra.gmra.mxu0 %vm287_vm0, %v276_v13 }
  0x16   : > { %v345_v35 = vsub.f32 1.0, %v344_v34 }
  0x17   : > { %332 = vmatpush.bf16.msra.mxu1 %v315_v16 }
  0x18   : > { %v346_v36 = vmul.f32 %v458_v33, %v345_v35 }
  0x1a   : > { %v347_v37 = vadd.f32 %v458_v33, %v346_v36 }
  0x1b   : > { %333 = vmatpush.bf16.msra.mxu1 %v314_v19 }
  0x1c   : > { %v349_v38 = vsel %vm348_vm2, %v458_v33, %v347_v37 }
  0x92   : > { %v300_v21 = vpop.f32.mrf.mxu0 }
  0x93   : > { %v301_v22 = vadd.f32 %v453_v20, %v300_v21 }
  0x95   : > { %v304_v23 = vmax.f32 %v301_v22, 0.0 }
  0x97   : > { %v305_v24 = vpack.c.bf16 %v304_v23, %v304_v23 }
  0x99   : > { %441 = vmatmul.msk.bf16.vlgmr.msra.gmra.mxu1 %vm322_vm1, %v305_v24 }
  0x9a   : > { %v302_v25 = vpop.f32.mrf.mxu0 }
 0x116   : > { %v335_v27 = vpop.f32.mrf.mxu1 }
 0x117   : > { %v336_v28 = vadd.f32 %v454_v26, %v335_v27 }
 0x119   : > { %v339_v29 = vadd.f32 %v336_v28, %v275_v12 }
 0x11b   : > { %v340_v30 = vsel %vm287_vm0, %v339_v29, 0.0 }
 0x11c   : > { %341 = vadd.xlane.f32.xlu0 %v340_v30 }
 0x11e   : > { %v337_v31 = vpop.f32.mrf.mxu1 }
 0x18f   : > { %v342_v39 = vpop.xlane.xlu0 %341 }
 0x190   : > { %v350_v40 = vmul.f32 %v349_v38, %v342_v39 }
 0x192   : > { %v351_v41 = vsub.f32 %v339_v29, %v350_v40 }
 0x194   : > { %v352_v42 = vmul.f32 %v351_v41, %v351_v41 }
 0x196   : > { %v353_v43 = vsel %vm287_vm0, %v352_v42, 0.0 }
 0x197   : > { %354 = vadd.xlane.f32.xlu0 %v353_v43 }
 0x20a   : > { %v355_v44 = vpop.xlane.xlu0 %354 }
 0x20b   : > { %v356_v45 = vmul.f32 %v355_v44, %v349_v38 }
 0x20d   : > { %v357_v46 = vadd.f32 1e-05, %v356_v45 }
 0x20f   : > { %459 = vrsqrt.f32 %v357_v46  ;;  %vm364_vm4 = vweird.f32 %v357_v46 }
 0x215   : > { %v460_v47 = vpop.eup %459 }
 0x216   : > { %v359_v48 = vmul.f32 %v460_v47, %v357_v46  ;;  %vm365_vm3 = vweird.f32 %v460_v47 }
 0x217   : > { %vm366_vm5 = vmor %vm364_vm4, %vm365_vm3 }
 0x218   : > { %v360_v49 = vmul.f32 %v460_v47, %v359_v48 }
 0x21a   : > { %v361_v50 = vmul.f32 0.5, %v360_v49 }
 0x21c   : > { %v362_v51 = vsub.f32 1.5, %v361_v50 }
 0x21e   : > { %v363_v52 = vmul.f32 %v460_v47, %v362_v51 }
 0x220   : > { %v367_v54 = vsel %vm366_vm5, %v460_v47, %v363_v52 }
 0x221   : > { %v368_v56 = vmul.f32 %v367_v54, %v351_v41 }
 0x223   : > { %v373_v57 = vmul.f32 %v455_v53, %v368_v56 }
 0x225   : > { %v378_v58 = vadd.f32 %v456_v55, %v373_v57 }
 0x227   : > { %379 = vst.msk [vmem:[%s273_s21] sm:$0xff] %vm287_vm0, %v378_v58 }
 0x228 PF: > { %s17_s24 = sadd.s32 1, %s467_s24  }
 0x229   : > { %p14_p4 = scmp.ge.s32.totalorder %s17_s24, 4  }
 0x22b   :  { %16 = sbr.rel (!%p14_p4) target bundleno = 1 (0x1), region = 78 }

// kernel: transformer_forward.15
= control target key start
LH: loop header
LB: loop body
LE: loop exit
PB: predicated region body
PF: predicated region fallthrough
CT: control target
= control target key end

     0   :  { %s786_s18 = smov 0   ;;  %s905_s0 = inlined_call_operand.vmem [shape: f32[2,8,32], index: 0, kind: input, shape index: {}]   ;;  %s906_s1 = inlined_call_operand.vmem [shape: f32[32,96], index: 1, kind: input, shape index: {}]   ;;  %s907_s2 = inlined_call_operand.vmem [shape: f32[32,32], index: 2, kind: input, shape index: {}]   ;;  %s908_s3 = inlined_call_operand.vmem [shape: f32[1,32], index: 3, kind: input, shape index: {}]   ;;  %s909_s4 = inlined_call_operand.vmem [shape: f32[1,32], index: 4, kind: input, shape index: {}]   ;;  %s910_s5 = inlined_call_operand.vmem [shape: f32[2,8,32], index: 5, kind: output, shape index: {}]  }
   0x1 LB: > { %s670_s19 = sadd.s32 4294967295, %s741_s18   ;;  %p674_p0 = scmp.ge.s32.totalorder %s741_s18, 1  ;;  %s741_s18 = sphi %s786_s18, %s15_s18  }
   0x2   : > { %p186_p1 = scmp.lt.s32.totalorder %s741_s18, 3 }
   0x4   : > { %p187_p2 = pnand %p674_p0, %p186_p1 }
   0x5   : > { %p212_p3 = scmp.lt.s32.totalorder (!%p187_p2), %s670_s19, 1  ;;  %s743_s7 = smov (!%p187_p2), 88  }
   0x6   : > { %190 = sbr.rel (%p187_p2) target bundleno = 1750 (0x6d6), region = 40  ;;  %s744_s8 = smov (!%p187_p2), 96  }
   0x7   : > { %s745_s9 = smov (!%p187_p2), 120   ;;  %s746_s10 = smov (!%p187_p2), 80  }
   0x8   : > { %s747_s11 = smov (!%p187_p2), 72   ;;  %s748_s12 = smov (!%p187_p2), 112  }
   0x9   : > { %s750_s15 = smov (!%p187_p2), 56   ;;  %s751_s16 = smov (!%p187_p2), 40  }
   0xa   : > { %s752_s17 = smov (!%p187_p2), 64   ;;  %s753_s20 = smov (!%p187_p2), 104  }
   0xb   : > { %v225_v0 = vld [vmem:[%s906_s1 + $0x10] sm:$0xff]  ;;  %v226_v1 = vld [vmem:[%s906_s1 + $0x18] sm:$0xff]  ;;  %v223_v2 = vld [vmem:[%s906_s1] sm:$0xff]  ;;  %s912_s19 = smov (!%p212_p3, %s670_s19), 1  ;;  %vm229_vm0 = vcmask 261120   ;;  %vm260_vm1 = vcmask 64512   ;;  %v246_v24 = vlaneseq }
   0xc   : > { %v228_v3 = vpack.c.bf16 %v226_v1, %v225_v0  ;;  %v224_v4 = vld [vmem:[%s906_s1 + $0x8] sm:$0xff]  ;;  %s675_s28 = sshll.u32 %s912_s19, 3  ;;  %v252_v16 = vld [vmem:[%s907_s2] sm:$0xff]  ;;  %vm299_vm2 = vcmask 1043456   ;;  %v749_v28 = vmov -1e+08  }
   0xd   : > { %v227_v5 = vpack.c.bf16 %v224_v4, %v223_v2  ;;  %s215_s6 = scalar_lea.vmem %s905_s0, %s675_s28  ;;  %v316_v17 = vpack.c.bf16 %v252_v16, %v252_v16  ;;  %v247_v25 = vshrl.u32 %v246_v24, 7  ;;  %v249_v26 = vand.u32 127, %v246_v24  ;;  %s754_s23 = smov 48  }
   0xe   : > { %239 = vmatpush.bf16.msra.mxu0 %v228_v3  ;;  %v814_v6 = vld [vmem:[%s215_s6] sm:$0xff] }
   0xf   : > { %v222_v7 = vpack.c.bf16 %v814_v6, %v814_v6  ;;  %v401_v20 = vsel %vm299_vm2, %v316_v17, 0  ;;  %vm250_vm3 = vcmp.le.s32.totalorder %v249_v26, %v247_v25 }
  0x10   : > { %v839_v29 = vsel %vm250_vm3, 0.0, %v749_v28 }
  0x12   : > { %240 = vmatpush.bf16.msra.mxu0 %v227_v5  ;;  %v253_v5 = vld [vmem:[%s907_s2 + $0x8] sm:$0xff] }
  0x15   : > { %677 = vmatmul.msk.bf16.vlgmr.msra.gmra.mxu0 %vm229_vm0, %v222_v7  ;;  %v376_v7 = vpack.c.bf16 %v253_v5, %v253_v5 }
  0x92   : > { %v242_v8 = vpop.f32.mrf.mxu0 }
  0x93   : > { %v819_v9 = vpack.c.bf16 %v242_v8, %v242_v8  ;;  %v382_v8 = vsel %vm299_vm2, %v376_v7, 0 }
  0x94   : > { %391 = vmatpush.bf16.msrb.mxu0 %v382_v8 }
  0x95   : > { %320 = vrot.lane.b32.xlu2 %v819_v9, %s743_s7  ;;  %258 = vrot.lane.b32.xlu0 %v819_v9, %s744_s8 }
  0x9a   : > { %v244_v10 = vpop.f32.mrf.mxu0 }
  0x9d   : > { %318 = vrot.lane.b32.xlu2 %v819_v9, %s745_s9 }
  0xa5   : > { %418 = vrot.lane.b32.xlu2 %v819_v9, %s746_s10  ;;  %s219_s10 = scalar_lea.vmem %s910_s5, %s675_s28 }
  0xad   : > { %498 = vrot.lane.b32.xlu2 %v819_v9, %s747_s11 }
  0xb5   : > { %416 = vrot.lane.b32.xlu2 %v819_v9, %s748_s12 }
  0xef   : > { %v321_v11 = vpop.permute.xlu2 %320 }
  0xf0   : > { %v326_v12 = vsel %vm260_vm1, %v321_v11, 0 }
  0xf1   : > { %335 = vmatpush.bf16.xpose.msra.mxu3 %v326_v12 }
  0xf7   : > { %v319_v13 = vpop.permute.xlu2 %318 }
  0xf8   : > { %680 = vmatmul.msk.bf16.vlgmr.msra.gmra.mxu3 %vm260_vm1, %v319_v13 }
  0xff   : > { %v419_v14 = vpop.permute.xlu2 %418 }
 0x100   : > { %v424_v15 = vsel %vm260_vm1, %v419_v14, 0 }
 0x101   : > { %433 = vmatpush.bf16.xpose.msrb.mxu3 %v424_v15 }
 0x107   : > { %v499_v18 = vpop.permute.xlu2 %498  ;;  %v259_v19 = vpop.permute.xlu0 %258 }
 0x108   : > { %v265_v21 = vsel %vm260_vm1, %v259_v19, 0  ;;  %v504_v23 = vsel %vm260_vm1, %v499_v18, 0 }
 0x109   : > { %274 = vmatpush.bf16.xpose.msra.mxu1 %v265_v21 }
 0x10f   : > { %v417_v22 = vpop.permute.xlu2 %416 }
 0x110   : > { %678 = vmatmul.msk.bf16.vlgmr.msra.gmra.mxu1 %vm260_vm1, %v819_v9  ;;  %684 = vmatmul.msk.bf16.vlgmr.msrb.gmra.mxu3 %vm260_vm1, %v417_v22 }
 0x111   : > { %410 = vmatpush.bf16.msrb.mxu1 %v401_v20 }
 0x115   : > { %513 = vmatpush.bf16.xpose.msra.mxu1 %v504_v23 }
 0x17b   : > { %v337_v27 = vpop.f32.mrf.mxu3 }
 0x17c   : > { %v341_v30 = vmul.f32 0.35355338, %v337_v27 }
 0x17e   : > { %v342_v31 = vadd.f32 %v341_v30, %v839_v29 }
 0x180   : > { %v343_v32 = vsel %vm260_vm1, %v342_v31, -inf }
 0x181   : > { %344 = vmax.xlane.f32.xlu2 %v343_v32 }
 0x183   : > { %v339_v33 = vpop.f32.mrf.mxu3 }
 0x18d   : > { %v276_v34 = vpop.f32.mrf.mxu1 }
 0x18e   : > { %v280_v35 = vmul.f32 0.35355338, %v276_v34 }
 0x190   : > { %v281_v36 = vadd.f32 %v280_v35, %v839_v29 }
 0x192   : > { %v282_v37 = vsel %vm260_vm1, %v281_v36, -inf }
 0x193   : > { %v435_v38 = vpop.f32.mrf.mxu3  ;;  %283 = vmax.xlane.f32.xlu0 %v282_v37 }
 0x194   : > { %v439_v39 = vmul.f32 0.35355338, %v435_v38  ;;  %v255_v38 = vld [vmem:[%s907_s2 + $0x18] sm:$0xff] }
 0x195   : > { %v278_v40 = vpop.f32.mrf.mxu1 }
 0x196   : > { %v846_v41 = vadd.f32 %v439_v39, %v839_v29  ;;  %v554_v40 = vpack.c.bf16 %v255_v38, %v255_v38 }
 0x198   : > { %v441_v42 = vsel %vm260_vm1, %v846_v41, -inf }
 0x19b   : > { %v437_v43 = vpop.f32.mrf.mxu3  ;;  %442 = vmax.xlane.f32.xlu0 %v441_v42 }
 0x1f4   : > { %v345_v44 = vpop.xlane.xlu2 %344 }
 0x1f5   : > { %v346_v45 = vsub.f32 %v342_v31, %v345_v44 }
 0x1f7   : > { %v347_v46 = vmul.f32 1.442695, %v346_v45  ;;  %v560_v45 = vsel %vm299_vm2, %v554_v40, 0 }
 0x1f9   : > { %715 = vpow2.f32 %v347_v46 }
 0x1ff   : > { %v716_v47 = vpop.eup %715 }
 0x200   : > { %v349_v48 = vsel %vm260_vm1, %v716_v47, 0.0 }
 0x201   : > { %350 = vadd.xlane.f32.xlu0 %v349_v48  ;;  %v254_v48 = vld [vmem:[%s907_s2 + $0x10] sm:$0xff] }
 0x206   : > { %v284_v49 = vpop.xlane.xlu0 %283 }
 0x207   : > { %v285_v50 = vsub.f32 %v281_v36, %v284_v49  ;;  %v474_v49 = vpack.c.bf16 %v254_v48, %v254_v48 }
 0x209   : > { %v286_v51 = vmul.f32 1.442695, %v285_v50  ;;  %v480_v50 = vsel %vm299_vm2, %v474_v49, 0 }
 0x20a   : > { %489 = vmatpush.bf16.msra.mxu0 %v480_v50 }
 0x20b   : > { %717 = vpow2.f32 %v286_v51 }
 0x20e   : > { %v443_v54 = vpop.xlane.xlu0 %442 }
 0x20f   : > { %v444_v19 = vsub.f32 %v846_v41, %v443_v54 }
 0x211   : > { %v718_v52 = vpop.eup %717  ;;  %v445_v20 = vmul.f32 1.442695, %v444_v19 }
 0x212   : > { %v288_v53 = vsel %vm260_vm1, %v718_v52, 0.0 }
 0x213   : > { %289 = vadd.xlane.f32.xlu1 %v288_v53 }
 0x215   : > { %355 = vrot.lane.b32.xlu0 %v819_v9, %s750_s15 }
 0x21d   : > { %533 = vrot.lane.b32.xlu0 %v819_v9, %s751_s16 }
 0x22c   : > { %294 = vrot.lane.b32.xlu1 %v819_v9, %s752_s17 }
 0x234   : > { %496 = vrot.lane.b32.xlu1 %v819_v9, %s753_s20 }
 0x274   : > { %v351_v55 = vpop.xlane.xlu0 %350 }
 0x286   : > { %v290_v59 = vpop.xlane.xlu1 %289 }
 0x287   : > { %v356_v56 = vpop.permute.xlu0 %355  ;;  %719 = vrcp.f32 %v290_v59 }
 0x288   : > { %v361_v0 = vsel %vm299_vm2, %v356_v56, 0  ;;  %721 = vrcp.f32 %v351_v55 }
 0x289   : > { %723 = vpow2.f32 %v445_v20 }
 0x28d   : > { %v720_v60 = vpop.eup %719 }
 0x28e   : > { %v292_v61 = vmul.f32 %v720_v60, %v718_v52  ;;  %v722_v2 = vpop.eup %721 }
 0x28f   : > { %v534_v57 = vpop.permute.xlu0 %533  ;;  %v353_v3 = vmul.f32 %v722_v2, %v716_v47  ;;  %v724_v30 = vpop.eup %723 }
 0x290   : > { %v539_v58 = vsel %vm299_vm2, %v534_v57, 0  ;;  %v293_v1 = vpack.c.bf16 %v292_v61, %v292_v61  ;;  %v447_v31 = vsel %vm260_vm1, %v724_v30, 0.0 }
 0x291   : > { %548 = vmatpush.bf16.msra.mxu3 %v539_v58  ;;  %v354_v4 = vpack.c.bf16 %v353_v3, %v353_v3 }
 0x29e   : > { %v295_v62 = vpop.permute.xlu1 %294 }
 0x29f   : > { %v301_v63 = vsel %vm299_vm2, %v295_v62, 0 }
 0x2a0   : > { %310 = vmatpush.bf16.msra.mxu2 %v301_v63 }
 0x2a3   : > { %679 = vmatmul.msk.bf16.vlgmr.msra.gmra.mxu2 %vm260_vm1, %v293_v1  ;;  %v755_v1 = vmov 32.0  }
 0x2a4   : > { %370 = vmatpush.bf16.msrb.mxu2 %v361_v0 }
 0x2a6   : > { %v497_v15 = vpop.permute.xlu1 %496 }
 0x2b3   : > { %681 = vmatmul.msk.bf16.vlgmr.msrb.gmra.mxu2 %vm260_vm1, %v354_v4 }
 0x326   : > { %v312_v10 = vpop.f32.mrf.mxu2 }
 0x327   : > { %v317_v11 = vpack.c.bf16 %v312_v10, %v312_v10 }
 0x329   : > { %683 = vmatmul.msk.bf16.vlgmr.msrb.gmra.mxu1 %vm260_vm1, %v317_v11 }
 0x32e   : > { %v314_v12 = vpop.f32.mrf.mxu2 }
 0x336   : > { %v372_v13 = vpop.f32.mrf.mxu2 }
 0x337   : > { %v377_v14 = vpack.c.bf16 %v372_v13, %v372_v13 }
 0x339   : > { %682 = vmatmul.msk.bf16.vlgmr.msrb.gmra.mxu0 %vm260_vm1, %v377_v14  ;;  %687 = vmatmul.msk.bf16.vlgmr.msra.gmra.mxu1 %vm260_vm1, %v497_v15 }
 0x33e   : > { %v374_v16 = vpop.f32.mrf.mxu2 }
 0x3a6   : > { %v412_v17 = vpop.f32.mrf.mxu1 }
 0x3ae   : > { %v414_v18 = vpop.f32.mrf.mxu1 }
 0x3b6   : > { %v393_v21 = vpop.f32.mrf.mxu0  ;;  %v515_v22 = vpop.f32.mrf.mxu1 }
 0x3b7   : > { %v413_v23 = vadd.f32 %v412_v17, %v393_v21  ;;  %v519_v24 = vmul.f32 0.35355338, %v515_v22 }
 0x3b9   : > { %v520_v25 = vadd.f32 %v519_v24, %v839_v29 }
 0x3bb   : > { %v521_v26 = vsel %vm260_vm1, %v520_v25, -inf }
 0x3bc   : > { %522 = vmax.xlane.f32.xlu1 %v521_v26 }
 0x3be   : > { %v395_v27 = vpop.f32.mrf.mxu0  ;;  %v517_v28 = vpop.f32.mrf.mxu1 }
 0x3c4   : > { %448 = vadd.xlane.f32.xlu1 %v447_v31 }
 0x42f   : > { %v523_v32 = vpop.xlane.xlu1 %522 }
 0x430   : > { %v524_v33 = vsub.f32 %v520_v25, %v523_v32  ;;  %v714_v25 = vld [vmem:[%s909_s4] ss:$0 sm:$0xff] }
 0x432   : > { %v525_v34 = vmul.f32 1.442695, %v524_v33 }
 0x434   : > { %725 = vpow2.f32 %v525_v34 }
 0x437   : > { %v449_v29 = vpop.xlane.xlu1 %448 }
 0x438   : > { %727 = vrcp.f32 %v449_v29 }
 0x43a   : > { %v726_v35 = vpop.eup %725 }
 0x43b   : > { %v527_v36 = vsel %vm260_vm1, %v726_v35, 0.0 }
 0x43c   : > { %528 = vadd.xlane.f32.xlu2 %v527_v36 }
 0x43e   : > { %v728_v39 = vpop.eup %727 }
 0x43f   : > { %v451_v42 = vmul.f32 %v728_v39, %v724_v30 }
 0x454   : > { %453 = vrot.lane.b32.xlu2 %v819_v9, %s754_s23  ;;  %v452_v9 = vpack.c.bf16 %v451_v42, %v451_v42 }
 0x4af   : > { %v529_v37 = vpop.xlane.xlu2 %528 }
 0x4b0   : > { %729 = vrcp.f32 %v529_v37 }
 0x4b1   : > { %731 = vrcp.f32 %v755_v1 }
 0x4b6   : > { %v730_v41 = vpop.eup %729 }
 0x4b7   : > { %v531_v43 = vmul.f32 %v730_v41, %v726_v35  ;;  %v454_v44 = vpop.permute.xlu2 %453  ;;  %v732_v2 = vpop.eup %731 }
 0x4b8   : > { %v459_v46 = vsel %vm299_vm2, %v454_v44, 0  ;;  %v581_v3 = vmul.f32 32.0, %v732_v2  ;;  %vm585_vm4 = vweird.f32 %v732_v2 }
 0x4b9   : > { %v532_v47 = vpack.c.bf16 %v531_v43, %v531_v43  ;;  %468 = vmatpush.bf16.msra.mxu2 %v459_v46 }
 0x4ba   : > { %v582_v4 = vsub.f32 1.0, %v581_v3 }
 0x4bb   : > { %688 = vmatmul.msk.bf16.vlgmr.msra.gmra.mxu3 %vm260_vm1, %v532_v47 }
 0x4bc   : > { %685 = vmatmul.msk.bf16.vlgmr.msra.gmra.mxu2 %vm260_vm1, %v452_v9  ;;  %v583_v5 = vmul.f32 %v732_v2, %v582_v4 }
 0x4bd   : > { %569 = vmatpush.bf16.msrb.mxu2 %v560_v45 }
 0x4be   : > { %v584_v7 = vadd.f32 %v732_v2, %v583_v5 }
 0x4c0   : > { %v586_v8 = vsel %vm585_vm4, %v732_v2, %v584_v7 }
 0x53e   : > { %v550_v51 = vpop.f32.mrf.mxu3 }
 0x53f   : > { %v555_v52 = vpack.c.bf16 %v550_v51, %v550_v51  ;;  %v470_v53 = vpop.f32.mrf.mxu2 }
 0x540   : > { %v475_v54 = vpack.c.bf16 %v470_v53, %v470_v53 }
 0x541   : > { %689 = vmatmul.msk.bf16.vlgmr.msrb.gmra.mxu2 %vm260_vm1, %v555_v52 }
 0x542   : > { %686 = vmatmul.msk.bf16.vlgmr.msra.gmra.mxu0 %vm260_vm1, %v475_v54 }
 0x546   : > { %v552_v55 = vpop.f32.mrf.mxu3 }
 0x547   : > { %v472_v56 = vpop.f32.mrf.mxu2 }
 0x5bf   : > { %v491_v57 = vpop.f32.mrf.mxu0 }
 0x5c0   : > { %v495_v58 = vadd.f32 %v491_v57, %v413_v23  ;;  %v713_v23 = vld [vmem:[%s908_s3] ss:$0 sm:$0xff] }
 0x5c4   : > { %v571_v59 = vpop.f32.mrf.mxu2 }
 0x5c5   : > { %v575_v60 = vadd.f32 %v571_v59, %v495_v58 }
 0x5c7   : > { %v493_v61 = vpop.f32.mrf.mxu0  ;;  %v576_v62 = vadd.f32 %v575_v60, %v814_v6 }
 0x5c9   : > { %v577_v63 = vsel %vm229_vm0, %v576_v62, 0.0 }
 0x5ca   : > { %578 = vadd.xlane.f32.xlu1 %v577_v63 }
 0x5cc   : > { %v573_v0 = vpop.f32.mrf.mxu2 }
 0x63d   : > { %v579_v10 = vpop.xlane.xlu1 %578 }
 0x63e   : > { %v587_v11 = vmul.f32 %v586_v8, %v579_v10 }
 0x640   : > { %v588_v12 = vsub.f32 %v576_v62, %v587_v11 }
 0x642   : > { %v589_v13 = vmul.f32 %v588_v12, %v588_v12 }
 0x644   : > { %v590_v14 = vsel %vm229_vm0, %v589_v13, 0.0 }
 0x645   : > { %591 = vadd.xlane.f32.xlu0 %v590_v14 }
 0x6b8   : > { %v592_v6 = vpop.xlane.xlu0 %591 }
 0x6b9   : > { %v593_v15 = vmul.f32 %v592_v6, %v586_v8 }
 0x6bb   : > { %v594_v16 = vadd.f32 1e-05, %v593_v15 }
 0x6bd   : > { %733 = vrsqrt.f32 %v594_v16  ;;  %vm601_vm6 = vweird.f32 %v594_v16 }
 0x6c3   : > { %v734_v17 = vpop.eup %733 }
 0x6c4   : > { %v596_v18 = vmul.f32 %v734_v17, %v594_v16  ;;  %vm602_vm5 = vweird.f32 %v734_v17 }
 0x6c5   : > { %vm603_vm7 = vmor %vm601_vm6, %vm602_vm5 }
 0x6c6   : > { %v597_v19 = vmul.f32 %v734_v17, %v596_v18 }
 0x6c8   : > { %v598_v20 = vmul.f32 0.5, %v597_v19 }
 0x6ca   : > { %v599_v21 = vsub.f32 1.5, %v598_v20 }
 0x6cc   : > { %v600_v22 = vmul.f32 %v734_v17, %v599_v21 }
 0x6ce   : > { %v604_v24 = vsel %vm603_vm7, %v734_v17, %v600_v22 }
 0x6cf   : > { %v605_v26 = vmul.f32 %v604_v24, %v588_v12 }
 0x6d1   : > { %v610_v27 = vmul.f32 %v713_v23, %v605_v26 }
 0x6d3   : > { %v615_v28 = vadd.f32 %v714_v25, %v610_v27 }
 0x6d5   : > { %616 = vst.msk [vmem:[%s219_s10] sm:$0xff] %vm229_vm0, %v615_v28 }
 0x6d6 PF: > { %s15_s18 = sadd.s32 1, %s741_s18  }
 0x6d7   : > { %p12_p4 = scmp.ge.s32.totalorder %s15_s18, 4  }
 0x6d9   :  { %14 = sbr.rel (!%p12_p4) target bundleno = 1 (0x1), region = 70 }

// kernel: transformer_forward.16
= control target key start
LH: loop header
LB: loop body
LE: loop exit
PB: predicated region body
PF: predicated region fallthrough
CT: control target
= control target key end

     0   :  { %s867_s21 = smov 0   ;;  %s982_s0 = inlined_call_operand.vmem [shape: f32[2,8,32], index: 0, kind: input, shape index: {}]   ;;  %s983_s1 = inlined_call_operand.vmem [shape: f32[2,8,32], index: 1, kind: input, shape index: {}]   ;;  %s984_s2 = inlined_call_operand.vmem [shape: f32[32,96], index: 2, kind: input, shape index: {}]   ;;  %s985_s3 = inlined_call_operand.vmem [shape: f32[32,32], index: 3, kind: input, shape index: {}]   ;;  %s986_s4 = inlined_call_operand.vmem [shape: f32[1,32], index: 4, kind: input, shape index: {}]   ;;  %s987_s5 = inlined_call_operand.vmem [shape: f32[1,32], index: 5, kind: input, shape index: {}]   ;;  %s988_s6 = inlined_call_operand.vmem [shape: f32[2,8,32], index: 6, kind: output, shape index: {}]  }
   0x1 LB: > { %s754_s22 = sadd.s32 4294967295, %s822_s21   ;;  %p758_p0 = scmp.ge.s32.totalorder %s822_s21, 1  ;;  %s822_s21 = sphi %s867_s21, %s16_s21  }
   0x2   : > { %p220_p1 = scmp.lt.s32.totalorder %s822_s21, 3 }
   0x4   : > { %p221_p2 = pnand %p758_p0, %p220_p1 }
   0x5   : > { %s824_s7 = smov (!%p221_p2), 96   ;;  %p252_p3 = scmp.lt.s32.totalorder (!%p221_p2), %s754_s22, 1 }
   0x6   : > { %224 = sbr.rel (%p221_p2) target bundleno = 1744 (0x6d0), region = 44  ;;  %s825_s15 = smov (!%p221_p2), 120  }
   0x7   : > { %s826_s16 = smov (!%p221_p2), 104   ;;  %s827_s17 = smov (!%p221_p2), 112  }
   0x8   : > { %s828_s20 = smov (!%p221_p2), 88   ;;  %s830_s23 = smov (!%p221_p2), 72  }
   0xb   : > { %v269_v0 = vld [vmem:[%s984_s2 + $0x10] sm:$0xff]  ;;  %v270_v1 = vld [vmem:[%s984_s2 + $0x18] sm:$0xff]  ;;  %v267_v2 = vld [vmem:[%s984_s2] sm:$0xff]  ;;  %s990_s22 = smov (!%p252_p3, %s754_s22), 1  ;;  %vm288_vm0 = vcmask 261120   ;;  %vm334_vm1 = vcmask 64512  }
   0xc   : > { %v273_v3 = vpack.c.bf16 %v269_v0, %v269_v0  ;;  %v274_v4 = vpack.c.bf16 %v270_v1, %v270_v1  ;;  %v268_v5 = vld [vmem:[%s984_s2 + $0x8] sm:$0xff]  ;;  %v271_v6 = vpack.c.bf16 %v267_v2, %v267_v2  ;;  %s889_s8 = sshll.u32 %s990_s22, 3  ;;  %vm373_vm2 = vcmask 1043456   ;;  %v328_v40 = vld [vmem:[%s985_s3] sm:$0xff]  ;;  %s829_s22 = smov 80  }
   0xd   : > { %v272_v7 = vpack.c.bf16 %v268_v5, %v268_v5  ;;  %s255_s11 = scalar_lea.vmem %s982_s0, %s889_s8  ;;  %s259_s14 = scalar_lea.vmem %s983_s1, %s889_s8  ;;  %v390_v41 = vpack.c.bf16 %v328_v40, %v328_v40  ;;  %v330_v40 = vld [vmem:[%s985_s3 + $0x10] sm:$0xff] }
   0xe   : > { %v282_v8 = vunpack.c.l.b16 %v273_v3  ;;  %v283_v9 = vunpack.c.l.b16 %v274_v4  ;;  %v280_v11 = vunpack.c.l.b16 %v271_v6  ;;  %v895_v14 = vld [vmem:[%s255_s11] sm:$0xff]  ;;  %s263_s13 = scalar_lea.vmem %s988_s6, %s889_s8 }
   0xf   : > { %v281_v12 = vunpack.c.l.b16 %v272_v7  ;;  %v275_v15 = vpack.c.bf16 %v895_v14, %v895_v14  ;;  %v266_v17 = vld [vmem:[%s259_s14] sm:$0xff]  ;;  %v475_v42 = vsel %vm373_vm2, %v390_v41, 0  ;;  %v547_v41 = vpack.c.bf16 %v330_v40, %v330_v40 }
  0x10   : > { %v285_v10 = vpack.c.b16 %v283_v9, %v282_v8  ;;  %v305_v19 = vpack.c.bf16 %v266_v17, %v266_v17 }
  0x11   : > { %v284_v13 = vpack.c.b16 %v281_v12, %v280_v11 }
  0x12   : > { %308 = vrot.lane.b32.xlu0 %v285_v10, %s824_s7  ;;  %298 = vmatpush.bf16.msra.mxu0 %v285_v10 }
  0x16   : > { %299 = vmatpush.bf16.msra.mxu0 %v284_v13 }
  0x19   : > { %762 = vmatmul.msk.bf16.vlgmr.msra.gmra.mxu0 %vm288_vm0, %v275_v15 }
  0x1a   : > { %306 = vrot.lane.b32.xlu0 %v284_v13, %s824_s7 }
  0x84   : > { %v309_v16 = vpop.permute.xlu0 %308 }
  0x85   : > { %321 = vmatpush.bf16.msra.mxu1 %v309_v16 }
  0x8c   : > { %v307_v18 = vpop.permute.xlu0 %306 }
  0x8d   : > { %322 = vmatpush.bf16.msra.mxu1 %v307_v18 }
  0x90   : > { %763 = vmatmul.msk.bf16.vlgmr.msra.gmra.mxu1 %vm288_vm0, %v305_v19 }
  0x96   : > { %v301_v20 = vpop.f32.mrf.mxu0 }
  0x97   : > { %v332_v21 = vpack.c.bf16 %v301_v20, %v301_v20 }
  0x99   : > { %393 = vrot.lane.b32.xlu0 %v332_v21, %s825_s15 }
  0x9e   : > { %v303_v22 = vpop.f32.mrf.mxu0 }
  0xa1   : > { %569 = vrot.lane.b32.xlu0 %v332_v21, %s826_s16 }
 0x10b   : > { %v394_v51 = vpop.permute.xlu0 %393 }
 0x10d   : > { %v324_v23 = vpop.f32.mrf.mxu1 }
 0x10e   : > { %v906_v24 = vpack.c.bf16 %v324_v23, %v324_v23 }
 0x110   : > { %368 = vrot.lane.b32.xlu2 %v906_v24, %s824_s7  ;;  %v339_v25 = vsel %vm334_vm1, %v906_v24, 0 }
 0x111   : > { %348 = vmatpush.bf16.xpose.msra.mxu2 %v339_v25 }
 0x113   : > { %v570_v58 = vpop.permute.xlu0 %569 }
 0x115   : > { %v326_v26 = vpop.f32.mrf.mxu1 }
 0x118   : > { %395 = vrot.lane.b32.xlu2 %v906_v24, %s825_s15  ;;  %764 = vmatmul.msk.bf16.vlgmr.msra.gmra.mxu2 %vm334_vm1, %v332_v21 }
 0x119   : > { %484 = vmatpush.bf16.msrb.mxu2 %v475_v42  ;;  %v553_v42 = vsel %vm373_vm2, %v547_v41, 0 }
 0x120   : > { %492 = vrot.lane.b32.xlu2 %v906_v24, %s827_s17 }
 0x128   : > { %490 = vrot.lane.b32.xlu2 %v332_v21, %s827_s17 }
 0x16a   : > { %v369_v27 = vpop.permute.xlu2 %368 }
 0x16b   : > { %v375_v28 = vsel %vm373_vm2, %v369_v27, 0 }
 0x16c   : > { %384 = vmatpush.bf16.msra.mxu3 %v375_v28 }
 0x172   : > { %v396_v29 = vpop.permute.xlu2 %395 }
 0x173   : > { %v401_v30 = vsel %vm334_vm1, %v396_v29, 0 }
 0x174   : > { %410 = vmatpush.bf16.xpose.msrb.mxu3 %v401_v30 }
 0x17a   : > { %v493_v46 = vpop.permute.xlu2 %492 }
 0x17b   : > { %v498_v48 = vsel %vm334_vm1, %v493_v46, 0 }
 0x182   : > { %v491_v52 = vpop.permute.xlu2 %490 }
 0x19b   : > { %v350_v31 = vpop.f32.mrf.mxu2 }
 0x19c   : > { %v354_v32 = vmul.f32 0.35355338, %v350_v31 }
 0x19e   : > { %v355_v33 = vsel %vm334_vm1, %v354_v32, -inf }
 0x19f   : > { %356 = vmax.xlane.f32.xlu1 %v355_v33 }
 0x1a3   : > { %v352_v34 = vpop.f32.mrf.mxu2 }
 0x212   : > { %v357_v35 = vpop.xlane.xlu1 %356 }
 0x213   : > { %v358_v36 = vsub.f32 %v354_v32, %v357_v35 }
 0x215   : > { %v359_v37 = vmul.f32 1.442695, %v358_v36  ;;  %v329_v36 = vld [vmem:[%s985_s3 + $0x8] sm:$0xff] }
 0x217   : > { %796 = vpow2.f32 %v359_v37  ;;  %v450_v37 = vpack.c.bf16 %v329_v36, %v329_v36 }
 0x21d   : > { %v797_v38 = vpop.eup %796 }
 0x21e   : > { %v361_v39 = vsel %vm334_vm1, %v797_v38, 0.0 }
 0x21f   : > { %362 = vadd.xlane.f32.xlu1 %v361_v39 }
 0x238   : > { %571 = vrot.lane.b32.xlu1 %v906_v24, %s826_s16 }
 0x292   : > { %v363_v43 = vpop.xlane.xlu1 %362 }
 0x293   : > { %798 = vrcp.f32 %v363_v43 }
 0x299   : > { %v799_v44 = vpop.eup %798 }
 0x29a   : > { %v365_v45 = vmul.f32 %v799_v44, %v797_v38  ;;  %v456_v38 = vsel %vm373_vm2, %v450_v37, 0 }
 0x29b   : > { %465 = vmatpush.bf16.msrb.mxu1 %v456_v38 }
 0x29c   : > { %v366_v47 = vpack.c.bf16 %v365_v45, %v365_v45 }
 0x29e   : > { %765 = vmatmul.msk.bf16.vlgmr.msra.gmra.mxu3 %vm334_vm1, %v366_v47 }
 0x29f   : > { %507 = vmatpush.bf16.xpose.msra.mxu3 %v498_v48  ;;  %562 = vmatpush.bf16.msra.mxu1 %v553_v42 }
 0x2aa   : > { %v572_v49 = vpop.permute.xlu1 %571 }
 0x2ab   : > { %v577_v50 = vsel %vm334_vm1, %v572_v49, 0 }
 0x2ac   : > { %586 = vmatpush.bf16.xpose.msra.mxu2 %v577_v50 }
 0x2ae   : > { %766 = vmatmul.msk.bf16.vlgmr.msrb.gmra.mxu3 %vm334_vm1, %v394_v51 }
 0x2be   : > { %770 = vmatmul.msk.bf16.vlgmr.msra.gmra.mxu3 %vm334_vm1, %v491_v52 }
 0x321   : > { %v386_v53 = vpop.f32.mrf.mxu3 }
 0x322   : > { %v391_v54 = vpack.c.bf16 %v386_v53, %v386_v53  ;;  %v331_v53 = vld [vmem:[%s985_s3 + $0x18] sm:$0xff] }
 0x324   : > { %769 = vmatmul.msk.bf16.vlgmr.msrb.gmra.mxu2 %vm334_vm1, %v391_v54  ;;  %v626_v54 = vpack.c.bf16 %v331_v53, %v331_v53 }
 0x329   : > { %v388_v55 = vpop.f32.mrf.mxu3 }
 0x32a   : > { %v632_v55 = vsel %vm373_vm2, %v626_v54, 0 }
 0x331   : > { %v412_v56 = vpop.f32.mrf.mxu3 }
 0x332   : > { %v416_v57 = vmul.f32 0.35355338, %v412_v56 }
 0x334   : > { %773 = vmatmul.msk.bf16.vlgmr.msra.gmra.mxu2 %vm334_vm1, %v570_v58  ;;  %v417_v59 = vsel %vm334_vm1, %v416_v57, -inf }
 0x335   : > { %418 = vmax.xlane.f32.xlu0 %v417_v59 }
 0x339   : > { %v414_v60 = vpop.f32.mrf.mxu3 }
 0x341   : > { %v509_v61 = vpop.f32.mrf.mxu3 }
 0x342   : > { %v513_v62 = vmul.f32 0.35355338, %v509_v61 }
 0x344   : > { %v514_v63 = vsel %vm334_vm1, %v513_v62, -inf }
 0x345   : > { %515 = vmax.xlane.f32.xlu1 %v514_v63 }
 0x349   : > { %429 = vrot.lane.b32.xlu0 %v906_v24, %s828_s20  ;;  %v511_v0 = vpop.f32.mrf.mxu3 }
 0x3a7   : > { %v935_v1 = vpop.f32.mrf.mxu2 }
 0x3a8   : > { %v419_v2 = vpop.xlane.xlu0 %418 }
 0x3a9   : > { %v420_v4 = vsub.f32 %v416_v57, %v419_v2 }
 0x3ab   : > { %v421_v5 = vmul.f32 1.442695, %v420_v4 }
 0x3ad   : > { %800 = vpow2.f32 %v421_v5 }
 0x3af   : > { %v488_v3 = vpop.f32.mrf.mxu2 }
 0x3b3   : > { %v801_v15 = vpop.eup %800 }
 0x3b4   : > { %v423_v17 = vsel %vm334_vm1, %v801_v15, 0.0 }
 0x3b7   : > { %v588_v6 = vpop.f32.mrf.mxu2 }
 0x3b8   : > { %v592_v7 = vmul.f32 0.35355338, %v588_v6  ;;  %v516_v8 = vpop.xlane.xlu1 %515 }
 0x3b9   : > { %v517_v9 = vsub.f32 %v513_v62, %v516_v8 }
 0x3ba   : > { %v593_v10 = vsel %vm334_vm1, %v592_v7, -inf }
 0x3bb   : > { %v518_v11 = vmul.f32 1.442695, %v517_v9  ;;  %v430_v12 = vpop.permute.xlu0 %429  ;;  %594 = vmax.xlane.f32.xlu2 %v593_v10 }
 0x3bc   : > { %v435_v13 = vsel %vm373_vm2, %v430_v12, 0 }
 0x3bd   : > { %802 = vpow2.f32 %v518_v11  ;;  %444 = vmatpush.bf16.msrb.mxu0 %v435_v13 }
 0x3bf   : > { %v590_v16 = vpop.f32.mrf.mxu2 }
 0x3c3   : > { %v803_v18 = vpop.eup %802  ;;  %424 = vadd.xlane.f32.xlu2 %v423_v17 }
 0x3c4   : > { %v520_v19 = vsel %vm334_vm1, %v803_v18, 0.0 }
 0x3c5   : > { %521 = vadd.xlane.f32.xlu1 %v520_v19 }
 0x3de   : > { %526 = vrot.lane.b32.xlu1 %v906_v24, %s829_s22 }
 0x42e   : > { %v595_v20 = vpop.xlane.xlu2 %594 }
 0x42f   : > { %v596_v21 = vsub.f32 %v592_v7, %v595_v20  ;;  %v831_v7 = vmov 32.0  }
 0x431   : > { %v597_v22 = vmul.f32 1.442695, %v596_v21 }
 0x433   : > { %804 = vpow2.f32 %v597_v22 }
 0x436   : > { %v425_v23 = vpop.xlane.xlu2 %424 }
 0x437   : > { %806 = vrcp.f32 %v425_v23 }
 0x438   : > { %v522_v30 = vpop.xlane.xlu1 %521 }
 0x439   : > { %v805_v25 = vpop.eup %804  ;;  %808 = vrcp.f32 %v522_v30  ;;  %v795_v30 = vld [vmem:[%s987_s5] ss:$0 sm:$0xff] }
 0x43a   : > { %v599_v26 = vsel %vm334_vm1, %v805_v25, 0.0 }
 0x43b   : > { %600 = vadd.xlane.f32.xlu2 %v599_v26 }
 0x43d   : > { %v807_v27 = vpop.eup %806 }
 0x43e   : > { %v427_v28 = vmul.f32 %v807_v27, %v801_v15 }
 0x43f   : > { %v809_v31 = vpop.eup %808 }
 0x440   : > { %v428_v29 = vpack.c.bf16 %v427_v28, %v427_v28  ;;  %v524_v32 = vmul.f32 %v809_v31, %v803_v18  ;;  %v794_v28 = vld [vmem:[%s986_s4] ss:$0 sm:$0xff] }
 0x442   : > { %767 = vmatmul.msk.bf16.vlgmr.msrb.gmra.mxu0 %vm334_vm1, %v428_v29  ;;  %v525_v35 = vpack.c.bf16 %v524_v32, %v524_v32 }
 0x450   : > { %v527_v33 = vpop.permute.xlu1 %526 }
 0x451   : > { %v532_v34 = vsel %vm373_vm2, %v527_v33, 0 }
 0x452   : > { %541 = vmatpush.bf16.msra.mxu0 %v532_v34 }
 0x453   : > { %605 = vrot.lane.b32.xlu2 %v906_v24, %s830_s23 }
 0x455   : > { %771 = vmatmul.msk.bf16.vlgmr.msra.gmra.mxu0 %vm334_vm1, %v525_v35 }
 0x456   : > { %641 = vmatpush.bf16.msrb.mxu0 %v632_v55 }
 0x4ae   : > { %v601_v39 = vpop.xlane.xlu2 %600 }
 0x4af   : > { %810 = vrcp.f32 %v601_v39 }
 0x4b0   : > { %812 = vrcp.f32 %v831_v7 }
 0x4b5   : > { %v811_v24 = vpop.eup %810 }
 0x4b6   : > { %v603_v43 = vmul.f32 %v811_v24, %v805_v25  ;;  %v606_v44 = vpop.permute.xlu2 %605  ;;  %v813_v8 = vpop.eup %812 }
 0x4b7   : > { %v611_v45 = vsel %vm373_vm2, %v606_v44, 0  ;;  %v653_v9 = vmul.f32 32.0, %v813_v8  ;;  %vm657_vm3 = vweird.f32 %v813_v8 }
 0x4b8   : > { %v604_v46 = vpack.c.bf16 %v603_v43, %v603_v43  ;;  %620 = vmatpush.bf16.msrb.mxu3 %v611_v45 }
 0x4b9   : > { %v654_v10 = vsub.f32 1.0, %v653_v9 }
 0x4bb   : > { %774 = vmatmul.msk.bf16.vlgmr.msrb.gmra.mxu3 %vm334_vm1, %v604_v46  ;;  %v655_v11 = vmul.f32 %v813_v8, %v654_v10 }
 0x4bd   : > { %v656_v12 = vadd.f32 %v813_v8, %v655_v11 }
 0x4bf   : > { %v446_v47 = vpop.f32.mrf.mxu0 }
 0x4c0   : > { %v451_v48 = vpack.c.bf16 %v446_v47, %v446_v47 }
 0x4c2   : > { %768 = vmatmul.msk.bf16.vlgmr.msrb.gmra.mxu1 %vm334_vm1, %v451_v48 }
 0x4c7   : > { %v448_v49 = vpop.f32.mrf.mxu0 }
 0x4d2   : > { %v543_v50 = vpop.f32.mrf.mxu0 }
 0x4d3   : > { %v548_v51 = vpack.c.bf16 %v543_v50, %v543_v50 }
 0x4d5   : > { %772 = vmatmul.msk.bf16.vlgmr.msra.gmra.mxu1 %vm334_vm1, %v548_v51 }
 0x4da   : > { %v545_v52 = vpop.f32.mrf.mxu0 }
 0x53e   : > { %v622_v56 = vpop.f32.mrf.mxu3 }
 0x53f   : > { %v627_v57 = vpack.c.bf16 %v622_v56, %v622_v56  ;;  %v467_v58 = vpop.f32.mrf.mxu1 }
 0x540   : > { %v487_v61 = vadd.f32 %v935_v1, %v467_v58  ;;  %v658_v1 = vsel %vm657_vm3, %v813_v8, %v656_v12 }
 0x541   : > { %775 = vmatmul.msk.bf16.vlgmr.msrb.gmra.mxu0 %vm334_vm1, %v627_v57 }
 0x546   : > { %v624_v59 = vpop.f32.mrf.mxu3 }
 0x547   : > { %v469_v60 = vpop.f32.mrf.mxu1 }
 0x552   : > { %v564_v62 = vpop.f32.mrf.mxu1 }
 0x553   : > { %v568_v63 = vadd.f32 %v564_v62, %v487_v61 }
 0x55a   : > { %v566_v0 = vpop.f32.mrf.mxu1 }
 0x5be   : > { %v643_v2 = vpop.f32.mrf.mxu0 }
 0x5bf   : > { %v647_v3 = vadd.f32 %v643_v2, %v568_v63 }
 0x5c1   : > { %v648_v4 = vadd.f32 %v647_v3, %v895_v14 }
 0x5c3   : > { %v649_v5 = vsel %vm288_vm0, %v648_v4, 0.0 }
 0x5c4   : > { %650 = vadd.xlane.f32.xlu0 %v649_v5 }
 0x5c6   : > { %v645_v6 = vpop.f32.mrf.mxu0 }
 0x637   : > { %v651_v13 = vpop.xlane.xlu0 %650 }
 0x638   : > { %v659_v15 = vmul.f32 %v658_v1, %v651_v13 }
 0x63a   : > { %v660_v16 = vsub.f32 %v648_v4, %v659_v15 }
 0x63c   : > { %v661_v17 = vmul.f32 %v660_v16, %v660_v16 }
 0x63e   : > { %v662_v18 = vsel %vm288_vm0, %v661_v17, 0.0 }
 0x63f   : > { %663 = vadd.xlane.f32.xlu2 %v662_v18 }
 0x6b2   : > { %v664_v14 = vpop.xlane.xlu2 %663 }
 0x6b3   : > { %v665_v19 = vmul.f32 %v664_v14, %v658_v1 }
 0x6b5   : > { %v666_v20 = vadd.f32 1e-05, %v665_v19 }
 0x6b7   : > { %814 = vrsqrt.f32 %v666_v20  ;;  %vm673_vm5 = vweird.f32 %v666_v20 }
 0x6bd   : > { %v815_v21 = vpop.eup %814 }
 0x6be   : > { %v668_v22 = vmul.f32 %v815_v21, %v666_v20  ;;  %vm674_vm4 = vweird.f32 %v815_v21 }
 0x6bf   : > { %vm675_vm6 = vmor %vm673_vm5, %vm674_vm4 }
 0x6c0   : > { %v669_v23 = vmul.f32 %v815_v21, %v668_v22 }
 0x6c2   : > { %v670_v25 = vmul.f32 0.5, %v669_v23 }
 0x6c4   : > { %v671_v26 = vsub.f32 1.5, %v670_v25 }
 0x6c6   : > { %v672_v27 = vmul.f32 %v815_v21, %v671_v26 }
 0x6c8   : > { %v676_v29 = vsel %vm675_vm6, %v815_v21, %v672_v27 }
 0x6c9   : > { %v677_v31 = vmul.f32 %v676_v29, %v660_v16 }
 0x6cb   : > { %v682_v32 = vmul.f32 %v794_v28, %v677_v31 }
 0x6cd   : > { %v687_v33 = vadd.f32 %v795_v30, %v682_v32 }
 0x6cf   : > { %688 = vst.msk [vmem:[%s263_s13] sm:$0xff] %vm288_vm0, %v687_v33 }
 0x6d0 PF: > { %s16_s21 = sadd.s32 1, %s822_s21  }
 0x6d1   : > { %p13_p4 = scmp.ge.s32.totalorder %s16_s21, 4  }
 0x6d3   :  { %15 = sbr.rel (!%p13_p4) target bundleno = 1 (0x1), region = 77 }

// kernel: transformer_forward.11
= control target key start
LH: loop header
LB: loop body
LE: loop exit
PB: predicated region body
PF: predicated region fallthrough
CT: control target
= control target key end

     0   :  { %s774_s18 = smov 0   ;;  %s887_s0 = inlined_call_operand.vmem [shape: f32[2,8,32], index: 0, kind: input, shape index: {}]   ;;  %s888_s1 = inlined_call_operand.vmem [shape: f32[32,96], index: 1, kind: input, shape index: {}]   ;;  %s889_s2 = inlined_call_operand.vmem [shape: f32[32,32], index: 2, kind: input, shape index: {}]   ;;  %s890_s3 = inlined_call_operand.vmem [shape: f32[1,32], index: 3, kind: input, shape index: {}]   ;;  %s891_s4 = inlined_call_operand.vmem [shape: f32[1,32], index: 4, kind: input, shape index: {}]   ;;  %s892_s5 = inlined_call_operand.vmem [shape: f32[2,8,32], index: 5, kind: output, shape index: {}]  }
   0x1 LB: > { %s660_s19 = sadd.s32 4294967295, %s730_s18   ;;  %p664_p0 = scmp.ge.s32.totalorder %s730_s18, 1  ;;  %s730_s18 = sphi %s774_s18, %s15_s18  }
   0x2   : > { %p186_p1 = scmp.lt.s32.totalorder %s730_s18, 3 }
   0x4   : > { %p187_p2 = pnand %p664_p0, %p186_p1 }
   0x5   : > { %p212_p3 = scmp.lt.s32.totalorder (!%p187_p2), %s660_s19, 1  ;;  %s732_s7 = smov (!%p187_p2), 88  }
   0x6   : > { %190 = sbr.rel (%p187_p2) target bundleno = 1746 (0x6d2), region = 40  ;;  %s733_s8 = smov (!%p187_p2), 96  }
   0x7   : > { %s734_s9 = smov (!%p187_p2), 120   ;;  %s735_s10 = smov (!%p187_p2), 80  }
   0x8   : > { %s736_s11 = smov (!%p187_p2), 72   ;;  %s737_s12 = smov (!%p187_p2), 112  }
   0x9   : > { %s738_s15 = smov (!%p187_p2), 56   ;;  %s739_s16 = smov (!%p187_p2), 40  }
   0xa   : > { %s740_s17 = smov (!%p187_p2), 64   ;;  %s741_s20 = smov (!%p187_p2), 104  }
   0xb   : > { %v225_v0 = vld [vmem:[%s888_s1 + $0x10] sm:$0xff]  ;;  %v226_v1 = vld [vmem:[%s888_s1 + $0x18] sm:$0xff]  ;;  %v223_v2 = vld [vmem:[%s888_s1] sm:$0xff]  ;;  %s894_s19 = smov (!%p212_p3, %s660_s19), 1  ;;  %vm229_vm0 = vcmask 261120   ;;  %vm254_vm1 = vcmask 64512  }
   0xc   : > { %v228_v3 = vpack.c.bf16 %v226_v1, %v225_v0  ;;  %v224_v4 = vld [vmem:[%s888_s1 + $0x8] sm:$0xff]  ;;  %s665_s28 = sshll.u32 %s894_s19, 3  ;;  %v246_v16 = vld [vmem:[%s889_s2] sm:$0xff]  ;;  %vm292_vm2 = vcmask 1043456   ;;  %s742_s23 = smov 48  }
   0xd   : > { %v227_v5 = vpack.c.bf16 %v224_v4, %v223_v2  ;;  %s215_s6 = scalar_lea.vmem %s887_s0, %s665_s28  ;;  %v309_v17 = vpack.c.bf16 %v246_v16, %v246_v16  ;;  %v247_v61 = vld [vmem:[%s889_s2 + $0x8] sm:$0xff] }
   0xe   : > { %239 = vmatpush.bf16.msra.mxu0 %v228_v3  ;;  %v802_v6 = vld [vmem:[%s215_s6] sm:$0xff]  ;;  %v368_v62 = vpack.c.bf16 %v247_v61, %v247_v61 }
   0xf   : > { %v222_v7 = vpack.c.bf16 %v802_v6, %v802_v6  ;;  %v393_v20 = vsel %vm292_vm2, %v309_v17, 0 }
  0x10   : > { %v374_v63 = vsel %vm292_vm2, %v368_v62, 0 }
  0x12   : > { %240 = vmatpush.bf16.msra.mxu0 %v227_v5 }
  0x15   : > { %667 = vmatmul.msk.bf16.vlgmr.msra.gmra.mxu0 %vm229_vm0, %v222_v7 }
  0x16   : > { %383 = vmatpush.bf16.msrb.mxu0 %v374_v63 }
  0x92   : > { %v242_v8 = vpop.f32.mrf.mxu0 }
  0x93   : > { %v807_v9 = vpack.c.bf16 %v242_v8, %v242_v8 }
  0x95   : > { %313 = vrot.lane.b32.xlu2 %v807_v9, %s732_s7  ;;  %252 = vrot.lane.b32.xlu0 %v807_v9, %s733_s8 }
  0x9a   : > { %v244_v10 = vpop.f32.mrf.mxu0 }
  0x9d   : > { %311 = vrot.lane.b32.xlu2 %v807_v9, %s734_s9 }
  0xa5   : > { %410 = vrot.lane.b32.xlu2 %v807_v9, %s735_s10  ;;  %s219_s10 = scalar_lea.vmem %s892_s5, %s665_s28 }
  0xad   : > { %489 = vrot.lane.b32.xlu2 %v807_v9, %s736_s11 }
  0xb5   : > { %408 = vrot.lane.b32.xlu2 %v807_v9, %s737_s12 }
  0xef   : > { %v314_v11 = vpop.permute.xlu2 %313 }
  0xf0   : > { %v319_v12 = vsel %vm254_vm1, %v314_v11, 0 }
  0xf1   : > { %328 = vmatpush.bf16.xpose.msra.mxu3 %v319_v12 }
  0xf7   : > { %v312_v13 = vpop.permute.xlu2 %311 }
  0xf8   : > { %670 = vmatmul.msk.bf16.vlgmr.msra.gmra.mxu3 %vm254_vm1, %v312_v13 }
  0xff   : > { %v411_v14 = vpop.permute.xlu2 %410 }
 0x100   : > { %v416_v15 = vsel %vm254_vm1, %v411_v14, 0 }
 0x101   : > { %425 = vmatpush.bf16.xpose.msrb.mxu3 %v416_v15 }
 0x107   : > { %v490_v18 = vpop.permute.xlu2 %489  ;;  %v253_v19 = vpop.permute.xlu0 %252 }
 0x108   : > { %v259_v21 = vsel %vm254_vm1, %v253_v19, 0  ;;  %v495_v23 = vsel %vm254_vm1, %v490_v18, 0 }
 0x109   : > { %268 = vmatpush.bf16.xpose.msra.mxu1 %v259_v21 }
 0x10f   : > { %v409_v22 = vpop.permute.xlu2 %408 }
 0x110   : > { %668 = vmatmul.msk.bf16.vlgmr.msra.gmra.mxu1 %vm254_vm1, %v807_v9  ;;  %674 = vmatmul.msk.bf16.vlgmr.msrb.gmra.mxu3 %vm254_vm1, %v409_v22 }
 0x111   : > { %402 = vmatpush.bf16.msrb.mxu1 %v393_v20 }
 0x115   : > { %504 = vmatpush.bf16.xpose.msra.mxu1 %v495_v23 }
 0x17b   : > { %v330_v24 = vpop.f32.mrf.mxu3 }
 0x17c   : > { %v334_v25 = vmul.f32 0.35355338, %v330_v24 }
 0x17e   : > { %v335_v26 = vsel %vm254_vm1, %v334_v25, -inf }
 0x17f   : > { %336 = vmax.xlane.f32.xlu2 %v335_v26 }
 0x183   : > { %v332_v27 = vpop.f32.mrf.mxu3 }
 0x18d   : > { %v270_v28 = vpop.f32.mrf.mxu1 }
 0x18e   : > { %v274_v29 = vmul.f32 0.35355338, %v270_v28 }
 0x190   : > { %v275_v30 = vsel %vm254_vm1, %v274_v29, -inf }
 0x191   : > { %276 = vmax.xlane.f32.xlu0 %v275_v30 }
 0x193   : > { %v427_v31 = vpop.f32.mrf.mxu3 }
 0x194   : > { %v829_v32 = vmul.f32 0.35355338, %v427_v31 }
 0x195   : > { %v272_v33 = vpop.f32.mrf.mxu1 }
 0x196   : > { %v432_v34 = vsel %vm254_vm1, %v829_v32, -inf }
 0x199   : > { %433 = vmax.xlane.f32.xlu0 %v432_v34 }
 0x19b   : > { %v429_v35 = vpop.f32.mrf.mxu3 }
 0x1f2   : > { %v337_v36 = vpop.xlane.xlu2 %336 }
 0x1f3   : > { %v338_v37 = vsub.f32 %v334_v25, %v337_v36 }
 0x1f5   : > { %v339_v38 = vmul.f32 1.442695, %v338_v37 }
 0x1f7   : > { %704 = vpow2.f32 %v339_v38 }
 0x1fd   : > { %v705_v39 = vpop.eup %704 }
 0x1fe   : > { %v341_v40 = vsel %vm254_vm1, %v705_v39, 0.0 }
 0x1ff   : > { %342 = vadd.xlane.f32.xlu0 %v341_v40 }
 0x204   : > { %v277_v41 = vpop.xlane.xlu0 %276 }
 0x205   : > { %v278_v42 = vsub.f32 %v274_v29, %v277_v41  ;;  %v249_v29 = vld [vmem:[%s889_s2 + $0x18] sm:$0xff] }
 0x206   : > { %v544_v31 = vpack.c.bf16 %v249_v29, %v249_v29 }
 0x207   : > { %v279_v43 = vmul.f32 1.442695, %v278_v42 }
 0x208   : > { %v550_v36 = vsel %vm292_vm2, %v544_v31, 0 }
 0x209   : > { %706 = vpow2.f32 %v279_v43 }
 0x20c   : > { %v434_v46 = vpop.xlane.xlu0 %433 }
 0x20d   : > { %v435_v11 = vsub.f32 %v829_v32, %v434_v46 }
 0x20f   : > { %v707_v44 = vpop.eup %706  ;;  %v436_v12 = vmul.f32 1.442695, %v435_v11 }
 0x210   : > { %v281_v45 = vsel %vm254_vm1, %v707_v44, 0.0 }
 0x211   : > { %282 = vadd.xlane.f32.xlu1 %v281_v45 }
 0x213   : > { %347 = vrot.lane.b32.xlu0 %v807_v9, %s738_s15 }
 0x21b   : > { %523 = vrot.lane.b32.xlu0 %v807_v9, %s739_s16 }
 0x22a   : > { %287 = vrot.lane.b32.xlu1 %v807_v9, %s740_s17 }
 0x232   : > { %487 = vrot.lane.b32.xlu1 %v807_v9, %s741_s20 }
 0x272   : > { %v343_v47 = vpop.xlane.xlu0 %342 }
 0x284   : > { %v283_v51 = vpop.xlane.xlu1 %282 }
 0x285   : > { %v348_v48 = vpop.permute.xlu0 %347  ;;  %708 = vrcp.f32 %v283_v51 }
 0x286   : > { %v353_v56 = vsel %vm292_vm2, %v348_v48, 0  ;;  %710 = vrcp.f32 %v343_v47 }
 0x287   : > { %712 = vpow2.f32 %v436_v12 }
 0x28b   : > { %v709_v52 = vpop.eup %708 }
 0x28c   : > { %v285_v53 = vmul.f32 %v709_v52, %v707_v44  ;;  %v711_v58 = vpop.eup %710 }
 0x28d   : > { %v524_v49 = vpop.permute.xlu0 %523  ;;  %v345_v59 = vmul.f32 %v711_v58, %v705_v39  ;;  %v713_v18 = vpop.eup %712  ;;  %v248_v39 = vld [vmem:[%s889_s2 + $0x10] sm:$0xff] }
 0x28e   : > { %v529_v50 = vsel %vm292_vm2, %v524_v49, 0  ;;  %v286_v57 = vpack.c.bf16 %v285_v53, %v285_v53  ;;  %v438_v21 = vsel %vm254_vm1, %v713_v18, 0.0  ;;  %v465_v40 = vpack.c.bf16 %v248_v39, %v248_v39 }
 0x28f   : > { %538 = vmatpush.bf16.msra.mxu3 %v529_v50  ;;  %v346_v60 = vpack.c.bf16 %v345_v59, %v345_v59 }
 0x290   : > { %v471_v41 = vsel %vm292_vm2, %v465_v40, 0 }
 0x291   : > { %480 = vmatpush.bf16.msra.mxu0 %v471_v41 }
 0x29c   : > { %v288_v54 = vpop.permute.xlu1 %287 }
 0x29d   : > { %v294_v55 = vsel %vm292_vm2, %v288_v54, 0 }
 0x29e   : > { %303 = vmatpush.bf16.msra.mxu2 %v294_v55 }
 0x2a1   : > { %669 = vmatmul.msk.bf16.vlgmr.msra.gmra.mxu2 %vm254_vm1, %v286_v57 }
 0x2a2   : > { %362 = vmatpush.bf16.msrb.mxu2 %v353_v56  ;;  %v743_v56 = vmov 32.0  }
 0x2a4   : > { %v488_v5 = vpop.permute.xlu1 %487 }
 0x2b1   : > { %671 = vmatmul.msk.bf16.vlgmr.msrb.gmra.mxu2 %vm254_vm1, %v346_v60 }
 0x324   : > { %v305_v0 = vpop.f32.mrf.mxu2 }
 0x325   : > { %v310_v1 = vpack.c.bf16 %v305_v0, %v305_v0 }
 0x327   : > { %673 = vmatmul.msk.bf16.vlgmr.msrb.gmra.mxu1 %vm254_vm1, %v310_v1 }
 0x32c   : > { %v307_v2 = vpop.f32.mrf.mxu2 }
 0x334   : > { %v364_v3 = vpop.f32.mrf.mxu2 }
 0x335   : > { %v369_v4 = vpack.c.bf16 %v364_v3, %v364_v3 }
 0x337   : > { %672 = vmatmul.msk.bf16.vlgmr.msrb.gmra.mxu0 %vm254_vm1, %v369_v4  ;;  %677 = vmatmul.msk.bf16.vlgmr.msra.gmra.mxu1 %vm254_vm1, %v488_v5 }
 0x33c   : > { %v366_v7 = vpop.f32.mrf.mxu2 }
 0x3a4   : > { %v404_v8 = vpop.f32.mrf.mxu1 }
 0x3ac   : > { %v406_v10 = vpop.f32.mrf.mxu1 }
 0x3b4   : > { %v385_v13 = vpop.f32.mrf.mxu0  ;;  %v506_v14 = vpop.f32.mrf.mxu1 }
 0x3b5   : > { %v405_v15 = vadd.f32 %v404_v8, %v385_v13  ;;  %v510_v16 = vmul.f32 0.35355338, %v506_v14  ;;  %v702_v14 = vld [vmem:[%s890_s3] ss:$0 sm:$0xff] }
 0x3b7   : > { %v511_v17 = vsel %vm254_vm1, %v510_v16, -inf }
 0x3b8   : > { %512 = vmax.xlane.f32.xlu1 %v511_v17 }
 0x3bc   : > { %v387_v19 = vpop.f32.mrf.mxu0  ;;  %v508_v20 = vpop.f32.mrf.mxu1 }
 0x3c0   : > { %439 = vadd.xlane.f32.xlu1 %v438_v21 }
 0x42b   : > { %v513_v22 = vpop.xlane.xlu1 %512 }
 0x42c   : > { %v514_v23 = vsub.f32 %v510_v16, %v513_v22  ;;  %v703_v16 = vld [vmem:[%s891_s4] ss:$0 sm:$0xff] }
 0x42e   : > { %v515_v24 = vmul.f32 1.442695, %v514_v23 }
 0x430   : > { %714 = vpow2.f32 %v515_v24 }
 0x433   : > { %v440_v27 = vpop.xlane.xlu1 %439 }
 0x434   : > { %716 = vrcp.f32 %v440_v27 }
 0x436   : > { %v715_v25 = vpop.eup %714 }
 0x437   : > { %v517_v26 = vsel %vm254_vm1, %v715_v25, 0.0 }
 0x438   : > { %518 = vadd.xlane.f32.xlu2 %v517_v26 }
 0x43a   : > { %v717_v30 = vpop.eup %716 }
 0x43b   : > { %v442_v33 = vmul.f32 %v717_v30, %v713_v18 }
 0x450   : > { %444 = vrot.lane.b32.xlu2 %v807_v9, %s742_s23  ;;  %v443_v9 = vpack.c.bf16 %v442_v33, %v442_v33 }
 0x4ab   : > { %v519_v28 = vpop.xlane.xlu2 %518 }
 0x4ac   : > { %718 = vrcp.f32 %v519_v28 }
 0x4ad   : > { %720 = vrcp.f32 %v743_v56 }
 0x4b2   : > { %v719_v32 = vpop.eup %718 }
 0x4b3   : > { %v521_v34 = vmul.f32 %v719_v32, %v715_v25  ;;  %v445_v35 = vpop.permute.xlu2 %444  ;;  %v721_v57 = vpop.eup %720 }
 0x4b4   : > { %v450_v37 = vsel %vm292_vm2, %v445_v35, 0  ;;  %v571_v58 = vmul.f32 32.0, %v721_v57  ;;  %vm575_vm3 = vweird.f32 %v721_v57 }
 0x4b5   : > { %v522_v38 = vpack.c.bf16 %v521_v34, %v521_v34  ;;  %459 = vmatpush.bf16.msra.mxu2 %v450_v37 }
 0x4b6   : > { %v572_v59 = vsub.f32 1.0, %v571_v58 }
 0x4b7   : > { %678 = vmatmul.msk.bf16.vlgmr.msra.gmra.mxu3 %vm254_vm1, %v522_v38 }
 0x4b8   : > { %675 = vmatmul.msk.bf16.vlgmr.msra.gmra.mxu2 %vm254_vm1, %v443_v9  ;;  %v573_v60 = vmul.f32 %v721_v57, %v572_v59 }
 0x4b9   : > { %559 = vmatpush.bf16.msrb.mxu2 %v550_v36 }
 0x4ba   : > { %v574_v61 = vadd.f32 %v721_v57, %v573_v60 }
 0x4bc   : > { %v576_v62 = vsel %vm575_vm3, %v721_v57, %v574_v61 }
 0x53a   : > { %v540_v42 = vpop.f32.mrf.mxu3 }
 0x53b   : > { %v545_v43 = vpack.c.bf16 %v540_v42, %v540_v42  ;;  %v461_v44 = vpop.f32.mrf.mxu2 }
 0x53c   : > { %v466_v45 = vpack.c.bf16 %v461_v44, %v461_v44 }
 0x53d   : > { %679 = vmatmul.msk.bf16.vlgmr.msrb.gmra.mxu2 %vm254_vm1, %v545_v43 }
 0x53e   : > { %676 = vmatmul.msk.bf16.vlgmr.msra.gmra.mxu0 %vm254_vm1, %v466_v45 }
 0x542   : > { %v542_v46 = vpop.f32.mrf.mxu3 }
 0x543   : > { %v463_v47 = vpop.f32.mrf.mxu2 }
 0x5bb   : > { %v482_v48 = vpop.f32.mrf.mxu0 }
 0x5bc   : > { %v486_v49 = vadd.f32 %v482_v48, %v405_v15 }
 0x5c0   : > { %v561_v50 = vpop.f32.mrf.mxu2 }
 0x5c1   : > { %v565_v51 = vadd.f32 %v561_v50, %v486_v49 }
 0x5c3   : > { %v484_v52 = vpop.f32.mrf.mxu0  ;;  %v566_v53 = vadd.f32 %v565_v51, %v802_v6 }
 0x5c5   : > { %v567_v54 = vsel %vm229_vm0, %v566_v53, 0.0 }
 0x5c6   : > { %568 = vadd.xlane.f32.xlu1 %v567_v54 }
 0x5c8   : > { %v563_v55 = vpop.f32.mrf.mxu2 }
 0x639   : > { %v569_v63 = vpop.xlane.xlu1 %568 }
 0x63a   : > { %v577_v0 = vmul.f32 %v576_v62, %v569_v63 }
 0x63c   : > { %v578_v1 = vsub.f32 %v566_v53, %v577_v0 }
 0x63e   : > { %v579_v2 = vmul.f32 %v578_v1, %v578_v1 }
 0x640   : > { %v580_v3 = vsel %vm229_vm0, %v579_v2, 0.0 }
 0x641   : > { %581 = vadd.xlane.f32.xlu0 %v580_v3 }
 0x6b4   : > { %v582_v6 = vpop.xlane.xlu0 %581 }
 0x6b5   : > { %v583_v4 = vmul.f32 %v582_v6, %v576_v62 }
 0x6b7   : > { %v584_v5 = vadd.f32 1e-05, %v583_v4 }
 0x6b9   : > { %722 = vrsqrt.f32 %v584_v5  ;;  %vm591_vm5 = vweird.f32 %v584_v5 }
 0x6bf   : > { %v723_v7 = vpop.eup %722 }
 0x6c0   : > { %v586_v8 = vmul.f32 %v723_v7, %v584_v5  ;;  %vm592_vm4 = vweird.f32 %v723_v7 }
 0x6c1   : > { %vm593_vm6 = vmor %vm591_vm5, %vm592_vm4 }
 0x6c2   : > { %v587_v10 = vmul.f32 %v723_v7, %v586_v8 }
 0x6c4   : > { %v588_v11 = vmul.f32 0.5, %v587_v10 }
 0x6c6   : > { %v589_v12 = vsub.f32 1.5, %v588_v11 }
 0x6c8   : > { %v590_v13 = vmul.f32 %v723_v7, %v589_v12 }
 0x6ca   : > { %v594_v15 = vsel %vm593_vm6, %v723_v7, %v590_v13 }
 0x6cb   : > { %v595_v17 = vmul.f32 %v594_v15, %v578_v1 }
 0x6cd   : > { %v600_v18 = vmul.f32 %v702_v14, %v595_v17 }
 0x6cf   : > { %v605_v19 = vadd.f32 %v703_v16, %v600_v18 }
 0x6d1   : > { %606 = vst.msk [vmem:[%s219_s10] sm:$0xff] %vm229_vm0, %v605_v19 }
 0x6d2 PF: > { %s15_s18 = sadd.s32 1, %s730_s18  }
 0x6d3   : > { %p12_p4 = scmp.ge.s32.totalorder %s15_s18, 4  }
 0x6d5   :  { %14 = sbr.rel (!%p12_p4) target bundleno = 1 (0x1), region = 70 }

// kernel: transformer_forward.21
= control target key start
LH: loop header
LB: loop body
LE: loop exit
PB: predicated region body
PF: predicated region fallthrough
CT: control target
= control target key end

     0   :  { %7 = vsyncpa [#allocation3], 0  ;;  %s468_s0 = inlined_call_operand.vmem [shape: f32[2,8,32], index: 0, kind: input, shape index: {}]   ;;  %s469_s1 = inlined_call_operand.vmem [shape: f32[32,16], index: 1, kind: input, shape index: {}]   ;;  %s470_s2 = inlined_call_operand.hbm [shape: f32[2,8,16], index: 2, kind: output, shape index: {}]  }
   0x1   :  { %9 = vsyncpa [#allocation3 + $0x1], 0  ;;  %s371_s9 = smov 0   ;;  %s373_s10 = smov 0  }
   0x2   :  { %s375_s11 = smov 0   ;;  %s377_s12 = smov 0  }
   0x3 LB: > { %s392_s13 = sadd.s32 4294967295, %s354_s12   ;;  %s242_s14 = sadd.s32 4294967294, %s354_s12   ;;  %s354_s12 = sphi %s377_s12, %s476_s12   ;;  %s350_s11 = sphi %s375_s11, %s475_s11   ;;  %s346_s10 = sphi %s373_s10, %s474_s10   ;;  %s342_s9 = sphi %s371_s9, %s473_s9  }
   0x4   : > { %s396_s15 = sadd.s32 1, %s354_s12   ;;  %s69_s16 = sadd.s32 1, %s350_s11 }
   0x5   : > { %s66_s17 = ssub.s32 %s354_s12, %s396_s15  ;;  %p79_p0 = scmp.ne.s32.totalorder %s350_s11, %s346_s10 }
   0x6   : > { %p67_p1 = scmp.eq.s32.totalorder %s66_s17, 0  ;;  %p80_p2 = scmp.eq.s32.totalorder %s392_s13, 1 }
   0x7   : > { %p85_p3 = scmp.ne.s32.totalorder %s346_s10, %s342_s9  ;;  %p86_p4 = scmp.eq.s32.totalorder %s242_s14, 1 }
   0x8   : > { %s407_s18 = scalar_select %p67_p1, %s350_s11, %s69_s16  }
   0x9   : > { %p409_p5 = por %p80_p2, %p79_p0  ;;  %p413_p6 = por %p86_p4, %p85_p3 }
   0xa   : > { %p245_p7 = scmp.ge.s32.totalorder %s354_s12, 1  ;;  %p114_p8 = scmp.lt.s32.totalorder %s354_s12, 3 }
   0xc   : > { %p115_p9 = pnand %p245_p7, %p114_p8 }
   0xd   : > { %p135_p10 = scmp.lt.s32.totalorder (!%p115_p9), %s392_s13, 1  ;;  %s132_s6 = sand.u32 (!%p115_p9), 1, %s346_s10  }
   0xe   : > { %118 = sbr.rel (%p115_p9) target bundleno = 163 (0xa3), region = 28  ;;  %s250_s7 = sshll.u32 (!%p115_p9), %s392_s13, 3 }
   0xf   : > { %s246_s8 = sshll.u32 (!%p115_p9), %s132_s6, 3  ;;  %s178_s17 = scalar_lea.hbm (!%p115_p9), %s470_s2, %s250_s7 }
  0x10   : > { %s134_s21 = scalar_lea.vmem (!%p115_p9), [#allocation2], %s246_s8  ;;  %s182_s23 = sshll.u32 (!%p115_p9), %s178_s17, 4  ;;  %s183_s23 = int_to_ptr.hbm [resolvable:$true] %s182_s23 }
  0x11   : > { %s180_s22 = sshll.u32 (!%p115_p9), %s134_s21, 4  ;;  %s168_s24 = scalar_lea.sflag (!%p115_p9), [#allocation3], %s132_s6  ;;  %s181_s22 = int_to_ptr.vmem [resolvable:$true] %s180_s22 }
  0x12   : > { %s306_s25 = sshra.s32 (!%p115_p9), %s183_s23, 4  ;;  %s312_s28 = scalar_lea.hbm (!%p115_p9), %s470_s2, 16  ;;  %s307_s25 = int_to_ptr.hbm [resolvable:$true] %s306_s25 }
  0x13   : > { %v144_v0 = vld [vmem:[%s469_s1 + $0x10] sm:$0xff]  ;;  %v145_v1 = vld [vmem:[%s469_s1 + $0x18] sm:$0xff]  ;;  %v142_v2 = vld [vmem:[%s469_s1] sm:$0xff]  ;;  %s136_s29 = scalar_select %p135_p10, %s392_s13, 1  ;;  %vm148_vm0 = vcmask 261120   ;;  %vm165_vm1 = vcmask 130048  }
  0x14   : > { %v147_v3 = vpack.c.bf16 %v145_v1, %v144_v0  ;;  %v143_v4 = vld [vmem:[%s469_s1 + $0x8] sm:$0xff]  ;;  %s308_s26 = scalar_lea.hbm %s307_s25, 8  ;;  %p313_p0 = scmp.lt.s32.totalorder %s307_s25, %s470_s2 }
  0x15   : > { %v146_v5 = vpack.c.bf16 %v143_v4, %v142_v2  ;;  %s247_s30 = sshll.u32 %s136_s29, 3  ;;  %p309_p11 = scmp.ne.s32.totalorder %s307_s25, %s308_s26 }
  0x16   : > { %158 = vmatpush.bf16.msra.mxu0 %v147_v3  ;;  %s138_s5 = scalar_lea.vmem %s468_s0, %s247_s30  ;;  %p314_p1 = scmp.lt.s32.totalorder %s312_s28, %s308_s26 }
  0x17   : > { %v140_v6 = vld [vmem:[%s138_s5] sm:$0xff]  ;;  %p310_p12 = pnand %p309_p11, %p409_p5 }
  0x18   : > { %v141_v7 = vpack.c.bf16 %v140_v6, %v140_v6  ;;  %p315_p2 = por %p314_p1, %p313_p0 }
  0x19   : > { %p311_p13 = pneg %p310_p12 }
  0x1a   : > { %159 = vmatpush.bf16.msra.mxu0 %v146_v5 }
  0x1b   : > { %p316_p3 = pnand %p315_p2, %p311_p13 }
  0x1d   : > { %248 = vmatmul.msk.bf16.vlgmr.msra.gmra.mxu0 %vm148_vm0, %v141_v7 }
  0x9a   : > { %v161_v8 = vpop.f32.mrf.mxu0 }
  0x9b   : > { %166 = vst.msk [vmem:[%s134_s21] sm:$0xff] %vm165_vm1, %v161_v8 }
  0x9c   : > { %319 = shalt.err (!%p316_p3)
}
  0x9d   : > { %253 = dma.vmem_to_hbm [thread:$0]  (%p409_p5), %s181_s22, 128, %s183_s23, %s168_s24  }
  0xa2   : > { %v163_v9 = vpop.f32.mrf.mxu0 }
  0xa3 PF: > { %p259_p4 = scmp.ge.s32.totalorder %s354_s12, 2  ;;  %s194_s3 = sand.u32 1, %s342_s9  }
  0xa4   : > { %s195_s4 = scalar_lea.sflag [#allocation3], %s194_s3 }
  0xa5   : > { %p256_p7 = pnand %p259_p4, %p413_p6 }
  0xa7   : > { %p257_p8 = pneg %p256_p7 }
  0xa9   : > { %337 = dma.done.wait (%p257_p8), %s195_s4, 128  }
  0xaa   : > { %339 = vsyncadd (%p257_p8), %s195_s4, 4294967168  ;;  %p12_p9 = scmp.ge.s32.totalorder %s396_s15, 4   ;;  %s473_s9 = smov %s346_s10 }
  0xab   : > { %s474_s10 = smov %s350_s11  ;;  %s475_s11 = smov %s407_s18 }
  0xac   : > { %s476_s12 = smov %s396_s15  ;;  %14 = sbr.rel (!%p12_p9) target bundleno = 3 (0x3), region = 63 }
  0xb1   :  { %201 = vsyncpa [#allocation3], 1 }
  0xb2   :  { %203 = vsyncpa [#allocation3 + $0x1], 1 }

// kernel: transformer_forward.19
= control target key start
LH: loop header
LB: loop body
LE: loop exit
PB: predicated region body
PF: predicated region fallthrough
CT: control target
= control target key end

     0   :  { %11 = vsyncpa [#allocation3], 0  ;;  %s942_s21 = smov 0   ;;  %s1062_s0 = inlined_call_operand.vmem [shape: f32[2,8,32], index: 0, kind: input, shape index: {}]   ;;  %s1063_s1 = inlined_call_operand.vmem [shape: f32[2,8,32], index: 1, kind: input, shape index: {}]   ;;  %s1064_s2 = inlined_call_operand.vmem [shape: f32[32,96], index: 2, kind: input, shape index: {}]   ;;  %s1065_s3 = inlined_call_operand.vmem [shape: f32[32,32], index: 3, kind: input, shape index: {}]   ;;  %s1066_s4 = inlined_call_operand.vmem [shape: f32[1,32], index: 4, kind: input, shape index: {}]   ;;  %s1067_s5 = inlined_call_operand.hbm [shape: f32[1,32], index: 5, kind: input, shape index: {}]   ;;  %s1068_s6 = inlined_call_operand.vmem [shape: f32[2,8,32], index: 6, kind: output, shape index: {}]  }
   0x1 LB: > { %s948_s22 = sadd.s32 4294967295, %s896_s21   ;;  %p783_p0 = scmp.ge.s32.totalorder %s896_s21, 1  ;;  %s896_s21 = sphi %s942_s21, %s17_s21  }
   0x2   : > { %p184_p1 = scmp.lt.s32.totalorder %s896_s21, 3  ;;  %s205_s25 = sshll.u32 %s1067_s5, 4  ;;  %s206_s25 = int_to_ptr.hbm [resolvable:$true] %s205_s25 }
   0x3   : > { %p815_p3 = scmp.eq.s32.totalorder %s948_s22, 0  ;;  %s898_s26 = smov [#allocation2]  }
   0x4   : > { %p185_p2 = pnand %p783_p0, %p184_p1  ;;  %s207_s27 = sshll.u32 %s898_s26, 4  ;;  %s208_s27 = int_to_ptr.vmem [resolvable:$true] %s207_s27 }
   0x6   : > { %p811_p4 = pneg %p185_p2  ;;  %234 = sbr.rel (%p185_p2) target bundleno = 1745 (0x6d1), region = 44 }
   0x8   : > { %p812_p5 = pnand %p815_p3, %p811_p4 }
   0xa   : > { %814 = dma.hbm_to_vmem [thread:$0]  (!%p812_p5), %s206_s25, 16, %s208_s27, [#allocation3]  }
   0xb   : > { %891 = dma.done.wait (%p815_p3), [#allocation3], 16  }
   0xc   : > { %893 = vsyncadd (%p815_p3), [#allocation3], 4294967280  ;;  %v284_v0 = vld [vmem:[%s1064_s2 + $0x10] sm:$0xff]  ;;  %v285_v1 = vld [vmem:[%s1064_s2 + $0x18] sm:$0xff]  ;;  %s899_s12 = smov 96   ;;  %p267_p6 = scmp.lt.s32.totalorder %s948_s22, 1 }
   0xd   : > { %v282_v2 = vld [vmem:[%s1064_s2] sm:$0xff]  ;;  %v288_v3 = vpack.c.bf16 %v284_v0, %v284_v0  ;;  %v289_v4 = vpack.c.bf16 %v285_v1, %v285_v1  ;;  %v283_v5 = vld [vmem:[%s1064_s2 + $0x8] sm:$0xff]  ;;  %vm303_vm0 = vcmask 261120   ;;  %s900_s20 = smov 120   ;;  %vm349_vm1 = vcmask 64512   ;;  %s902_s23 = smov 112  }
   0xe   : > { %v286_v6 = vpack.c.bf16 %v282_v2, %v282_v2  ;;  %v287_v7 = vpack.c.bf16 %v283_v5, %v283_v5  ;;  %s1070_s22 = smov (!%p267_p6, %s948_s22), 1  ;;  %vm388_vm2 = vcmask 1043456   ;;  %v343_v40 = vld [vmem:[%s1065_s3] sm:$0xff]  ;;  %s903_s26 = smov 88  }
   0xf   : > { %v297_v8 = vunpack.c.l.b16 %v288_v3  ;;  %v298_v9 = vunpack.c.l.b16 %v289_v4  ;;  %s972_s13 = sshll.u32 %s1070_s22, 3  ;;  %s901_s22 = smov 104   ;;  %v405_v41 = vpack.c.bf16 %v343_v40, %v343_v40  ;;  %v345_v40 = vld [vmem:[%s1065_s3 + $0x10] sm:$0xff] }
  0x10   : > { %v295_v11 = vunpack.c.l.b16 %v286_v6  ;;  %v296_v12 = vunpack.c.l.b16 %v287_v7  ;;  %s270_s16 = scalar_lea.vmem %s1062_s0, %s972_s13  ;;  %s274_s19 = scalar_lea.vmem %s1063_s1, %s972_s13 }
  0x11   : > { %v300_v10 = vpack.c.b16 %v298_v9, %v297_v8  ;;  %v978_v14 = vld [vmem:[%s270_s16] sm:$0xff]  ;;  %v490_v42 = vsel %vm388_vm2, %v405_v41, 0  ;;  %s904_s27 = smov 80   ;;  %s905_s28 = smov 72   ;;  %v562_v41 = vpack.c.bf16 %v345_v40, %v345_v40 }
  0x12   : > { %v299_v13 = vpack.c.b16 %v296_v12, %v295_v11  ;;  %v290_v15 = vpack.c.bf16 %v978_v14, %v978_v14  ;;  %v281_v17 = vld [vmem:[%s274_s19] sm:$0xff]  ;;  %s278_s16 = scalar_lea.vmem %s1068_s6, %s972_s13 }
  0x13   : > { %323 = vrot.lane.b32.xlu0 %v300_v10, %s899_s12  ;;  %313 = vmatpush.bf16.msra.mxu0 %v300_v10  ;;  %v320_v19 = vpack.c.bf16 %v281_v17, %v281_v17 }
  0x17   : > { %314 = vmatpush.bf16.msra.mxu0 %v299_v13 }
  0x1a   : > { %791 = vmatmul.msk.bf16.vlgmr.msra.gmra.mxu0 %vm303_vm0, %v290_v15 }
  0x1b   : > { %321 = vrot.lane.b32.xlu0 %v299_v13, %s899_s12 }
  0x85   : > { %v324_v16 = vpop.permute.xlu0 %323 }
  0x86   : > { %336 = vmatpush.bf16.msra.mxu1 %v324_v16 }
  0x8d   : > { %v322_v18 = vpop.permute.xlu0 %321 }
  0x8e   : > { %337 = vmatpush.bf16.msra.mxu1 %v322_v18 }
  0x91   : > { %792 = vmatmul.msk.bf16.vlgmr.msra.gmra.mxu1 %vm303_vm0, %v320_v19 }
  0x97   : > { %v316_v20 = vpop.f32.mrf.mxu0 }
  0x98   : > { %v347_v21 = vpack.c.bf16 %v316_v20, %v316_v20 }
  0x9a   : > { %408 = vrot.lane.b32.xlu0 %v347_v21, %s900_s20 }
  0x9f   : > { %v318_v22 = vpop.f32.mrf.mxu0 }
  0xa2   : > { %584 = vrot.lane.b32.xlu0 %v347_v21, %s901_s22 }
 0x10c   : > { %v409_v51 = vpop.permute.xlu0 %408 }
 0x10e   : > { %v339_v23 = vpop.f32.mrf.mxu1 }
 0x10f   : > { %v989_v24 = vpack.c.bf16 %v339_v23, %v339_v23 }
 0x111   : > { %383 = vrot.lane.b32.xlu2 %v989_v24, %s899_s12  ;;  %v354_v25 = vsel %vm349_vm1, %v989_v24, 0 }
 0x112   : > { %363 = vmatpush.bf16.xpose.msra.mxu2 %v354_v25 }
 0x114   : > { %v585_v58 = vpop.permute.xlu0 %584 }
 0x116   : > { %v341_v26 = vpop.f32.mrf.mxu1 }
 0x119   : > { %410 = vrot.lane.b32.xlu2 %v989_v24, %s900_s20  ;;  %793 = vmatmul.msk.bf16.vlgmr.msra.gmra.mxu2 %vm349_vm1, %v347_v21 }
 0x11a   : > { %499 = vmatpush.bf16.msrb.mxu2 %v490_v42  ;;  %v568_v42 = vsel %vm388_vm2, %v562_v41, 0 }
 0x121   : > { %507 = vrot.lane.b32.xlu2 %v989_v24, %s902_s23 }
 0x129   : > { %505 = vrot.lane.b32.xlu2 %v347_v21, %s902_s23 }
 0x16b   : > { %v384_v27 = vpop.permute.xlu2 %383 }
 0x16c   : > { %v390_v28 = vsel %vm388_vm2, %v384_v27, 0 }
 0x16d   : > { %399 = vmatpush.bf16.msra.mxu3 %v390_v28 }
 0x173   : > { %v411_v29 = vpop.permute.xlu2 %410 }
 0x174   : > { %v416_v30 = vsel %vm349_vm1, %v411_v29, 0 }
 0x175   : > { %425 = vmatpush.bf16.xpose.msrb.mxu3 %v416_v30 }
 0x17b   : > { %v508_v46 = vpop.permute.xlu2 %507 }
 0x17c   : > { %v513_v48 = vsel %vm349_vm1, %v508_v46, 0 }
 0x183   : > { %v506_v52 = vpop.permute.xlu2 %505 }
 0x19c   : > { %v365_v31 = vpop.f32.mrf.mxu2 }
 0x19d   : > { %v369_v32 = vmul.f32 0.35355338, %v365_v31 }
 0x19f   : > { %v370_v33 = vsel %vm349_vm1, %v369_v32, -inf }
 0x1a0   : > { %371 = vmax.xlane.f32.xlu1 %v370_v33 }
 0x1a4   : > { %v367_v34 = vpop.f32.mrf.mxu2 }
 0x213   : > { %v372_v35 = vpop.xlane.xlu1 %371 }
 0x214   : > { %v373_v36 = vsub.f32 %v369_v32, %v372_v35 }
 0x216   : > { %v374_v37 = vmul.f32 1.442695, %v373_v36  ;;  %v344_v36 = vld [vmem:[%s1065_s3 + $0x8] sm:$0xff] }
 0x218   : > { %836 = vpow2.f32 %v374_v37  ;;  %v465_v37 = vpack.c.bf16 %v344_v36, %v344_v36 }
 0x21e   : > { %v837_v38 = vpop.eup %836 }
 0x21f   : > { %v376_v39 = vsel %vm349_vm1, %v837_v38, 0.0 }
 0x220   : > { %377 = vadd.xlane.f32.xlu1 %v376_v39 }
 0x239   : > { %586 = vrot.lane.b32.xlu1 %v989_v24, %s901_s22 }
 0x293   : > { %v378_v43 = vpop.xlane.xlu1 %377 }
 0x294   : > { %838 = vrcp.f32 %v378_v43 }
 0x29a   : > { %v839_v44 = vpop.eup %838 }
 0x29b   : > { %v380_v45 = vmul.f32 %v839_v44, %v837_v38  ;;  %v471_v38 = vsel %vm388_vm2, %v465_v37, 0 }
 0x29c   : > { %480 = vmatpush.bf16.msrb.mxu1 %v471_v38 }
 0x29d   : > { %v381_v47 = vpack.c.bf16 %v380_v45, %v380_v45 }
 0x29f   : > { %794 = vmatmul.msk.bf16.vlgmr.msra.gmra.mxu3 %vm349_vm1, %v381_v47 }
 0x2a0   : > { %522 = vmatpush.bf16.xpose.msra.mxu3 %v513_v48  ;;  %577 = vmatpush.bf16.msra.mxu1 %v568_v42 }
 0x2ab   : > { %v587_v49 = vpop.permute.xlu1 %586 }
 0x2ac   : > { %v592_v50 = vsel %vm349_vm1, %v587_v49, 0 }
 0x2ad   : > { %601 = vmatpush.bf16.xpose.msra.mxu2 %v592_v50 }
 0x2af   : > { %795 = vmatmul.msk.bf16.vlgmr.msrb.gmra.mxu3 %vm349_vm1, %v409_v51 }
 0x2bf   : > { %799 = vmatmul.msk.bf16.vlgmr.msra.gmra.mxu3 %vm349_vm1, %v506_v52 }
 0x322   : > { %v401_v53 = vpop.f32.mrf.mxu3 }
 0x323   : > { %v406_v54 = vpack.c.bf16 %v401_v53, %v401_v53  ;;  %v346_v53 = vld [vmem:[%s1065_s3 + $0x18] sm:$0xff] }
 0x325   : > { %798 = vmatmul.msk.bf16.vlgmr.msrb.gmra.mxu2 %vm349_vm1, %v406_v54  ;;  %v641_v54 = vpack.c.bf16 %v346_v53, %v346_v53 }
 0x32a   : > { %v403_v55 = vpop.f32.mrf.mxu3 }
 0x32b   : > { %v647_v55 = vsel %vm388_vm2, %v641_v54, 0 }
 0x332   : > { %v427_v56 = vpop.f32.mrf.mxu3 }
 0x333   : > { %v431_v57 = vmul.f32 0.35355338, %v427_v56 }
 0x335   : > { %802 = vmatmul.msk.bf16.vlgmr.msra.gmra.mxu2 %vm349_vm1, %v585_v58  ;;  %v432_v59 = vsel %vm349_vm1, %v431_v57, -inf }
 0x336   : > { %433 = vmax.xlane.f32.xlu0 %v432_v59 }
 0x33a   : > { %v429_v60 = vpop.f32.mrf.mxu3 }
 0x342   : > { %v524_v61 = vpop.f32.mrf.mxu3 }
 0x343   : > { %v528_v62 = vmul.f32 0.35355338, %v524_v61 }
 0x345   : > { %v529_v63 = vsel %vm349_vm1, %v528_v62, -inf }
 0x346   : > { %530 = vmax.xlane.f32.xlu1 %v529_v63 }
 0x34a   : > { %444 = vrot.lane.b32.xlu0 %v989_v24, %s903_s26  ;;  %v526_v0 = vpop.f32.mrf.mxu3 }
 0x3a8   : > { %v1018_v1 = vpop.f32.mrf.mxu2 }
 0x3a9   : > { %v434_v2 = vpop.xlane.xlu0 %433 }
 0x3aa   : > { %v435_v4 = vsub.f32 %v431_v57, %v434_v2 }
 0x3ac   : > { %v436_v5 = vmul.f32 1.442695, %v435_v4 }
 0x3ae   : > { %840 = vpow2.f32 %v436_v5 }
 0x3b0   : > { %v503_v3 = vpop.f32.mrf.mxu2 }
 0x3b4   : > { %v841_v15 = vpop.eup %840 }
 0x3b5   : > { %v438_v17 = vsel %vm349_vm1, %v841_v15, 0.0 }
 0x3b8   : > { %v603_v6 = vpop.f32.mrf.mxu2 }
 0x3b9   : > { %v607_v7 = vmul.f32 0.35355338, %v603_v6  ;;  %v531_v8 = vpop.xlane.xlu1 %530 }
 0x3ba   : > { %v532_v9 = vsub.f32 %v528_v62, %v531_v8 }
 0x3bb   : > { %v608_v10 = vsel %vm349_vm1, %v607_v7, -inf }
 0x3bc   : > { %v533_v11 = vmul.f32 1.442695, %v532_v9  ;;  %v445_v12 = vpop.permute.xlu0 %444  ;;  %609 = vmax.xlane.f32.xlu2 %v608_v10 }
 0x3bd   : > { %v450_v13 = vsel %vm388_vm2, %v445_v12, 0 }
 0x3be   : > { %842 = vpow2.f32 %v533_v11  ;;  %459 = vmatpush.bf16.msrb.mxu0 %v450_v13 }
 0x3c0   : > { %v605_v16 = vpop.f32.mrf.mxu2 }
 0x3c4   : > { %v843_v18 = vpop.eup %842  ;;  %439 = vadd.xlane.f32.xlu2 %v438_v17 }
 0x3c5   : > { %v535_v19 = vsel %vm349_vm1, %v843_v18, 0.0 }
 0x3c6   : > { %536 = vadd.xlane.f32.xlu1 %v535_v19 }
 0x3df   : > { %541 = vrot.lane.b32.xlu1 %v989_v24, %s904_s27 }
 0x42f   : > { %v610_v20 = vpop.xlane.xlu2 %609 }
 0x430   : > { %v611_v21 = vsub.f32 %v607_v7, %v610_v20  ;;  %v906_v7 = vmov 32.0  }
 0x432   : > { %v612_v22 = vmul.f32 1.442695, %v611_v21 }
 0x434   : > { %844 = vpow2.f32 %v612_v22 }
 0x437   : > { %v440_v23 = vpop.xlane.xlu2 %439 }
 0x438   : > { %846 = vrcp.f32 %v440_v23 }
 0x439   : > { %v537_v30 = vpop.xlane.xlu1 %536 }
 0x43a   : > { %v845_v25 = vpop.eup %844  ;;  %848 = vrcp.f32 %v537_v30  ;;  %v835_v30 = vld [vmem:[#allocation2] ss:$0 sm:$0xff] }
 0x43b   : > { %v614_v26 = vsel %vm349_vm1, %v845_v25, 0.0 }
 0x43c   : > { %615 = vadd.xlane.f32.xlu2 %v614_v26 }
 0x43e   : > { %v847_v27 = vpop.eup %846 }
 0x43f   : > { %v442_v28 = vmul.f32 %v847_v27, %v841_v15 }
 0x440   : > { %v849_v31 = vpop.eup %848 }
 0x441   : > { %v443_v29 = vpack.c.bf16 %v442_v28, %v442_v28  ;;  %v539_v32 = vmul.f32 %v849_v31, %v843_v18  ;;  %v834_v28 = vld [vmem:[%s1066_s4] ss:$0 sm:$0xff] }
 0x443   : > { %796 = vmatmul.msk.bf16.vlgmr.msrb.gmra.mxu0 %vm349_vm1, %v443_v29  ;;  %v540_v35 = vpack.c.bf16 %v539_v32, %v539_v32 }
 0x451   : > { %v542_v33 = vpop.permute.xlu1 %541 }
 0x452   : > { %v547_v34 = vsel %vm388_vm2, %v542_v33, 0 }
 0x453   : > { %556 = vmatpush.bf16.msra.mxu0 %v547_v34 }
 0x454   : > { %620 = vrot.lane.b32.xlu2 %v989_v24, %s905_s28 }
 0x456   : > { %800 = vmatmul.msk.bf16.vlgmr.msra.gmra.mxu0 %vm349_vm1, %v540_v35 }
 0x457   : > { %656 = vmatpush.bf16.msrb.mxu0 %v647_v55 }
 0x4af   : > { %v616_v39 = vpop.xlane.xlu2 %615 }
 0x4b0   : > { %850 = vrcp.f32 %v616_v39 }
 0x4b1   : > { %852 = vrcp.f32 %v906_v7 }
 0x4b6   : > { %v851_v24 = vpop.eup %850 }
 0x4b7   : > { %v618_v43 = vmul.f32 %v851_v24, %v845_v25  ;;  %v621_v44 = vpop.permute.xlu2 %620  ;;  %v853_v8 = vpop.eup %852 }
 0x4b8   : > { %v626_v45 = vsel %vm388_vm2, %v621_v44, 0  ;;  %v668_v9 = vmul.f32 32.0, %v853_v8  ;;  %vm672_vm3 = vweird.f32 %v853_v8 }
 0x4b9   : > { %v619_v46 = vpack.c.bf16 %v618_v43, %v618_v43  ;;  %635 = vmatpush.bf16.msrb.mxu3 %v626_v45 }
 0x4ba   : > { %v669_v10 = vsub.f32 1.0, %v668_v9 }
 0x4bc   : > { %803 = vmatmul.msk.bf16.vlgmr.msrb.gmra.mxu3 %vm349_vm1, %v619_v46  ;;  %v670_v11 = vmul.f32 %v853_v8, %v669_v10 }
 0x4be   : > { %v671_v12 = vadd.f32 %v853_v8, %v670_v11 }
 0x4c0   : > { %v461_v47 = vpop.f32.mrf.mxu0 }
 0x4c1   : > { %v466_v48 = vpack.c.bf16 %v461_v47, %v461_v47 }
 0x4c3   : > { %797 = vmatmul.msk.bf16.vlgmr.msrb.gmra.mxu1 %vm349_vm1, %v466_v48 }
 0x4c8   : > { %v463_v49 = vpop.f32.mrf.mxu0 }
 0x4d3   : > { %v558_v50 = vpop.f32.mrf.mxu0 }
 0x4d4   : > { %v563_v51 = vpack.c.bf16 %v558_v50, %v558_v50 }
 0x4d6   : > { %801 = vmatmul.msk.bf16.vlgmr.msra.gmra.mxu1 %vm349_vm1, %v563_v51 }
 0x4db   : > { %v560_v52 = vpop.f32.mrf.mxu0 }
 0x53f   : > { %v637_v56 = vpop.f32.mrf.mxu3 }
 0x540   : > { %v642_v57 = vpack.c.bf16 %v637_v56, %v637_v56  ;;  %v482_v58 = vpop.f32.mrf.mxu1 }
 0x541   : > { %v502_v61 = vadd.f32 %v1018_v1, %v482_v58  ;;  %v673_v1 = vsel %vm672_vm3, %v853_v8, %v671_v12 }
 0x542   : > { %804 = vmatmul.msk.bf16.vlgmr.msrb.gmra.mxu0 %vm349_vm1, %v642_v57 }
 0x547   : > { %v639_v59 = vpop.f32.mrf.mxu3 }
 0x548   : > { %v484_v60 = vpop.f32.mrf.mxu1 }
 0x553   : > { %v579_v62 = vpop.f32.mrf.mxu1 }
 0x554   : > { %v583_v63 = vadd.f32 %v579_v62, %v502_v61 }
 0x55b   : > { %v581_v0 = vpop.f32.mrf.mxu1 }
 0x5bf   : > { %v658_v2 = vpop.f32.mrf.mxu0 }
 0x5c0   : > { %v662_v3 = vadd.f32 %v658_v2, %v583_v63 }
 0x5c2   : > { %v663_v4 = vadd.f32 %v662_v3, %v978_v14 }
 0x5c4   : > { %v664_v5 = vsel %vm303_vm0, %v663_v4, 0.0 }
 0x5c5   : > { %665 = vadd.xlane.f32.xlu0 %v664_v5 }
 0x5c7   : > { %v660_v6 = vpop.f32.mrf.mxu0 }
 0x638   : > { %v666_v13 = vpop.xlane.xlu0 %665 }
 0x639   : > { %v674_v15 = vmul.f32 %v673_v1, %v666_v13 }
 0x63b   : > { %v675_v16 = vsub.f32 %v663_v4, %v674_v15 }
 0x63d   : > { %v676_v17 = vmul.f32 %v675_v16, %v675_v16 }
 0x63f   : > { %v677_v18 = vsel %vm303_vm0, %v676_v17, 0.0 }
 0x640   : > { %678 = vadd.xlane.f32.xlu2 %v677_v18 }
 0x6b3   : > { %v679_v14 = vpop.xlane.xlu2 %678 }
 0x6b4   : > { %v680_v19 = vmul.f32 %v679_v14, %v673_v1 }
 0x6b6   : > { %v681_v20 = vadd.f32 1e-05, %v680_v19 }
 0x6b8   : > { %854 = vrsqrt.f32 %v681_v20  ;;  %vm688_vm5 = vweird.f32 %v681_v20 }
 0x6be   : > { %v855_v21 = vpop.eup %854 }
 0x6bf   : > { %v683_v22 = vmul.f32 %v855_v21, %v681_v20  ;;  %vm689_vm4 = vweird.f32 %v855_v21 }
 0x6c0   : > { %vm690_vm6 = vmor %vm688_vm5, %vm689_vm4 }
 0x6c1   : > { %v684_v23 = vmul.f32 %v855_v21, %v683_v22 }
 0x6c3   : > { %v685_v25 = vmul.f32 0.5, %v684_v23 }
 0x6c5   : > { %v686_v26 = vsub.f32 1.5, %v685_v25 }
 0x6c7   : > { %v687_v27 = vmul.f32 %v855_v21, %v686_v26 }
 0x6c9   : > { %v691_v29 = vsel %vm690_vm6, %v855_v21, %v687_v27 }
 0x6ca   : > { %v692_v31 = vmul.f32 %v691_v29, %v675_v16 }
 0x6cc   : > { %v697_v32 = vmul.f32 %v834_v28, %v692_v31 }
 0x6ce   : > { %v702_v33 = vadd.f32 %v835_v30, %v697_v32 }
 0x6d0   : > { %703 = vst.msk [vmem:[%s278_s16] sm:$0xff] %vm303_vm0, %v702_v33 }
 0x6d1 PF: > { %s17_s21 = sadd.s32 1, %s896_s21  }
 0x6d2   : > { %p14_p7 = scmp.ge.s32.totalorder %s17_s21, 4  }
 0x6d4   :  { %16 = sbr.rel (!%p14_p7) target bundleno = 1 (0x1), region = 82 }
 0x6d9   :  { %723 = vsyncpa [#allocation3], 1 }
 0x6da   :  { %725 = vsyncpa [#allocation3 + $0x1], 1 }

</bundles_post_ra>
